<compile_context>
chip_gen: v7x
topology: tpu7x:2x2x1
jax: 0.10.0
libtpu: 0.0.40
codegen_flags: <defaults>
</compile_context>

<pallas_src>
import math
import functools

import jax
import jax.numpy as jnp
from jax.experimental import pallas as pl
from jax.experimental.pallas import tpu as pltpu


MASK_BIAS = -1e30  # finite additive mask bias (avoids NaN for fully-masked rows)


# ----------------------------------------------------------------------------
# Pallas kernel: one grid step == one block of Bt batch elements.
# ----------------------------------------------------------------------------
def fld_kernel(num_heads, p_real,
               tt_ref,     # (Bt, T)        timesteps
               mb_ref,     # (Bt, T)        additive key-mask bias (0 / -1e30)
               q_ref,      # (Bt, Ppad, E)  latent queries (rows >= p_real are 0)
               wslab_ref,  # (E, 3E+Cpad)   [Wq^T/sqrt(k) | Wk^T | Wv^T | Wcomb]
               ckv_ref,    # (S, 2E)        channel table (ce@Wk^T+bk | ce@Wv^T+bv),
               #                            row c*T+t == channel c (host pre-repeated)
               vec_ref,    # (1, 3E+Cpad)   [time_w | time_b | bq/sqrt(k) | bcomb]
               out_ref):   # (Bt, Cpad)
    f32 = jnp.float32
    Bt, T = tt_ref.shape
    Ppad, E = q_ref.shape[1], q_ref.shape[2]
    S = ckv_ref.shape[0]
    C = S // T
    Cpad = out_ref.shape[1]
    h = num_heads
    k = E // h
    mmdt = wslab_ref.dtype                     # bf16 (default) or f32 matmul operands

    # ---- static slices of the packed constant slabs ------------------------
    wslab = wslab_ref[...]
    wq = wslab[:, :E]                          # (E, E)   already scaled by 1/sqrt(k)
    wkv = wslab[:, E:3 * E]                    # (E, 2E)  fused Wk^T | Wv^T
    wcomb = wslab[:, 3 * E:]                   # (E, Cpad) fused Wo^T @ Wout^T (padded)
    vec = vec_ref[...]
    wt = vec[:, :E]                            # (1, E)
    bt = vec[:, E:2 * E]                       # (1, E)
    bq = vec[:, 2 * E:3 * E]                   # (1, E)   already scaled by 1/sqrt(k)
    bcomb = vec[:, 3 * E:]                     # (1, Cpad)

    # ---- learn_time: Linear(1, E) then x + sin(x)  (fp32 elementwise) -------
    tt = tt_ref[...]                                                  # (Bt, T)
    e_lin = tt[:, :, None] * wt[None, :, :] + bt[None, :, :]          # (Bt, T, E)
    et = e_lin + jnp.sin(e_lin)

    # ---- Q projection (batch folded into rows; scale pre-folded) -----------
    q2 = q_ref[...].reshape(Bt * Ppad, E)
    qp = jnp.dot(q2.astype(mmdt), wq, preferred_element_type=f32) + bq
    qp3 = qp.reshape(Bt, Ppad, E)                                     # (Bt, Ppad, E)

    # ---- fused K/V projection at T resolution -------------------------------
    et2 = et.reshape(Bt * T, E)
    etkv = jnp.dot(et2.astype(mmdt), wkv, preferred_element_type=f32) # (Bt*T, 2E)
    etkv3 = etkv.reshape(Bt, T, 2 * E)
    # channel-major key order: row c*T + t; broadcast over channels is a plain
    # sublane-axis concatenate, the channel/bias table is added in fp32.
    kvp = jnp.concatenate([etkv3] * C, axis=1) + ckv_ref[...][None, :, :]  # (Bt,S,2E)

    # key-mask additive bias, (Bt, T) -> (Bt, S) in the same channel-major order
    mbS = jnp.concatenate([mb_ref[...]] * C, axis=1)                  # (Bt, S)
    bias = mbS[:, None, :]                                            # (Bt, 1, S)

    # ---- multi-head attention, per-head context folded into Wcomb ----------
    inv_p = 1.0 / p_real
    out_acc = jnp.zeros((Bt, Cpad), dtype=f32)
    for hh in range(h):
        ks = slice(hh * k, (hh + 1) * k)
        vs = slice(E + hh * k, E + (hh + 1) * k)
        qh = qp3[:, :, ks].astype(mmdt)                               # (Bt, Ppad, k)
        kh = kvp[:, :, ks].astype(mmdt)                               # (Bt, S, k)
        vh = kvp[:, :, vs].astype(mmdt)                               # (Bt, S, k)

        s = jnp.einsum('bpk,bsk->bps', qh, kh,
                       preferred_element_type=f32) + bias             # (Bt, Ppad, S)
        m = jnp.max(s, axis=-1, keepdims=True)
        e = jnp.exp(s - m)
        denom = jnp.sum(e, axis=-1, keepdims=True)
        att = e * pl.reciprocal(denom, approx=True)                   # softmax over S

        ctx = jnp.einsum('bps,bsk->bpk', att.astype(mmdt), vh,
                         preferred_element_type=f32)                  # (Bt, Ppad, k)
        # mean over the real P query rows (padded rows excluded), then straight
        # into the fused (Wo @ Wout) output projection for this head's slice.
        pooled_h = jnp.sum(ctx[:, :p_real, :], axis=1) * inv_p        # (Bt, k)
        out_acc = out_acc + jnp.dot(pooled_h.astype(mmdt), wcomb[ks, :],
                                    preferred_element_type=f32)       # (Bt, Cpad)

    out_ref[...] = out_acc + bcomb                                    # dense 128-lane store


# ----------------------------------------------------------------------------
# Wrapper: host-side glue (weight fusion / folding, channel tables, mask bias,
# batch blocking / padding, broadcast over y_times).
# ----------------------------------------------------------------------------
def fld_forward(timesteps, X, M, y_times, Q, params, num_heads,
                block_b=32, matmul_dtype=jnp.bfloat16):
    f32 = jnp.float32
    B, T, C = X.shape
    E = params["channel_embed"].shape[1]
    P = Q.shape[1]
    S = T * C
    Ty = y_times.shape[1]
    assert E % num_heads == 0
    k_head = E // num_heads
    scale = 1.0 / math.sqrt(k_head)

    Ppad = ((P + 7) // 8) * 8                 # 8-sublane aligned query rows
    Cpad = ((C + 127) // 128) * 128           # lane-dense (unmasked) output stores

    # Batch block: multiple of 8, large enough to amortize the ~0.35 us/step
    # pipeline overhead, small enough that the grid has >= 2 "parallel" steps
    # (both v7x TensorCores) whenever the batch allows it.  Per-step VMEM at
    # Bt=32 is well under 1 MiB (kvp is the largest buffer, Bt*S*2E*4 B), so
    # block_b can be raised toward 256 for large problems.
    half = (B + 1) // 2
    Bt = min(block_b, max(8, ((half + 7) // 8) * 8))
    Bt = ((Bt + 7) // 8) * 8
    Bpad = ((B + Bt - 1) // Bt) * Bt
    nb = Bpad // Bt

    def pad_b(a):
        if Bpad == B:
            return a
        return jnp.pad(a, [(0, Bpad - B)] + [(0, 0)] * (a.ndim - 1))

    # ---- per-call inputs -----------------------------------------------------
    tt = pad_b(timesteps.astype(f32))                                  # (Bpad, T)
    m_any = jnp.any(M > 0, axis=-1)                                    # (B, T)
    mb = pad_b(jnp.where(m_any, 0.0, MASK_BIAS).astype(f32))           # (Bpad, T)
    Qp = jnp.zeros((Bpad, Ppad, E), f32).at[:B, :P, :].set(Q.astype(f32))

    # ---- constant weight fusion / folding (torch Linear: y = x @ W^T + b) ---
    ce = params["channel_embed"].astype(f32)                           # (C, E)
    WqT_s = params["Wq"].T.astype(f32) * scale                         # scale folded
    WkT = params["Wk"].T.astype(f32)
    WvT = params["Wv"].T.astype(f32)
    WkvT = jnp.concatenate([WkT, WvT], axis=1)                         # (E, 2E)
    Wcomb = params["Wo"].T.astype(f32) @ params["Wout"].T.astype(f32)  # (E, C)
    Wcomb_p = jnp.zeros((E, Cpad), f32).at[:, :C].set(Wcomb)
    wslab = jnp.concatenate([WqT_s, WkvT, Wcomb_p], axis=1).astype(matmul_dtype)

    ck = ce @ WkT + params["bk"].astype(f32)[None, :]                  # (C, E)
    cv = ce @ WvT + params["bv"].astype(f32)[None, :]                  # (C, E)
    ckv = jnp.concatenate([ck, cv], axis=1)                            # (C, 2E)
    ckv_full = jnp.repeat(ckv, T, axis=0)                              # (S, 2E) row c*T+t

    bcomb = (params["bo"].astype(f32) @ params["Wout"].T.astype(f32)
             + params["bout"].astype(f32))                             # (C,)
    bcomb_p = jnp.zeros((Cpad,), f32).at[:C].set(bcomb)
    vecs = jnp.concatenate([
        params["time_w"].reshape(-1).astype(f32),                      # (E,)
        params["time_b"].astype(f32),                                  # (E,)
        params["bq"].astype(f32) * scale,                              # (E,)
        bcomb_p,                                                       # (Cpad,)
    ], axis=0).reshape(1, 3 * E + Cpad)

    out = pl.pallas_call(
        functools.partial(fld_kernel, num_heads, P),
        out_shape=jax.ShapeDtypeStruct((Bpad, Cpad), jnp.float32),
        grid_spec=pltpu.PrefetchScalarGridSpec(
            num_scalar_prefetch=0,
            grid=(nb,),
            in_specs=[
                pl.BlockSpec((Bt, T), lambda b: (b, 0)),              # timesteps
                pl.BlockSpec((Bt, T), lambda b: (b, 0)),              # mask bias
                pl.BlockSpec((Bt, Ppad, E), lambda b: (b, 0, 0)),     # Q (padded)
                pl.BlockSpec((E, 3 * E + Cpad), lambda b: (0, 0)),    # weight slab
                pl.BlockSpec((S, 2 * E), lambda b: (0, 0)),           # channel table
                pl.BlockSpec((1, 3 * E + Cpad), lambda b: (0, 0)),    # bias row
            ],
            out_specs=pl.BlockSpec((Bt, Cpad), lambda b: (b, 0)),
        ),
        compiler_params=pltpu.CompilerParams(
            dimension_semantics=("parallel",)),   # disjoint batch blocks -> 2-TC split
    )(tt, mb, Qp, wslab, ckv_full, vecs)

    out = out[:B, :C]                                                  # drop padding
    # output is identical across y_times: pure broadcast (glue).
    return jnp.broadcast_to(out[:, None, :], (B, Ty, C))


# ----------------------------------------------------------------------------
# Pure-JAX reference (mirrors the PyTorch forward) for correctness checking.
# ----------------------------------------------------------------------------
def fld_reference(timesteps, X, M, y_times, Q, params, num_heads):
    B, T, C = X.shape
    E = params["channel_embed"].shape[1]
    P = Q.shape[1]
    S = T * C
    h = num_heads
    k = E // h
    Ty = y_times.shape[1]

    e_lin = timesteps[..., None] * params["time_w"].reshape(-1) + params["time_b"]
    et = e_lin + jnp.sin(e_lin)                                          # (B,T,E)
    e_all = et[:, :, None, :] + params["channel_embed"][None, None]      # (B,T,C,E)
    K = e_all.reshape(B, S, E)

    m_any = jnp.any(M > 0, axis=-1)
    mflat = jnp.broadcast_to(m_any[:, :, None], (B, T, C)).reshape(B, S)

    qp = Q @ params["Wq"].T + params["bq"]
    kp = K @ params["Wk"].T + params["bk"]
    vp = K @ params["Wv"].T + params["bv"]

    qph = qp.reshape(B, P, h, k).transpose(0, 2, 1, 3)
    kph = kp.reshape(B, S, h, k).transpose(0, 2, 1, 3)
    vph = vp.reshape(B, S, h, k).transpose(0, 2, 1, 3)

    scores = jnp.einsum('bhpk,bhsk->bhps', qph, kph) / math.sqrt(k)
    scores = jnp.where(mflat[:, None, None, :], scores, -jnp.inf)
    A = jax.nn.softmax(scores, axis=-1)
    Cc = jnp.einsum('bhps,bhsk->bhpk', A, vph).transpose(0, 2, 1, 3).reshape(B, P, E)

    coeffs = Cc @ params["Wo"].T + params["bo"]
    pooled = coeffs.mean(axis=1)
    out = pooled @ params["Wout"].T + params["bout"]
    return jnp.broadcast_to(out[:, None, :], (B, Ty, C))


# ----------------------------------------------------------------------------
if __name__ == "__main__":
    # Small shapes consistent with the module: function='Q' -> P=3.
    B, T, C_in = 2, 8, 4
    E, L, H, P = 32, 16, 2, 3
    Ty = 5

    key = jax.random.PRNGKey(0)
    keys = jax.random.split(key, 26)

    # Deterministic synthetic parameters (shapes match the PyTorch module).
    params = {
        "time_w": 0.1 * jax.random.normal(keys[0], (E, 1), jnp.float32),
        "time_b": 0.1 * jax.random.normal(keys[1], (E,), jnp.float32),
        "channel_embed": jax.random.normal(keys[2], (C_in, E), jnp.float32),
        "Wq": 0.1 * jax.random.normal(keys[3], (E, E), jnp.float32),
        "bq": 0.1 * jax.random.normal(keys[4], (E,), jnp.float32),
        "Wk": 0.1 * jax.random.normal(keys[5], (E, E), jnp.float32),
        "bk": 0.1 * jax.random.normal(keys[6], (E,), jnp.float32),
        "Wv": 0.1 * jax.random.normal(keys[7], (E, E), jnp.float32),
        "bv": 0.1 * jax.random.normal(keys[8], (E,), jnp.float32),
        "Wo": 0.1 * jax.random.normal(keys[9], (L, E), jnp.float32),
        "bo": 0.1 * jax.random.normal(keys[10], (L,), jnp.float32),
        "Wout": 0.1 * jax.random.normal(keys[11], (C_in, L), jnp.float32),
        "bout": 0.1 * jax.random.normal(keys[12], (C_in,), jnp.float32),
    }

    # Inputs (normalized timesteps in [0, 1)).
    timesteps = jax.random.uniform(keys[13], (B, T), jnp.float32)
    X = jax.random.normal(keys[14], (B, T, C_in), jnp.float32)
    M = (jax.random.uniform(keys[15], (B, T, C_in)) < 0.8).astype(jnp.float32)
    M = M.at[:, 0, 0].set(1.0)   # guarantee at least one valid key position per batch row
    y_times = jax.random.normal(keys[16], (B, Ty), jnp.float32)
    # The module draws Q = randn(B, P, E) inside forward(); done deterministically here.
    Q = jax.random.normal(keys[17], (B, P, E), jnp.float32)

    # --- check 1: default path (bf16 MXU operands, f32 accumulation) --------
    out = jax.block_until_ready(fld_forward(timesteps, X, M, y_times, Q, params, H))
    ref = jax.block_until_ready(fld_reference(timesteps, X, M, y_times, Q, params, H))
    assert out.shape == (B, Ty, C_in)
    # tolerance covers bf16 matmul operands + approx-reciprocal softmax denom.
    assert jnp.allclose(out, ref, rtol=2e-2, atol=2e-2), "bf16 kernel mismatch vs reference"

    # --- check 2: multi-block grid + batch padding + exact fp32 matmul path --
    B2, Ty2 = 37, 3
    timesteps2 = jax.random.uniform(keys[18], (B2, T), jnp.float32)
    X2 = jax.random.normal(keys[19], (B2, T, C_in), jnp.float32)
    M2 = (jax.random.uniform(keys[20], (B2, T, C_in)) < 0.8).astype(jnp.float32)
    M2 = M2.at[:, 0, 0].set(1.0)
    y_times2 = jax.random.normal(keys[21], (B2, Ty2), jnp.float32)
    Q2 = jax.random.normal(keys[22], (B2, P, E), jnp.float32)
    out2 = jax.block_until_ready(
        fld_forward(timesteps2, X2, M2, y_times2, Q2, params, H,
                    block_b=16, matmul_dtype=jnp.float32))
    ref2 = jax.block_until_ready(
        fld_reference(timesteps2, X2, M2, y_times2, Q2, params, H))
    assert out2.shape == (B2, Ty2, C_in)
    assert jnp.allclose(out2, ref2, rtol=5e-3, atol=5e-3), "fp32 kernel mismatch vs reference"

    print("KERNEL_OK")
</pallas_src>

<mosaic_0001>
module attributes {stable_mosaic.version = 11 : i64} {
  func.func @fld_kernel(%arg0: i32, %arg1: memref<8x8xf32, #tpu.memory_space<vmem>>, %arg2: memref<8x8xf32, #tpu.memory_space<vmem>>, %arg3: memref<8x8x32xf32, #tpu.memory_space<vmem>>, %arg4: memref<32x224xbf16, #tpu.memory_space<vmem>>, %arg5: memref<32x64xf32, #tpu.memory_space<vmem>>, %arg6: memref<1x224xf32, #tpu.memory_space<vmem>>, %arg7: memref<8x128xf32, #tpu.memory_space<vmem>>) attributes {dimension_semantics = [#tpu.dimension_semantics<parallel>], iteration_bounds = array<i64: 1>, scalar_prefetch = 0 : i64, scratch_operands = 0 : i64, tpu.core_type = #tpu.core_type<tc>, window_params = [{transform_indices = @transform_0, window_bounds = array<i64: 8, 8>}, {transform_indices = @transform_1, window_bounds = array<i64: 8, 8>}, {transform_indices = @transform_2, window_bounds = array<i64: 8, 8, 32>}, {pipeline_mode = #tpu.pipeline_mode<synchronous>, transform_indices = @transform_3, window_bounds = array<i64: 32, 224>}, {pipeline_mode = #tpu.pipeline_mode<synchronous>, transform_indices = @transform_4, window_bounds = array<i64: 32, 64>}, {pipeline_mode = #tpu.pipeline_mode<synchronous>, transform_indices = @transform_5, window_bounds = array<i64: 1, 224>}, {transform_indices = @transform_6, window_bounds = array<i64: 8, 128>}]} {
    %c0 = arith.constant 0 : index
    %c0_0 = arith.constant 0 : index
    %0 = vector.load %arg4[%c0, %c0_0] : memref<32x224xbf16, #tpu.memory_space<vmem>>, vector<32x224xbf16>
    %1 = vector.extract_strided_slice %0 {offsets = [0, 0], sizes = [32, 32], strides = [1, 1]} : vector<32x224xbf16> to vector<32x32xbf16>
    %2 = vector.extract_strided_slice %0 {offsets = [0, 32], sizes = [32, 64], strides = [1, 1]} : vector<32x224xbf16> to vector<32x64xbf16>
    %3 = vector.extract_strided_slice %0 {offsets = [0, 96], sizes = [32, 128], strides = [1, 1]} : vector<32x224xbf16> to vector<32x128xbf16>
    %c0_1 = arith.constant 0 : index
    %c0_2 = arith.constant 0 : index
    %4 = vector.load %arg6[%c0_1, %c0_2] : memref<1x224xf32, #tpu.memory_space<vmem>>, vector<1x224xf32>
    %5 = vector.extract_strided_slice %4 {offsets = [0, 0], sizes = [1, 32], strides = [1, 1]} : vector<1x224xf32> to vector<1x32xf32>
    %6 = vector.extract_strided_slice %4 {offsets = [0, 32], sizes = [1, 32], strides = [1, 1]} : vector<1x224xf32> to vector<1x32xf32>
    %7 = vector.extract_strided_slice %4 {offsets = [0, 64], sizes = [1, 32], strides = [1, 1]} : vector<1x224xf32> to vector<1x32xf32>
    %8 = vector.extract_strided_slice %4 {offsets = [0, 96], sizes = [1, 128], strides = [1, 1]} : vector<1x224xf32> to vector<1x128xf32>
    %c0_3 = arith.constant 0 : index
    %c0_4 = arith.constant 0 : index
    %9 = vector.load %arg1[%c0_3, %c0_4] : memref<8x8xf32, #tpu.memory_space<vmem>>, vector<8x8xf32>
    %10 = vector.shape_cast %9 : vector<8x8xf32> to vector<8x8x1xf32>
    %11 = vector.shape_cast %5 : vector<1x32xf32> to vector<1x1x32xf32>
    %12 = vector.broadcast %10 : vector<8x8x1xf32> to vector<8x8x32xf32>
    %13 = vector.broadcast %11 : vector<1x1x32xf32> to vector<8x8x32xf32>
    %14 = arith.mulf %12, %13 : vector<8x8x32xf32>
    %15 = vector.shape_cast %6 : vector<1x32xf32> to vector<1x1x32xf32>
    %16 = vector.broadcast %15 : vector<1x1x32xf32> to vector<8x8x32xf32>
    %17 = arith.addf %14, %16 : vector<8x8x32xf32>
    %18 = math.sin %17 : vector<8x8x32xf32>
    %19 = arith.addf %17, %18 : vector<8x8x32xf32>
    %c0_5 = arith.constant 0 : index
    %c0_6 = arith.constant 0 : index
    %c0_7 = arith.constant 0 : index
    %20 = vector.load %arg3[%c0_5, %c0_6, %c0_7] : memref<8x8x32xf32, #tpu.memory_space<vmem>>, vector<8x8x32xf32>
    %21 = vector.shape_cast %20 : vector<8x8x32xf32> to vector<64x32xf32>
    %22 = arith.truncf %21 : vector<64x32xf32> to vector<64x32xbf16>
    %cst = arith.constant dense<0.000000e+00> : vector<64x32xf32>
    %23 = tpu.matmul %22, %1, %cst {dimension_numbers = #tpu.dot_dimension_numbers<[1], [0], [0], [1], [0, 0, 1, 1], [], []>} : vector<64x32xbf16>, vector<32x32xbf16>, vector<64x32xf32> -> vector<64x32xf32>
    %24 = vector.broadcast %7 : vector<1x32xf32> to vector<64x32xf32>
    %25 = arith.addf %23, %24 : vector<64x32xf32>
    %26 = vector.shape_cast %25 : vector<64x32xf32> to vector<8x8x32xf32>
    %27 = vector.shape_cast %19 : vector<8x8x32xf32> to vector<64x32xf32>
    %28 = arith.truncf %27 : vector<64x32xf32> to vector<64x32xbf16>
    %cst_8 = arith.constant dense<0.000000e+00> : vector<64x64xf32>
    %29 = tpu.matmul %28, %2, %cst_8 {dimension_numbers = #tpu.dot_dimension_numbers<[1], [0], [0], [1], [0, 0, 1, 1], [], []>} : vector<64x32xbf16>, vector<32x64xbf16>, vector<64x64xf32> -> vector<64x64xf32>
    %30 = vector.shape_cast %29 : vector<64x64xf32> to vector<8x8x64xf32>
    %31 = tpu.concatenate %30, %30, %30, %30 in 1 : vector<8x8x64xf32>, vector<8x8x64xf32>, vector<8x8x64xf32>, vector<8x8x64xf32> -> vector<8x32x64xf32>
    %c0_9 = arith.constant 0 : index
    %c0_10 = arith.constant 0 : index
    %32 = vector.load %arg5[%c0_9, %c0_10] : memref<32x64xf32, #tpu.memory_space<vmem>>, vector<32x64xf32>
    %33 = vector.shape_cast %32 : vector<32x64xf32> to vector<1x32x64xf32>
    %34 = vector.broadcast %33 : vector<1x32x64xf32> to vector<8x32x64xf32>
    %35 = arith.addf %31, %34 : vector<8x32x64xf32>
    %c0_11 = arith.constant 0 : index
    %c0_12 = arith.constant 0 : index
    %36 = vector.load %arg2[%c0_11, %c0_12] : memref<8x8xf32, #tpu.memory_space<vmem>>, vector<8x8xf32>
    %37 = tpu.concatenate %36, %36, %36, %36 in 1 : vector<8x8xf32>, vector<8x8xf32>, vector<8x8xf32>, vector<8x8xf32> -> vector<8x32xf32>
    %38 = vector.shape_cast %37 : vector<8x32xf32> to vector<8x1x32xf32>
    %cst_13 = arith.constant 0.000000e+00 : f32
    %39 = vector.broadcast %cst_13 : f32 to vector<8x128xf32>
    %40 = vector.extract_strided_slice %26 {offsets = [0, 0, 0], sizes = [8, 8, 16], strides = [1, 1, 1]} : vector<8x8x32xf32> to vector<8x8x16xf32>
    %41 = arith.truncf %40 : vector<8x8x16xf32> to vector<8x8x16xbf16>
    %42 = vector.extract_strided_slice %35 {offsets = [0, 0, 0], sizes = [8, 32, 16], strides = [1, 1, 1]} : vector<8x32x64xf32> to vector<8x32x16xf32>
    %43 = arith.truncf %42 : vector<8x32x16xf32> to vector<8x32x16xbf16>
    %44 = vector.extract_strided_slice %35 {offsets = [0, 0, 32], sizes = [8, 32, 16], strides = [1, 1, 1]} : vector<8x32x64xf32> to vector<8x32x16xf32>
    %45 = arith.truncf %44 : vector<8x32x16xf32> to vector<8x32x16xbf16>
    "tpu.trace_start"() <{level = 10 : i32, message = "bpk,bsk->bps"}> : () -> ()
    %cst_14 = arith.constant dense<0.000000e+00> : vector<8x8x32xf32>
    %46 = tpu.matmul %41, %43, %cst_14 {dimension_numbers = #tpu.dot_dimension_numbers<[2], [2], [1], [1], [0, 0, 0, 1, 1, 1], [0], [0]>} : vector<8x8x16xbf16>, vector<8x32x16xbf16>, vector<8x8x32xf32> -> vector<8x8x32xf32>
    "tpu.trace_stop"() : () -> ()
    %47 = vector.broadcast %38 : vector<8x1x32xf32> to vector<8x8x32xf32>
    %48 = arith.addf %46, %47 : vector<8x8x32xf32>
    %cst_15 = arith.constant dense<0xFF800000> : vector<8x8xf32>
    %49 = vector.multi_reduction <maximumf>, %48, %cst_15 [2] : vector<8x8x32xf32> to vector<8x8xf32>
    %50 = vector.shape_cast %49 : vector<8x8xf32> to vector<8x8x1xf32>
    %51 = vector.broadcast %50 : vector<8x8x1xf32> to vector<8x8x32xf32>
    %52 = arith.subf %48, %51 : vector<8x8x32xf32>
    %53 = math.exp %52 : vector<8x8x32xf32>
    %cst_16 = arith.constant dense<0.000000e+00> : vector<8x8xf32>
    %54 = vector.multi_reduction <add>, %53, %cst_16 [2] : vector<8x8x32xf32> to vector<8x8xf32>
    %55 = vector.shape_cast %54 : vector<8x8xf32> to vector<8x8x1xf32>
    %56 = tpu.reciprocal %55 {approx = true} : vector<8x8x1xf32> -> vector<8x8x1xf32>
    %57 = vector.broadcast %56 : vector<8x8x1xf32> to vector<8x8x32xf32>
    %58 = arith.mulf %53, %57 : vector<8x8x32xf32>
    %59 = arith.truncf %58 : vector<8x8x32xf32> to vector<8x8x32xbf16>
    "tpu.trace_start"() <{level = 10 : i32, message = "bps,bsk->bpk"}> : () -> ()
    %cst_17 = arith.constant dense<0.000000e+00> : vector<8x8x16xf32>
    %60 = tpu.matmul %59, %45, %cst_17 {dimension_numbers = #tpu.dot_dimension_numbers<[2], [1], [1], [2], [0, 0, 0, 1, 1, 2], [0], [0]>} : vector<8x8x32xbf16>, vector<8x32x16xbf16>, vector<8x8x16xf32> -> vector<8x8x16xf32>
    "tpu.trace_stop"() : () -> ()
    %61 = vector.extract_strided_slice %60 {offsets = [0, 0, 0], sizes = [8, 3, 16], strides = [1, 1, 1]} : vector<8x8x16xf32> to vector<8x3x16xf32>
    %cst_18 = arith.constant dense<0.000000e+00> : vector<8x16xf32>
    %62 = vector.multi_reduction <add>, %61, %cst_18 [1] : vector<8x3x16xf32> to vector<8x16xf32>
    %cst_19 = arith.constant 0.333333343 : f32
    %63 = vector.broadcast %cst_19 : f32 to vector<8x16xf32>
    %64 = arith.mulf %62, %63 : vector<8x16xf32>
    %65 = arith.truncf %64 : vector<8x16xf32> to vector<8x16xbf16>
    %66 = vector.extract_strided_slice %3 {offsets = [0, 0], sizes = [16, 128], strides = [1, 1]} : vector<32x128xbf16> to vector<16x128xbf16>
    %cst_20 = arith.constant dense<0.000000e+00> : vector<8x128xf32>
    %67 = tpu.matmul %65, %66, %cst_20 {dimension_numbers = #tpu.dot_dimension_numbers<[1], [0], [0], [1], [0, 0, 1, 1], [], []>} : vector<8x16xbf16>, vector<16x128xbf16>, vector<8x128xf32> -> vector<8x128xf32>
    %68 = arith.addf %39, %67 : vector<8x128xf32>
    %69 = vector.extract_strided_slice %26 {offsets = [0, 0, 16], sizes = [8, 8, 16], strides = [1, 1, 1]} : vector<8x8x32xf32> to vector<8x8x16xf32>
    %70 = arith.truncf %69 : vector<8x8x16xf32> to vector<8x8x16xbf16>
    %71 = vector.extract_strided_slice %35 {offsets = [0, 0, 16], sizes = [8, 32, 16], strides = [1, 1, 1]} : vector<8x32x64xf32> to vector<8x32x16xf32>
    %72 = arith.truncf %71 : vector<8x32x16xf32> to vector<8x32x16xbf16>
    %73 = vector.extract_strided_slice %35 {offsets = [0, 0, 48], sizes = [8, 32, 16], strides = [1, 1, 1]} : vector<8x32x64xf32> to vector<8x32x16xf32>
    %74 = arith.truncf %73 : vector<8x32x16xf32> to vector<8x32x16xbf16>
    "tpu.trace_start"() <{level = 10 : i32, message = "bpk,bsk->bps"}> : () -> ()
    %cst_21 = arith.constant dense<0.000000e+00> : vector<8x8x32xf32>
    %75 = tpu.matmul %70, %72, %cst_21 {dimension_numbers = #tpu.dot_dimension_numbers<[2], [2], [1], [1], [0, 0, 0, 1, 1, 1], [0], [0]>} : vector<8x8x16xbf16>, vector<8x32x16xbf16>, vector<8x8x32xf32> -> vector<8x8x32xf32>
    "tpu.trace_stop"() : () -> ()
    %76 = vector.broadcast %38 : vector<8x1x32xf32> to vector<8x8x32xf32>
    %77 = arith.addf %75, %76 : vector<8x8x32xf32>
    %cst_22 = arith.constant dense<0xFF800000> : vector<8x8xf32>
    %78 = vector.multi_reduction <maximumf>, %77, %cst_22 [2] : vector<8x8x32xf32> to vector<8x8xf32>
    %79 = vector.shape_cast %78 : vector<8x8xf32> to vector<8x8x1xf32>
    %80 = vector.broadcast %79 : vector<8x8x1xf32> to vector<8x8x32xf32>
    %81 = arith.subf %77, %80 : vector<8x8x32xf32>
    %82 = math.exp %81 : vector<8x8x32xf32>
    %cst_23 = arith.constant dense<0.000000e+00> : vector<8x8xf32>
    %83 = vector.multi_reduction <add>, %82, %cst_23 [2] : vector<8x8x32xf32> to vector<8x8xf32>
    %84 = vector.shape_cast %83 : vector<8x8xf32> to vector<8x8x1xf32>
    %85 = tpu.reciprocal %84 {approx = true} : vector<8x8x1xf32> -> vector<8x8x1xf32>
    %86 = vector.broadcast %85 : vector<8x8x1xf32> to vector<8x8x32xf32>
    %87 = arith.mulf %82, %86 : vector<8x8x32xf32>
    %88 = arith.truncf %87 : vector<8x8x32xf32> to vector<8x8x32xbf16>
    "tpu.trace_start"() <{level = 10 : i32, message = "bps,bsk->bpk"}> : () -> ()
    %cst_24 = arith.constant dense<0.000000e+00> : vector<8x8x16xf32>
    %89 = tpu.matmul %88, %74, %cst_24 {dimension_numbers = #tpu.dot_dimension_numbers<[2], [1], [1], [2], [0, 0, 0, 1, 1, 2], [0], [0]>} : vector<8x8x32xbf16>, vector<8x32x16xbf16>, vector<8x8x16xf32> -> vector<8x8x16xf32>
    "tpu.trace_stop"() : () -> ()
    %90 = vector.extract_strided_slice %89 {offsets = [0, 0, 0], sizes = [8, 3, 16], strides = [1, 1, 1]} : vector<8x8x16xf32> to vector<8x3x16xf32>
    %cst_25 = arith.constant dense<0.000000e+00> : vector<8x16xf32>
    %91 = vector.multi_reduction <add>, %90, %cst_25 [1] : vector<8x3x16xf32> to vector<8x16xf32>
    %cst_26 = arith.constant 0.333333343 : f32
    %92 = vector.broadcast %cst_26 : f32 to vector<8x16xf32>
    %93 = arith.mulf %91, %92 : vector<8x16xf32>
    %94 = arith.truncf %93 : vector<8x16xf32> to vector<8x16xbf16>
    %95 = vector.extract_strided_slice %3 {offsets = [16, 0], sizes = [16, 128], strides = [1, 1]} : vector<32x128xbf16> to vector<16x128xbf16>
    %cst_27 = arith.constant dense<0.000000e+00> : vector<8x128xf32>
    %96 = tpu.matmul %94, %95, %cst_27 {dimension_numbers = #tpu.dot_dimension_numbers<[1], [0], [0], [1], [0, 0, 1, 1], [], []>} : vector<8x16xbf16>, vector<16x128xbf16>, vector<8x128xf32> -> vector<8x128xf32>
    %97 = arith.addf %68, %96 : vector<8x128xf32>
    %98 = vector.broadcast %8 : vector<1x128xf32> to vector<8x128xf32>
    %99 = arith.addf %97, %98 : vector<8x128xf32>
    %c0_28 = arith.constant 0 : index
    %c0_29 = arith.constant 0 : index
    %100 = vector.load %arg7[%c0_28, %c0_29] : memref<8x128xf32, #tpu.memory_space<vmem>>, vector<8x128xf32>
    tpu.vector_store %arg7[%c0_28, %c0_29], %99 {strides = array<i32>} : memref<8x128xf32, #tpu.memory_space<vmem>>, vector<8x128xf32>,
    return
  }
  func.func @transform_0(%arg0: i32) -> (i32, i32) {
    %c0_i32 = arith.constant 0 : i32
    %c0_i32_0 = arith.constant 0 : i32
    return %arg0, %c0_i32 : i32, i32
  }
  func.func @transform_1(%arg0: i32) -> (i32, i32) {
    %c0_i32 = arith.constant 0 : i32
    %c0_i32_0 = arith.constant 0 : i32
    return %arg0, %c0_i32 : i32, i32
  }
  func.func @transform_2(%arg0: i32) -> (i32, i32, i32) {
    %c0_i32 = arith.constant 0 : i32
    %c0_i32_0 = arith.constant 0 : i32
    %c0_i32_1 = arith.constant 0 : i32
    return %arg0, %c0_i32, %c0_i32_0 : i32, i32, i32
  }
  func.func @transform_3(%arg0: i32) -> (i32, i32) {
    %c0_i32 = arith.constant 0 : i32
    %c0_i32_0 = arith.constant 0 : i32
    %c0_i32_1 = arith.constant 0 : i32
    return %c0_i32, %c0_i32_0 : i32, i32
  }
  func.func @transform_4(%arg0: i32) -> (i32, i32) {
    %c0_i32 = arith.constant 0 : i32
    %c0_i32_0 = arith.constant 0 : i32
    %c0_i32_1 = arith.constant 0 : i32
    return %c0_i32, %c0_i32_0 : i32, i32
  }
  func.func @transform_5(%arg0: i32) -> (i32, i32) {
    %c0_i32 = arith.constant 0 : i32
    %c0_i32_0 = arith.constant 0 : i32
    %c0_i32_1 = arith.constant 0 : i32
    return %c0_i32, %c0_i32_0 : i32, i32
  }
  func.func @transform_6(%arg0: i32) -> (i32, i32) {
    %c0_i32 = arith.constant 0 : i32
    %c0_i32_0 = arith.constant 0 : i32
    return %arg0, %c0_i32 : i32, i32
  }
}

</mosaic_0001>

<bundles_post_ra>
// kernel: tpu_custom_call.1
= control target key start
LH: loop header
LB: loop body
LE: loop exit
PB: predicated region body
PF: predicated region fallthrough
CT: control target
= control target key end

     0   :  { %11 = vsyncpa [#allocation3], 0  ;;  %s6032_s0 = inlined_call_operand.hbm [shape: f32[8,8], index: 0, kind: input, shape index: {}]   ;;  %s6033_s1 = inlined_call_operand.hbm [shape: f32[8,8], index: 1, kind: input, shape index: {}]   ;;  %s6034_s2 = inlined_call_operand.hbm [shape: f32[8,8,32], index: 2, kind: input, shape index: {}]   ;;  %s6035_s3 = inlined_call_operand.hbm [shape: bf16[32,224], index: 3, kind: input, shape index: {}]   ;;  %s6036_s4 = inlined_call_operand.hbm [shape: f32[32,64], index: 4, kind: input, shape index: {}]   ;;  %s6037_s5 = inlined_call_operand.vmem [shape: f32[1,224], index: 5, kind: input, shape index: {}]   ;;  %s6038_s6 = inlined_call_operand.hbm [shape: f32[8,128], index: 6, kind: output, shape index: {}]  }
   0x1   :  { %12 = vsyncpa [#allocation6], 0 }
   0x2   :  { %13 = vsyncpa [#allocation9], 0 }
   0x3   :  { %14 = vsyncpa [#allocation4], 0  ;;  %s4324_s21 = smov [#allocation5]   ;;  %s4184_s25 = scalar_lea.hbm %s6033_s1, 128 }
   0x4   :  { %s31_s22 = sshll.u32 %s4324_s21, 4  ;;  %p4185_p0 = scmp.ne.s32.totalorder %s6033_s1, %s4184_s25  ;;  %s32_s22 = int_to_ptr.vmem [resolvable:$true] %s31_s22 }
   0x5   :  { %p4188_p1 = scmp.lt.u32.totalorder %s4184_s25, %s6033_s1 }
   0x7   :  { %p4190_p2 = pnand %p4188_p1, %p4185_p0 }
   0x9   :  { %4193 = shalt.err (!%p4190_p2)
}
   0xa   :  { %s4194_s30 = scalar_lea.vmem %s32_s22, 128  ;;  %p4199_p4 = scmp.lt.s32.totalorder %s32_s22, %s32_s22 }
   0xb   :  { %p4195_p3 = scmp.ne.s32.totalorder %s32_s22, %s4194_s30  ;;  %p4200_p5 = scmp.lt.s32.totalorder %s4194_s30, %s4194_s30 }
   0xd   :  { %p4201_p6 = por %p4200_p5, %p4199_p4 }
   0xf   :  { %p4202_p7 = pnand %p4201_p6, %p4195_p3 }
  0x11   :  { %4205 = shalt.err (!%p4202_p7)
}
  0x12   :  { %34 = dma.hbm_to_vmem [thread:$0]  %s6033_s1, 128, %s32_s22, [#allocation6]  }
  0x13   :  { %s4325_s9 = smov [#allocation8]   ;;  %s4326_s11 = smov [#allocation2]  }
  0x14   :  { %s52_s10 = sshll.u32 %s4325_s9, 4  ;;  %s21_s12 = sshll.u32 %s4326_s11, 4  ;;  %s53_s10 = int_to_ptr.vmem [resolvable:$true] %s52_s10  ;;  %s22_s12 = int_to_ptr.vmem [resolvable:$true] %s21_s12 }
  0x15   :  { %s4206_s15 = scalar_lea.hbm %s6035_s3, 512 }
  0x16   :  { %p4207_p8 = scmp.ne.s32.totalorder %s6035_s3, %s4206_s15  ;;  %p4210_p9 = scmp.lt.u32.totalorder %s4206_s15, %s6035_s3 }
  0x18   :  { %p4212_p10 = pnand %p4210_p9, %p4207_p8 }
  0x1a   :  { %4215 = shalt.err (!%p4212_p10)
}
  0x1b   :  { %s4216_s1 = scalar_lea.vmem %s53_s10, 512  ;;  %p4221_p12 = scmp.lt.s32.totalorder %s53_s10, %s53_s10 }
  0x1c   :  { %p4217_p11 = scmp.ne.s32.totalorder %s53_s10, %s4216_s1  ;;  %p4222_p13 = scmp.lt.s32.totalorder %s4216_s1, %s4216_s1 }
  0x1e   :  { %p4223_p0 = por %p4222_p13, %p4221_p12 }
  0x20   :  { %p4224_p1 = pnand %p4223_p0, %p4217_p11 }
  0x22   :  { %4227 = shalt.err (!%p4224_p1)
}
  0x23   :  { %s4327_s20 = smov 128   ;;  %s4328_s21 = smov 8  }
  0x24   :  { %58 = dma.hbm_to_vmem [thread:$0]  %s6035_s3, 512, %s53_s10, [#allocation9], %s4327_s20, %s4327_s20, %s4328_s21  }
  0x25   :  { %s4228_s26 = scalar_lea.hbm %s6032_s0, 128 }
  0x26   :  { %p4229_p2 = scmp.ne.s32.totalorder %s6032_s0, %s4228_s26  ;;  %p4232_p3 = scmp.lt.u32.totalorder %s4228_s26, %s6032_s0 }
  0x28   :  { %p4234_p4 = pnand %p4232_p3, %p4229_p2 }
  0x2a   :  { %4237 = shalt.err (!%p4234_p4)
}
  0x2b   :  { %s4238_s7 = scalar_lea.vmem %s22_s12, 128  ;;  %p4243_p6 = scmp.lt.s32.totalorder %s22_s12, %s22_s12 }
  0x2c   :  { %p4239_p5 = scmp.ne.s32.totalorder %s22_s12, %s4238_s7  ;;  %p4244_p7 = scmp.lt.s32.totalorder %s4238_s7, %s4238_s7 }
  0x2e   :  { %p4245_p8 = por %p4244_p7, %p4243_p6 }
  0x30   :  { %p4246_p9 = pnand %p4245_p8, %p4239_p5 }
  0x32   :  { %4249 = shalt.err (!%p4246_p9)
}
  0x33   :  { %24 = dma.hbm_to_vmem [thread:$0]  %s6032_s0, 128, %s22_s12, [#allocation3]  }
  0x34   :  { %s4329_s9 = smov [#allocation7]   ;;  %s4330_s11 = smov [#allocation10]  }
  0x35   :  { %s40_s10 = sshll.u32 %s4329_s9, 4  ;;  %s64_s13 = sshll.u32 %s4330_s11, 4  ;;  %s41_s10 = int_to_ptr.vmem [resolvable:$true] %s40_s10  ;;  %s65_s13 = int_to_ptr.vmem [resolvable:$true] %s64_s13 }
  0x36   :  { %s4250_s16 = scalar_lea.hbm %s6034_s2, 1024 }
  0x37   :  { %p4251_p10 = scmp.ne.s32.totalorder %s6034_s2, %s4250_s16  ;;  %p4254_p11 = scmp.lt.u32.totalorder %s4250_s16, %s6034_s2 }
  0x39   :  { %p4256_p12 = pnand %p4254_p11, %p4251_p10 }
  0x3b   :  { %4259 = shalt.err (!%p4256_p12)
}
  0x3c   :  { %s4260_s0 = scalar_lea.vmem %s41_s10, 1024  ;;  %p4265_p0 = scmp.lt.s32.totalorder %s41_s10, %s41_s10 }
  0x3d   :  { %p4261_p13 = scmp.ne.s32.totalorder %s41_s10, %s4260_s0  ;;  %p4266_p1 = scmp.lt.s32.totalorder %s4260_s0, %s4260_s0 }
  0x3f   :  { %p4267_p2 = por %p4266_p1, %p4265_p0 }
  0x41   :  { %p4268_p3 = pnand %p4267_p2, %p4261_p13 }
  0x43   :  { %4271 = shalt.err (!%p4268_p3)
}
  0x44   :  { %46 = dma.hbm_to_vmem [thread:$0]  %s6034_s2, 1024, %s41_s10, [#allocation6], %s4327_s20, %s4327_s20, %s4328_s21  }
  0x45   :  { %s4272_s25 = scalar_lea.hbm %s6036_s4, 512 }
  0x46   :  { %p4273_p4 = scmp.ne.s32.totalorder %s6036_s4, %s4272_s25  ;;  %p4276_p5 = scmp.lt.u32.totalorder %s4272_s25, %s6036_s4 }
  0x48   :  { %p4278_p6 = pnand %p4276_p5, %p4273_p4 }
  0x4a   :  { %4281 = shalt.err (!%p4278_p6)
}
  0x4b   :  { %s4282_s30 = scalar_lea.vmem %s65_s13, 512  ;;  %p4287_p8 = scmp.lt.s32.totalorder %s65_s13, %s65_s13 }
  0x4c   :  { %p4283_p7 = scmp.ne.s32.totalorder %s65_s13, %s4282_s30  ;;  %p4288_p9 = scmp.lt.s32.totalorder %s4282_s30, %s4282_s30 }
  0x4e   :  { %p4289_p10 = por %p4288_p9, %p4287_p8 }
  0x50   :  { %p4290_p11 = pnand %p4289_p10, %p4283_p7 }
  0x52   :  { %4293 = shalt.err (!%p4290_p11)
}
  0x53   :  { %70 = dma.hbm_to_vmem [thread:$0]  %s6036_s4, 512, %s65_s13, [#allocation9], %s4327_s20, %s4327_s20, %s4328_s21  }
  0x54   :  { %4316 = dma.done.wait [#allocation3], 128  }
  0x55   :  { %4317 = vsyncadd [#allocation3], 4294967168 }
  0x56   :  { %4318 = dma.done.wait [#allocation6], 1152  }
  0x57   :  { %4319 = vsyncadd [#allocation6], 4294966144 }
  0x58   :  { %4320 = dma.done.wait [#allocation9], 1024  }
  0x59   :  { %4321 = vsyncadd [#allocation9], 4294966272  ;;  %v95_v0 = vlaneseq  ;;  %v94_v6 = vld [vmem:[#allocation2] sm:$0xff]  ;;  %v4079_v11 = vld [vmem:[#allocation8] ss:$8 sps:$4 sm:$0xff]   ;;  %s4338_s3 = smov 64  }
  0x5a   :  { %v93_v9 = vld [vmem:[%s6037_s5] sm:$0x3]  ;;  %3731 = vmatprep.subr.bf16.mxu0 %v4079_v11  ;;  %s4331_s5 = smov 96   ;;  %s4340_s8 = smov 16  }
  0x5b   :  { %v4452_v1 = vshrl.u32 %v95_v0, 7  ;;  %v4081_v15 = vld [vmem:[#allocation8 + $0x10] ss:$8 sps:$4 sm:$0xff]   ;;  %3732 = vmatpush3.bf16.msra.mxu0 %v4079_v11  ;;  %s4344_s9 = smov 112   ;;  %s4345_s10 = smov 80  }
  0x5c   :  { %3733 = vmatprep.subr.bf16.mxu0 %v4081_v15  ;;  %s4346_s11 = smov 32   ;;  %s4347_s13 = smov [#allocation11]  }
  0x5d   :  { %v111_v2 = vsub.s32 2, %v4452_v1  ;;  %v4456_v3 = vsub.s32 0, %v4452_v1  ;;  %v118_v4 = vsub.s32 3, %v4452_v1  ;;  %v104_v5 = vsub.s32 1, %v4452_v1  ;;  %s3530_s14 = sshll.u32 %s4347_s13, 4  ;;  %s3531_s14 = int_to_ptr.vmem [resolvable:$true] %s3530_s14 }
  0x5e   :  { %v125_v14 = vsub.s32 4, %v4452_v1  ;;  %v139_v18 = vsub.s32 6, %v4452_v1  ;;  %v132_v19 = vsub.s32 5, %v4452_v1  ;;  %v146_v22 = vsub.s32 7, %v4452_v1  ;;  %s4294_s15 = scalar_lea.vmem %s3531_s14, 128  ;;  %p4299_p13 = scmp.lt.s32.totalorder %s3531_s14, %s3531_s14 }
  0x5f   :  { %6057 = vst [vmem:[#allocation16_spill] sm:$0xff] %v4456_v3  ;;  %v112_v7 = vrot.slane %v94_v6, %v111_v2  ;;  %v98_v8 = vrot.slane %v94_v6, %v4456_v3  ;;  %v4464_v10 = vrot.slane %v93_v9, %v104_v5  ;;  %v119_v12 = vrot.slane %v94_v6, %v118_v4  ;;  %p4295_p12 = scmp.ne.s32.totalorder %s3531_s14, %s4294_s15  ;;  %p4300_p0 = scmp.lt.s32.totalorder %s4294_s15, %s4294_s15 }
  0x60   :  { %v105_v13 = vrot.slane %v94_v6, %v104_v5  ;;  %v4468_v16 = vrot.slane %v93_v9, %v4456_v3  ;;  %v126_v17 = vrot.slane %v94_v6, %v125_v14  ;;  %3734 = vmatpush3.bf16.msra.mxu0 %v4081_v15  ;;  %v140_v20 = vrot.slane %v94_v6, %v139_v18 }
  0x61   :  { %6058 = vst [vmem:[#allocation17_spill] sm:$0xff] %v4464_v10  ;;  %114 = vbcast.lane.b32.xlu1 %v112_v7, 256  ;;  %100 = vbcast.lane.b32.xlu0 %v98_v8, 256  ;;  %v133_v21 = vrot.slane %v94_v6, %v132_v19  ;;  %v147_v23 = vrot.slane %v94_v6, %v146_v22  ;;  %v6050_v7 = vmov 683565275   ;;  %p4301_p1 = por %p4300_p0, %p4299_p13 }
  0x62   :  { %6059 = vst [vmem:[#allocation18_spill] sm:$0xff] %v4468_v16  ;;  %v6046_v9 = vmov 2475754826   ;;  %v6052_v14 = vmov 2102212464  }
  0x63   :  { %p4302_p2 = pnand %p4301_p1, %p4295_p12 }
  0x65   :  { %121 = vbcast.lane.b32.xlu1 %v119_v12, 256  ;;  %107 = vbcast.lane.b32.xlu0 %v105_v13, 256  ;;  %v6048_v12 = vmov 2131351028  }
  0x69   :  { %128 = vbcast.lane.b32.xlu1 %v126_v17, 256  ;;  %165 = vrot.lane.b32.xlu0 %v4468_v16, %s4331_s5 }
  0x6d   :  { %142 = vbcast.lane.b32.xlu1 %v140_v20, 256  ;;  %135 = vbcast.lane.b32.xlu0 %v133_v21, 256  ;;  %v4336_v20 = vmov 920167782  }
  0x71   :  { %149 = vbcast.lane.b32.xlu0 %v147_v23, 256  ;;  %1125 = vrot.lane.b32.xlu1 %v4079_v11, %s4331_s5  ;;  %v6043_v23 = vmov 1326507024  }
  0x75   :  { %1127 = vrot.lane.b32.xlu0 %v4081_v15, %s4331_s5  ;;  %1040 = vrot.lane.b32.xlu1 %v4468_v16, %s4338_s3 }
  0xd3   :  { %v4477_v24 = vpop.permute.xlu1 %114  ;;  %v101_v25 = vpop.permute.xlu0 %100 }
  0xd4   :  { %v157_v33 = vmul.f32 %v4468_v16, %v101_v25 }
  0xd7   :  { %v4479_v26 = vpop.permute.xlu1 %121  ;;  %v4481_v27 = vpop.permute.xlu0 %107 }
  0xdb   :  { %v4483_v28 = vpop.permute.xlu1 %128  ;;  %v4485_v29 = vpop.permute.xlu0 %165 }
  0xdc   :  { %v4497_v39 = vadd.f32 %v4485_v29, %v157_v33 }
  0xde   :  { %v179_v48 = vand.u32 2139095040, %v4497_v39 }
  0xdf   :  { %v143_v30 = vpop.permute.xlu1 %142  ;;  %v136_v31 = vpop.permute.xlu0 %135 }
  0xe0   :  { %v163_v32 = vmul.f32 %v4468_v16, %v143_v30  ;;  %v162_v34 = vmul.f32 %v4468_v16, %v136_v31  ;;  %v180_v56 = vshrl.u32 %v179_v48, 23 }
  0xe2   :  { %v4491_v35 = vadd.f32 %v4485_v29, %v163_v32  ;;  %v4494_v36 = vadd.f32 %v4485_v29, %v162_v34  ;;  %v4517_v0 = vadd.s32 4294967169, %v180_v56 }
  0xe3   :  { %v150_v37 = vpop.permute.xlu0 %149  ;;  %v1126_v38 = vpop.permute.xlu1 %1125 }
  0xe4   :  { %v6040_v40 = vand.u32 2147483647, %v4491_v35  ;;  %v803_v41 = vand.u32 2139095040, %v4491_v35  ;;  %3743 = vmatprep.subr.bf16.mxu1 %v1126_v38  ;;  %v699_v42 = vand.u32 2139095040, %v4494_v36  ;;  %v164_v43 = vmul.f32 %v4468_v16, %v150_v37 }
  0xe5   :  { %3744 = vmatpush3.bf16.msra.mxu1 %v1126_v38  ;;  %v6041_v54 = vand.u32 2147483647, %v4494_v36 }
  0xe6   :  { %v804_v44 = vshrl.u32 %v803_v41, 23  ;;  %v807_v45 = vand.u32 8388607, %v6040_v40  ;;  %v700_v46 = vshrl.u32 %v699_v42, 23  ;;  %v4507_v50 = vadd.f32 %v4485_v29, %v164_v43 }
  0xe7   :  { %v1128_v47 = vpop.permute.xlu0 %1127  ;;  %v4515_v63 = vand.u32 8388607, %v6041_v54 }
  0xe8   :  { %v3565_v49 = vadd.s32 4294967169, %v804_v44  ;;  %3745 = vmatprep.subr.bf16.mxu1 %v1128_v47  ;;  %v3561_v51 = vadd.s32 4294967169, %v700_v46  ;;  %v808_v53 = vor.u32 8388608, %v807_v45  ;;  %v907_v57 = vand.u32 2139095040, %v4507_v50 }
  0xe9   :  { %3746 = vmatpush3.bf16.msra.mxu1 %v1128_v47 }
  0xea   :  { %v810_v52 = vadd.s32 1, %v3565_v49  ;;  %v706_v55 = vadd.s32 1, %v3561_v51  ;;  %v4511_v62 = vshll.u32 %v808_v53, 8  ;;  %v908_v6 = vshrl.u32 %v907_v57, 23 }
  0xec   :  { %vm811_vm0 = vcmp.gt.s32.totalorder %v810_v52, 0  ;;  %vm707_vm1 = vcmp.gt.s32.totalorder %v706_v55, 0 }
  0xed   :  { %v812_v58 = vsel %vm811_vm0, %v810_v52, 0  ;;  %v708_v60 = vsel %vm707_vm1, %v706_v55, 0 }
  0xee   :  { %v814_v59 = vand.u32 31, %v812_v58  ;;  %v813_v61 = vshrl.u32 %v812_v58, 5  ;;  %v4519_v4 = vshrl.u32 %v708_v60, 5  ;;  %v710_v5 = vand.u32 31, %v708_v60 }
  0xf0   :  { %v815_v2 = vsub.s32 32, %v814_v59  ;;  %v817_v8 = vshll.u32 %v6050_v7, %v814_v59  ;;  %v820_v11 = vshll.u32 %v6046_v9, %v814_v59  ;;  %v823_v13 = vshll.u32 %v6048_v12, %v814_v59 }
  0xf1   :  { %v826_v15 = vshll.u32 %v6052_v14, %v814_v59  ;;  %v829_v21 = vshll.u32 %v4336_v20, %v814_v59  ;;  %vm832_vm2 = vcmp.lt.s32.totalorder %v813_v61, 1  ;;  %vm833_vm3 = vcmp.lt.s32.totalorder %v813_v61, 2 }
  0xf2   :  { %v818_v17 = vshrl.u32 %v6046_v9, %v815_v2  ;;  %v821_v18 = vshrl.u32 %v6048_v12, %v815_v2  ;;  %v824_v19 = vshrl.u32 %v6052_v14, %v815_v2  ;;  %v827_v22 = vshrl.u32 %v4336_v20, %v815_v2 }
  0xf3   :  { %v830_v25 = vshrl.u32 %v6043_v23, %v815_v2  ;;  %v4531_v33 = vsub.s32 32, %v710_v5  ;;  %v816_v34 = vshrl.u32 %v6050_v7, %v815_v2  ;;  %vm835_vm4 = vcmp.lt.s32.totalorder %v813_v61, 4 }
  0xf4   :  { %v819_v30 = vor.u32 %v818_v17, %v817_v8  ;;  %v822_v31 = vor.u32 %v821_v18, %v820_v11  ;;  %v825_v32 = vor.u32 %v824_v19, %v823_v13  ;;  %v828_v37 = vor.u32 %v827_v22, %v826_v15 }
  0xf5   :  { %v831_v38 = vor.u32 %v830_v25, %v829_v21  ;;  %vm834_vm5 = vcmp.lt.s32.totalorder %v813_v61, 3  ;;  %v713_v46 = vshll.u32 %v6050_v7, %v710_v5  ;;  %v716_v47 = vshll.u32 %v6046_v9, %v710_v5 }
  0xf6   :  { %v837_v41 = vsel %vm835_vm4, %v825_v32, 2102212464  ;;  %v840_v42 = vsel %vm832_vm2, %v819_v30, %v822_v31  ;;  %v844_v43 = vsel %vm832_vm2, %v822_v31, %v825_v32  ;;  %v841_v44 = vsel %vm835_vm4, %v828_v37, 920167782 }
  0xf7   :  { %v845_v45 = vsel %vm835_vm4, %v831_v38, 1326507024  ;;  %v836_v48 = vsel %vm832_vm2, %v816_v34, %v819_v30  ;;  %v842_v49 = vsel %vm834_vm5, %v825_v32, %v841_v44  ;;  %v714_v52 = vshrl.u32 %v6046_v9, %v4531_v33 }
  0xf8   :  { %v846_v51 = vsel %vm834_vm5, %v828_v37, %v845_v45  ;;  %v838_v53 = vsel %vm834_vm5, %v822_v31, %v837_v41  ;;  %v843_v55 = vsel %vm833_vm3, %v840_v42, %v842_v49  ;;  %v717_v57 = vshrl.u32 %v6048_v12, %v4531_v33 }
  0xf9   :  { %v847_v56 = vsel %vm833_vm3, %v844_v43, %v846_v51  ;;  %v4550_v60 = vmul.u32.u64.low %v4511_v62, %v843_v55  ;;  %v4551_v2 = vmul.u32.u64.high %v4511_v62, %v843_v55, %v4550_v60  ;;  %v715_v8 = vor.u32 %v714_v52, %v713_v46 }
  0xfa   :  { %v4546_v58 = vmul.u32.u64.low %v4511_v62, %v847_v56  ;;  %v4547_v59 = vmul.u32.u64.high %v4511_v62, %v847_v56, %v4546_v58  ;;  %v718_v11 = vor.u32 %v717_v57, %v716_v47  ;;  %v719_v13 = vshll.u32 %v6048_v12, %v710_v5 }
  0xfb   :  { %v720_v15 = vshrl.u32 %v6052_v14, %v4531_v33  ;;  %v839_v17 = vsel %vm833_vm3, %v836_v48, %v838_v53  ;;  %v722_v18 = vshll.u32 %v6052_v14, %v710_v5  ;;  %v723_v19 = vshrl.u32 %v4336_v20, %v4531_v33 }
  0xfc   :  { %v726_v21 = vshrl.u32 %v6043_v23, %v4531_v33  ;;  %v704_v22 = vor.u32 8388608, %v4515_v63  ;;  %v725_v30 = vshll.u32 %v4336_v20, %v710_v5  ;;  %v3569_v31 = vadd.s32 4294967169, %v908_v6 }
  0xfd   :  { %v721_v25 = vor.u32 %v720_v15, %v719_v13  ;;  %vm857_vm6 = vc.u32 %v4547_v59, %v4550_v60  ;;  %v858_v61 = vadd.s32 1, %v4551_v2  ;;  %v724_v32 = vor.u32 %v723_v19, %v722_v18 }
  0xfe   :  { %vm728_vm7 = vcmp.lt.s32.totalorder %v4519_v4, 1  ;;  %v855_v34 = vmul.u32 %v4511_v62, %v839_v17  ;;  %v727_v37 = vor.u32 %v726_v21, %v725_v30  ;;  %vm731_vm8 = vcmp.lt.s32.totalorder %v4519_v4, 4 }
  0xff   :  { %v736_v63 = vsel %vm728_vm7, %v715_v8, %v718_v11  ;;  %v859_v38 = vsel %vm857_vm6, %v858_v61, %v4551_v2  ;;  %vm730_vm9 = vcmp.lt.s32.totalorder %v4519_v4, 3  ;;  %v737_v5 = vsel %vm731_vm8, %v724_v32, 920167782 }
 0x100   :  { %v740_v6 = vsel %vm728_vm7, %v718_v11, %v721_v25  ;;  %vm729_vm10 = vcmp.lt.s32.totalorder %v4519_v4, 2  ;;  %v738_v62 = vsel %vm730_vm9, %v721_v25, %v737_v5  ;;  %v741_v41 = vsel %vm731_vm8, %v727_v37, 1326507024 }
 0x101   :  { %v744_v42 = vshll.u32 %v704_v22, 8  ;;  %v860_v43 = vadd.s32 %v859_v38, %v855_v34  ;;  %v739_v44 = vsel %vm729_vm10, %v736_v63, %v738_v62  ;;  %v742_v45 = vsel %vm730_vm9, %v724_v32, %v741_v41 }
 0x102   :  { %v914_v46 = vadd.s32 1, %v3569_v31  ;;  %v743_v47 = vsel %vm729_vm10, %v740_v6, %v742_v45  ;;  %v186_v51 = vadd.s32 1, %v4517_v0  ;;  %v733_v52 = vsel %vm731_vm8, %v721_v25, 2102212464 }
 0x103   :  { %v4590_v48 = vmul.u32.u64.low %v744_v42, %v739_v44  ;;  %v4591_v49 = vmul.u32.u64.high %v744_v42, %v739_v44, %v4590_v48  ;;  %v4597_v53 = vmul.u32.u64.low %v744_v42, %v743_v47  ;;  %v4598_v55 = vmul.u32.u64.high %v744_v42, %v743_v47, %v4597_v53 }
 0x104   :  { %vm915_vm11 = vcmp.gt.s32.totalorder %v914_v46, 0  ;;  %v712_v56 = vshrl.u32 %v6050_v7, %v4531_v33  ;;  %v861_v58 = vadd.s32 536870912, %v860_v43  ;;  %v734_v15 = vsel %vm730_vm9, %v718_v11, %v733_v52 }
 0x105   :  { %v916_v57 = vsel %vm915_vm11, %v914_v46, 0  ;;  %vm187_vm12 = vcmp.gt.s32.totalorder %v186_v51, 0  ;;  %v6039_v17 = vand.u32 2147483647, %v4507_v50  ;;  %v176_v33 = vand.u32 2147483647, %v4497_v39 }
 0x106   :  { %v918_v2 = vand.u32 31, %v916_v57  ;;  %v732_v13 = vsel %vm728_vm7, %v712_v56, %v715_v8  ;;  %v4609_v18 = vshrl.u32 %v861_v58, 30  ;;  %v188_v21 = vsel %vm187_vm12, %v186_v51, 0 }
 0x107   :  { %v735_v19 = vsel %vm729_vm10, %v732_v13, %v734_v15  ;;  %v754_v22 = vadd.s32 1, %v4591_v49  ;;  %v4615_v25 = vshrl.u32 %v916_v57, 5  ;;  %vm753_vm13 = vc.u32 %v4598_v55, %v4590_v48 }
 0x108   :  { %v4606_v0 = vsub.s32 32, %v918_v2  ;;  %v930_v8 = vshll.u32 %v6052_v14, %v918_v2  ;;  %v911_v61 = vand.u32 8388607, %v6039_v17  ;;  %v933_v34 = vshll.u32 %v4336_v20, %v918_v2 }
 0x109   :  { %v921_v63 = vshll.u32 %v6050_v7, %v918_v2  ;;  %v924_v38 = vshll.u32 %v6046_v9, %v918_v2  ;;  %v927_v5 = vshll.u32 %v6048_v12, %v918_v2  ;;  %v190_v6 = vand.u32 31, %v188_v21 }
 0x10a   :  { %v931_v11 = vshrl.u32 %v4336_v20, %v4606_v0  ;;  %v922_v30 = vshrl.u32 %v6046_v9, %v4606_v0  ;;  %v925_v4 = vshrl.u32 %v6048_v12, %v4606_v0  ;;  %v928_v31 = vshrl.u32 %v6052_v14, %v4606_v0 }
 0x10b   :  { %v934_v37 = vshrl.u32 %v6043_v23, %v4606_v0  ;;  %v863_v62 = vshll.u32 %v4609_v18, 30  ;;  %v751_v41 = vmul.u32 %v744_v42, %v735_v19  ;;  %v755_v44 = vsel %vm753_vm13, %v754_v22, %v4591_v49 }
 0x10c   :  { %v932_v32 = vor.u32 %v931_v11, %v930_v8  ;;  %v4638_v46 = vor.u32 %v922_v30, %v921_v63  ;;  %v4640_v47 = vor.u32 %v925_v4, %v924_v38  ;;  %v929_v51 = vor.u32 %v928_v31, %v927_v5 }
 0x10d   :  { %v935_v45 = vor.u32 %v934_v37, %v933_v34  ;;  %vm939_vm14 = vcmp.lt.s32.totalorder %v4615_v25, 4  ;;  %v160_v52 = vmul.f32 %v4468_v16, %v4479_v26  ;;  %v183_v56 = vand.u32 8388607, %v176_v33 }
 0x10e   :  { %v945_v53 = vsel %vm939_vm14, %v932_v32, 920167782  ;;  %v159_v42 = vmul.f32 %v4468_v16, %v4477_v24  ;;  %v158_v49 = vmul.f32 %v4468_v16, %v4481_v27  ;;  %v161_v57 = vmul.f32 %v4468_v16, %v4483_v28 }
 0x10f   :  { %v756_v58 = vadd.s32 %v755_v44, %v751_v41  ;;  %vm936_vm15 = vcmp.lt.s32.totalorder %v4615_v25, 1  ;;  %vm938_vm0 = vcmp.lt.s32.totalorder %v4615_v25, 3  ;;  %v949_v26 = vsel %vm939_vm14, %v935_v45, 1326507024 }
 0x110   :  { %v191_v2 = vsub.s32 32, %v190_v6  ;;  %v4659_v13 = vsub.s32 %v860_v43, %v863_v62  ;;  %v912_v15 = vor.u32 8388608, %v911_v61  ;;  %v944_v24 = vsel %vm936_vm15, %v4638_v46, %v4640_v47 }
 0x111   :  { %v946_v27 = vsel %vm938_vm0, %v929_v51, %v945_v53  ;;  %v4668_v28 = vadd.f32 %v4485_v29, %v159_v42  ;;  %v4671_v19 = vadd.f32 %v4485_v29, %v160_v52  ;;  %v4674_v22 = vadd.f32 %v4485_v29, %v158_v49 }
 0x112   :  { %v184_v43 = vor.u32 8388608, %v183_v56  ;;  %v757_v8 = vadd.s32 536870912, %v756_v58  ;;  %vm937_vm1 = vcmp.lt.s32.totalorder %v4615_v25, 2  ;;  %v948_v11 = vsel %vm936_vm15, %v4640_v47, %v929_v51 }
 0x113   :  { %v950_v30 = vsel %vm938_vm0, %v932_v32, %v949_v26  ;;  %v947_v4 = vsel %vm937_vm1, %v944_v24, %v946_v27  ;;  %v4684_v31 = vshrl.u32 %v188_v21, 5  ;;  %v194_v61 = vshrl.u32 %v6046_v9, %v191_v2 }
 0x114   :  { %v197_v34 = vshrl.u32 %v6048_v12, %v191_v2  ;;  %v866_v37 = vsub.s32 0, %v4659_v13  ;;  %v4689_v63 = vshll.u32 %v912_v15, 8  ;;  %v193_v38 = vshll.u32 %v6050_v7, %v190_v6 }
 0x115   :  { %v203_v5 = vshrl.u32 %v4336_v20, %v191_v2  ;;  %v951_v32 = vsel %vm937_vm1, %v948_v11, %v950_v30  ;;  %v196_v62 = vshll.u32 %v6046_v9, %v190_v6  ;;  %v200_v21 = vshrl.u32 %v6052_v14, %v191_v2 }
 0x116   :  { %v202_v41 = vshll.u32 %v6052_v14, %v190_v6  ;;  %v4698_v44 = vshrl.u32 %v757_v8, 30  ;;  %v4701_v45 = vmul.u32.u64.low %v4689_v63, %v947_v4  ;;  %v4702_v52 = vmul.u32.u64.high %v4689_v63, %v947_v4, %v4701_v45 }
 0x117   :  { %v199_v53 = vshll.u32 %v6048_v12, %v190_v6  ;;  %v195_v56 = vor.u32 %v194_v61, %v193_v38  ;;  %v198_v42 = vor.u32 %v197_v34, %v196_v62  ;;  %v206_v26 = vshrl.u32 %v6043_v23, %v191_v2 }
 0x118   :  { %v204_v49 = vor.u32 %v203_v5, %v202_v41  ;;  %v3566_v15 = vmin.u32 %v866_v37, %v4659_v13  ;;  %v4709_v24 = vmul.u32.u64.low %v4689_v63, %v951_v32  ;;  %v4710_v27 = vmul.u32.u64.high %v4689_v63, %v951_v32, %v4709_v24 }
 0x119   :  { %v283_v8 = vand.u32 2139095040, %v4674_v22  ;;  %v4714_v11 = vadd.f32 %v4485_v29, %v161_v57  ;;  %v201_v30 = vor.u32 %v200_v21, %v199_v53  ;;  %v205_v4 = vshll.u32 %v4336_v20, %v190_v6 }
 0x11a   :  { %v224_v17 = vshll.u32 %v184_v43, 8  ;;  %v759_v61 = vshll.u32 %v4698_v44, 30  ;;  %v920_v34 = vshrl.u32 %v6050_v7, %v4606_v0  ;;  %vm208_vm2 = vcmp.lt.s32.totalorder %v4684_v31, 1 }
 0x11b   :  { %vm211_vm3 = vcmp.lt.s32.totalorder %v4684_v31, 4  ;;  %v941_v37 = vsel %vm939_vm14, %v929_v51, 2102212464  ;;  %v207_v38 = vor.u32 %v206_v26, %v205_v4  ;;  %v216_v29 = vsel %vm208_vm2, %v195_v56, %v198_v42 }
 0x11c   :  { %v217_v6 = vsel %vm211_vm3, %v204_v49, 920167782  ;;  %v868_v57 = vclz %v3566_v15  ;;  %v192_v43 = vshrl.u32 %v6050_v7, %v191_v2  ;;  %vm210_vm4 = vcmp.lt.s32.totalorder %v4684_v31, 3 }
 0x11d   :  { %v284_v0 = vshrl.u32 %v283_v8, 23  ;;  %v940_v5 = vsel %vm936_vm15, %v920_v34, %v4638_v46  ;;  %vm209_vm5 = vcmp.lt.s32.totalorder %v4684_v31, 2  ;;  %v213_v51 = vsel %vm211_vm3, %v201_v30, 2102212464 }
 0x11e   :  { %v218_v32 = vsel %vm210_vm4, %v201_v30, %v217_v6  ;;  %v4738_v62 = vsub.s32 %v756_v58, %v759_v61  ;;  %v942_v2 = vsel %vm938_vm0, %v4640_v47, %v941_v37  ;;  %v220_v46 = vsel %vm208_vm2, %v198_v42, %v201_v30 }
 0x11f   :  { %v219_v21 = vsel %vm209_vm5, %v216_v29, %v218_v32  ;;  %v962_v41 = vadd.s32 1, %v4702_v52  ;;  %v221_v53 = vsel %vm211_vm3, %v207_v38, 1326507024  ;;  %vm961_vm6 = vc.u32 %v4710_v27, %v4701_v45 }
 0x120   :  { %v4750_v26 = vmul.u32.u64.low %v224_v17, %v219_v21  ;;  %v4751_v15 = vmul.u32.u64.high %v224_v17, %v219_v21, %v4750_v26  ;;  %v212_v47 = vsel %vm208_vm2, %v192_v43, %v195_v56  ;;  %v214_v58 = vsel %vm210_vm4, %v198_v42, %v213_v51 }
 0x121   :  { %v222_v24 = vsel %vm210_vm4, %v204_v49, %v221_v53  ;;  %v387_v8 = vand.u32 2139095040, %v4668_v28  ;;  %v943_v30 = vsel %vm937_vm1, %v940_v5, %v942_v2  ;;  %v3545_v61 = vadd.s32 4294967169, %v284_v0 }
 0x122   :  { %v223_v4 = vsel %vm209_vm5, %v220_v46, %v222_v24  ;;  %v491_v34 = vand.u32 2139095040, %v4671_v19  ;;  %v3567_v37 = vadd.s32 4294967294, %v868_v57  ;;  %v963_v42 = vsel %vm961_vm6, %v962_v41, %v4702_v52 }
 0x123   :  { %v4768_v38 = vmul.u32.u64.low %v224_v17, %v223_v4  ;;  %v4769_v56 = vmul.u32.u64.high %v224_v17, %v223_v4, %v4768_v38  ;;  %v215_v49 = vsel %vm209_vm5, %v212_v47, %v214_v58  ;;  %v234_v29 = vadd.s32 1, %v4751_v15 }
 0x124   :  { %v290_v6 = vadd.s32 1, %v3545_v61  ;;  %v595_v25 = vand.u32 2139095040, %v4714_v11  ;;  %v762_v43 = vsub.s32 0, %v4738_v62  ;;  %v959_v0 = vmul.u32 %v4689_v63, %v943_v30 }
 0x125   :  { %v388_v5 = vshrl.u32 %v387_v8, 23  ;;  %v231_v51 = vmul.u32 %v224_v17, %v215_v49  ;;  %vm233_vm8 = vc.u32 %v4769_v56, %v4750_v26  ;;  %v492_v52 = vshrl.u32 %v491_v34, 23 }
 0x126   :  { %vm291_vm7 = vcmp.gt.s32.totalorder %v290_v6, 0  ;;  %v4778_v57 = vadd.s32 %v963_v42, %v959_v0  ;;  %vm3568_vm9 = vcmp.lt.s32.totalorder %v3567_v37, 0  ;;  %v235_v31 = vsel %vm233_vm8, %v234_v29, %v4751_v15 }
 0x127   :  { %v292_v32 = vsel %vm291_vm7, %v290_v6, 0  ;;  %v596_v2 = vshrl.u32 %v595_v25, 23  ;;  %v3562_v21 = vmin.u32 %v762_v43, %v4738_v62  ;;  %v236_v46 = vadd.s32 %v235_v31, %v231_v51 }
 0x128   :  { %v294_v41 = vand.u32 31, %v292_v32  ;;  %v4784_v53 = vsel %vm3568_vm9, 0, %v3567_v37  ;;  %v965_v63 = vadd.s32 536870912, %v4778_v57  ;;  %v280_v17 = vand.u32 2147483647, %v4674_v22 }
 0x129   :  { %v237_v47 = vadd.s32 536870912, %v236_v46  ;;  %v3549_v58 = vadd.s32 4294967169, %v388_v5  ;;  %v4788_v24 = vadd.s32 4294967169, %v492_v52  ;;  %v4790_v30 = vadd.s32 4294967169, %v596_v2 }
 0x12a   :  { %v295_v8 = vsub.s32 32, %v294_v41  ;;  %v4794_v15 = vadd.s32 %v4550_v60, %v4547_v59  ;;  %v764_v4 = vclz %v3562_v21  ;;  %v4801_v37 = vadd.s32 %v4590_v48, %v4598_v55 }
 0x12b   :  { %v4796_v61 = vshrl.u32 %v237_v47, 30  ;;  %v4805_v49 = vshrl.u32 %v965_v63, 30  ;;  %v287_v59 = vand.u32 8388607, %v280_v17  ;;  %v297_v60 = vshll.u32 %v6050_v7, %v294_v41 }
 0x12c   :  { %v298_v38 = vshrl.u32 %v6046_v9, %v295_v8  ;;  %v301_v42 = vshrl.u32 %v6048_v12, %v295_v8  ;;  %v300_v25 = vshll.u32 %v6046_v9, %v294_v41  ;;  %v303_v48 = vshll.u32 %v6048_v12, %v294_v41 }
 0x12d   :  { %v239_v29 = vshll.u32 %v4796_v61, 30  ;;  %v304_v55 = vshrl.u32 %v6052_v14, %v295_v8  ;;  %v4815_v43 = vadd.s32 4294967294, %v764_v4  ;;  %v293_v5 = vshrl.u32 %v292_v32, 5 }
 0x12e   :  { %v299_v51 = vor.u32 %v298_v38, %v297_v60  ;;  %v302_v52 = vor.u32 %v301_v42, %v300_v25  ;;  %v306_v2 = vshll.u32 %v6052_v14, %v294_v41  ;;  %v307_v21 = vshrl.u32 %v4336_v20, %v295_v8 }
 0x12f   :  { %v4817_v0 = vsub.s32 %v236_v46, %v239_v29  ;;  %v305_v31 = vor.u32 %v304_v55, %v303_v48  ;;  %v967_v63 = vshll.u32 %v4805_v49, 30  ;;  %v288_v40 = vor.u32 8388608, %v287_v59 }
 0x130   :  { %v394_v54 = vadd.s32 1, %v3549_v58  ;;  %v308_v6 = vor.u32 %v307_v21, %v306_v2  ;;  %v309_v4 = vshll.u32 %v4336_v20, %v294_v41  ;;  %v310_v46 = vshrl.u32 %v6043_v23, %v295_v8 }
 0x131   :  { %v242_v47 = vsub.s32 0, %v4817_v0  ;;  %v6042_v32 = vand.u32 2147483647, %v4668_v28  ;;  %v296_v42 = vshrl.u32 %v6050_v7, %v295_v8  ;;  %vm312_vm10 = vcmp.lt.s32.totalorder %v293_v5, 1 }
 0x132   :  { %vm315_vm11 = vcmp.lt.s32.totalorder %v293_v5, 4  ;;  %v311_v29 = vor.u32 %v310_v46, %v309_v4  ;;  %v320_v25 = vsel %vm312_vm10, %v299_v51, %v302_v52  ;;  %vm314_vm12 = vcmp.lt.s32.totalorder %v293_v5, 3 }
 0x133   :  { %v3542_v38 = vmin.u32 %v242_v47, %v4817_v0  ;;  %v317_v60 = vsel %vm315_vm11, %v305_v31, 2102212464  ;;  %v321_v58 = vsel %vm315_vm11, %v308_v6, 920167782  ;;  %v328_v41 = vshll.u32 %v288_v40, 8 }
 0x134   :  { %vm395_vm13 = vcmp.gt.s32.totalorder %v394_v54, 0  ;;  %vm313_vm14 = vcmp.lt.s32.totalorder %v293_v5, 2  ;;  %v316_v48 = vsel %vm312_vm10, %v296_v42, %v299_v51  ;;  %v318_v55 = vsel %vm314_vm12, %v302_v52, %v317_v60 }
 0x135   :  { %v244_v59 = vclz %v3542_v38  ;;  %v322_v8 = vsel %vm314_vm12, %v305_v31, %v321_v58  ;;  %v324_v47 = vsel %vm312_vm10, %v302_v52, %v305_v31  ;;  %v391_v4 = vand.u32 8388607, %v6042_v32 }
 0x136   :  { %v323_v21 = vsel %vm313_vm14, %v320_v25, %v322_v8  ;;  %v4839_v46 = vsub.s32 %v4778_v57, %v967_v63  ;;  %v325_v40 = vsel %vm315_vm11, %v311_v29, 1326507024  ;;  %v319_v51 = vsel %vm313_vm14, %v316_v48, %v318_v55 }
 0x137   :  { %v3543_v2 = vadd.s32 4294967294, %v244_v59  ;;  %v4842_v38 = vmul.u32.u64.low %v328_v41, %v323_v21  ;;  %v4843_v34 = vmul.u32.u64.high %v328_v41, %v323_v21, %v4842_v38  ;;  %v326_v42 = vsel %vm314_vm12, %v308_v6, %v325_v40 }
 0x138   :  { %v396_v60 = vsel %vm395_vm13, %v394_v54, 0  ;;  %vm178_vm0 = vcmp.lt.s32.totalorder %v4497_v39, 0  ;;  %v232_v52 = vadd.s32 %v4750_v26, %v4769_v56  ;;  %v327_v57 = vsel %vm313_vm14, %v324_v47, %v326_v42 }
 0x139   :  { %vm3544_vm15 = vcmp.lt.s32.totalorder %v3543_v2, 0  ;;  %v398_v63 = vand.u32 31, %v396_v60  ;;  %v262_v58 = vsub.s32 4, %v4796_v61  ;;  %v392_v59 = vor.u32 8388608, %v391_v4 }
 0x13a   :  { %v247_v31 = vsel %vm3544_vm15, 0, %v3543_v2  ;;  %v4853_v8 = vmul.u32.u64.low %v328_v41, %v327_v57  ;;  %v4854_v21 = vmul.u32.u64.high %v328_v41, %v327_v57, %v4853_v8  ;;  %v335_v48 = vmul.u32 %v328_v41, %v319_v51 }
 0x13b   :  { %v248_v29 = vsub.s32 32, %v247_v31  ;;  %v252_v25 = vsub.s32 4294967266, %v247_v31  ;;  %v399_v6 = vsub.s32 32, %v398_v63  ;;  %v249_v54 = vshll.u32 %v4817_v0, %v247_v31 }
 0x13c   :  { %v338_v26 = vadd.s32 1, %v4843_v34  ;;  %v401_v56 = vshll.u32 %v6050_v7, %v398_v63  ;;  %v404_v2 = vshll.u32 %v6046_v9, %v398_v63  ;;  %vm3564_vm1 = vcmp.lt.s32.totalorder %v4815_v43, 0 }
 0x13d   :  { %v250_v55 = vshrl.u32 %v232_v52, %v248_v29  ;;  %v253_v40 = vadd.s32 127, %v252_v25  ;;  %v402_v5 = vshrl.u32 %v6046_v9, %v399_v6  ;;  %v405_v47 = vshrl.u32 %v6048_v12, %v399_v6 }
 0x13e   :  { %v407_v41 = vshll.u32 %v6048_v12, %v398_v63  ;;  %v408_v0 = vshrl.u32 %v6052_v14, %v399_v6  ;;  %vm337_vm2 = vc.u32 %v4854_v21, %v4842_v38  ;;  %v397_v51 = vshrl.u32 %v396_v60, 5 }
 0x13f   :  { %v251_v4 = vor.u32 %v250_v55, %v249_v54  ;;  %v254_v42 = vshll.u32 %v253_v40, 23  ;;  %v403_v52 = vor.u32 %v402_v5, %v401_v56  ;;  %v410_v31 = vshll.u32 %v6052_v14, %v398_v63  ;;  %v4870_v54 = vld [vmem:[#allocation5] sm:$0xff] }
 0x140   :  { %v339_v29 = vsel %vm337_vm2, %v338_v26, %v4843_v34  ;;  %v406_v25 = vor.u32 %v405_v47, %v404_v2  ;;  %v409_v8 = vor.u32 %v408_v0, %v407_v41  ;;  %vm4874_vm3 = vcmp.le.f32.partialorder %v176_v33, 0.7853982  ;;  %1246 = vrot.lane.b32.xlu0 %v4870_v54, %s4328_s21  ;;  %s4339_s21 = smov 24   ;;  %1249 = vrot.lane.b32.xlu1 %v4870_v54, %s4340_s8 }
 0x141   :  { %v255_v57 = vor.u32 4788187, %v254_v42  ;;  %v340_v60 = vadd.s32 %v339_v29, %v335_v48  ;;  %v411_v40 = vshrl.u32 %v4336_v20, %v399_v6  ;;  %v413_v56 = vshll.u32 %v4336_v20, %v398_v63 }
 0x142   :  { %v414_v34 = vshrl.u32 %v6043_v23, %v399_v6  ;;  %v258_v5 = vcvt.s32.f32 %v251_v4  ;;  %v263_v2 = vsel %vm178_vm0, %v262_v58, %v4796_v61  ;;  %v432_v33 = vshll.u32 %v392_v59, 8 }
 0x143   :  { %v256_v26 = vand.u32 2147483647, %v255_v57  ;;  %v341_v47 = vadd.s32 536870912, %v340_v60  ;;  %v412_v42 = vor.u32 %v411_v40, %v410_v31  ;;  %vm416_vm4 = vcmp.lt.s32.totalorder %v397_v51, 1 }
 0x144   :  { %v415_v41 = vor.u32 %v414_v34, %v413_v56  ;;  %vm417_vm5 = vcmp.lt.s32.totalorder %v397_v51, 2  ;;  %vm419_vm6 = vcmp.lt.s32.totalorder %v397_v51, 4  ;;  %v424_v63 = vsel %vm416_vm4, %v403_v52, %v406_v25  ;;  %1252 = vrot.lane.b32.xlu0 %v4870_v54, %s4339_s21 }
 0x145   :  { %v259_v48 = vmul.f32 %v258_v5, %v256_v26  ;;  %v342_v0 = vshrl.u32 %v341_v47, 30  ;;  %vm418_vm7 = vcmp.lt.s32.totalorder %v397_v51, 3  ;;  %v425_v29 = vsel %vm419_vm6, %v412_v42, 920167782 }
 0x146   :  { %v428_v57 = vsel %vm416_vm4, %v406_v25, %v409_v8  ;;  %v421_v32 = vsel %vm419_vm6, %v409_v8, 2102212464  ;;  %v426_v23 = vsel %vm418_vm7, %v409_v8, %v425_v29  ;;  %v429_v61 = vsel %vm419_vm6, %v415_v41, 1326507024 }
 0x147   :  { %v260_v4 = vxor.u32 2147483648, %v259_v48  ;;  %vm282_vm8 = vcmp.lt.s32.totalorder %v4674_v22, 0  ;;  %v343_v58 = vshll.u32 %v342_v0, 30  ;;  %v400_v59 = vshrl.u32 %v6050_v7, %v399_v6 }
 0x148   :  { %v427_v31 = vsel %vm417_vm5, %v424_v63, %v426_v23  ;;  %v430_v40 = vsel %vm418_vm7, %v412_v42, %v429_v61  ;;  %v4903_v8 = vsel %vm3564_vm1, 0, %v4815_v43  ;;  %v422_v6 = vsel %vm418_vm7, %v406_v25, %v421_v32 }
 0x149   :  { %v261_v56 = vsel %vm178_vm0, %v260_v4, %v259_v48  ;;  %v431_v34 = vsel %vm417_vm5, %v428_v57, %v430_v40  ;;  %v4896_v26 = vmul.u32.u64.low %v432_v33, %v427_v31  ;;  %v4897_v5 = vmul.u32.u64.high %v432_v33, %v427_v31, %v4896_v26 }
 0x14a   :  { %v4905_v47 = vsub.s32 %v340_v60, %v343_v58  ;;  %v420_v23 = vsel %vm416_vm4, %v400_v59, %v403_v52  ;;  %v970_v42 = vsub.s32 0, %v4839_v46  ;;  %v264_v41 = vsel %vm4874_vm3, %v4497_v39, %v261_v56 }
 0x14b   :  { %vm4915_vm9 = vcmp.le.f32.partialorder %v280_v17, 0.7853982  ;;  %v4919_v43 = vmul.u32.u64.low %v432_v33, %v431_v34  ;;  %v4920_v63 = vmul.u32.u64.high %v432_v33, %v431_v34, %v4919_v43  ;;  %v873_v52 = vshll.u32 %v4659_v13, %v4784_v53 }
 0x14c   :  { %v6064_v32 = vsub.s32 32, %v4784_v53  ;;  %v265_v60 = vsel %vm4874_vm3, 0, %v263_v2  ;;  %v346_v29 = vsub.s32 0, %v4905_v47  ;;  %v366_v57 = vsub.s32 4, %v342_v0 }
 0x14d   :  { %v423_v17 = vsel %vm417_vm5, %v420_v23, %v422_v6  ;;  %v442_v4 = vadd.s32 1, %v4897_v5  ;;  %v498_v61 = vadd.s32 1, %v4788_v24  ;;  %v6065_v58 = vsub.s32 4294967266, %v4784_v53 }
 0x14e   :  { %v874_v25 = vshrl.u32 %v4794_v15, %v6064_v32  ;;  %v772_v13 = vsub.s32 4294967266, %v4903_v8  ;;  %4085 = vcosq.f32 %v264_v41  ;;  %v3546_v15 = vmin.u32 %v346_v29, %v4905_v47 }
 0x14f   :  { %v4935_v59 = vadd.s32 127, %v6065_v58  ;;  %v3570_v55 = vmin.u32 %v970_v42, %v4839_v46  ;;  %4087 = vsinq.f32 %v264_v41  ;;  %vm441_vm10 = vc.u32 %v4920_v63, %v4896_v26 }
 0x150   :  { %vm499_vm11 = vcmp.gt.s32.totalorder %v498_v61, 0  ;;  %v4942_v51 = vor.u32 %v874_v25, %v873_v52  ;;  %v269_v2 = vadd.s32 3, %v265_v60  ;;  %v348_v24 = vclz %v3546_v15 }
 0x151   :  { %v439_v31 = vmul.u32 %v432_v33, %v423_v17  ;;  %v367_v53 = vsel %vm282_vm8, %v366_v57, %v342_v0  ;;  %v443_v40 = vsel %vm441_vm10, %v442_v4, %v4897_v5  ;;  %v6045_v56 = vand.u32 2147483647, %v4671_v19 }
 0x152   :  { %v500_v34 = vsel %vm499_vm11, %v498_v61, 0  ;;  %v768_v23 = vsub.s32 32, %v4903_v8  ;;  %v3547_v6 = vadd.s32 4294967294, %v348_v24  ;;  %v4950_v52 = vadd.s32 127, %v772_v13 }
 0x153   :  { %v444_v42 = vadd.s32 %v443_v40, %v439_v31  ;;  %v502_v41 = vand.u32 31, %v500_v34  ;;  %v4954_v33 = vadd.s32 %v4701_v45, %v4710_v27  ;;  %v972_v32 = vclz %v3570_v55 }
 0x154   :  { %v4956_v0 = vand.u32 3, %v269_v2  ;;  %vm3548_vm12 = vcmp.lt.s32.totalorder %v3547_v6, 0  ;;  %v369_v5 = vsel %vm4915_vm9, 0, %v367_v53  ;;  %v495_v57 = vand.u32 8388607, %v6045_v56 }
 0x155   :  { %v445_v25 = vadd.s32 536870912, %v444_v42  ;;  %v351_v29 = vsel %vm3548_vm12, 0, %v3547_v6  ;;  %v503_v17 = vsub.s32 32, %v502_v41  ;;  %v4965_v4 = vshrl.u32 %v4801_v37, %v768_v23 }
 0x156   :  { %v336_v45 = vadd.s32 %v4842_v38, %v4854_v21  ;;  %v352_v27 = vsub.s32 32, %v351_v29  ;;  %v356_v61 = vsub.s32 4294967266, %v351_v29  ;;  %v4970_v13 = vadd.s32 4294967294, %v972_v32 }
 0x157   :  { %v4972_v15 = vadd.s32 3, %v369_v5  ;;  %v4974_v55 = vshrl.u32 %v445_v25, 30  ;;  %vm272_vm13 = vcmp.eq.s32.totalorder %v4956_v0, 0  ;;  %vm275_vm14 = vcmp.eq.s32.totalorder %v4956_v0, 2 }
 0x158   :  { %v4086_v2 = vpop.eup %4085  ;;  %v353_v37 = vshll.u32 %v4905_v47, %v351_v29  ;;  %v354_v24 = vshrl.u32 %v336_v45, %v352_v27  ;;  %v357_v31 = vadd.s32 127, %v356_v61  ;;  %v4981_v38 = vadd.s32 %v4896_v26, %v4920_v63 }
 0x159   :  { %v4088_v21 = vpop.eup %4087  ;;  %v447_v53 = vshll.u32 %v4974_v55, 30  ;;  %v496_v40 = vor.u32 8388608, %v495_v57  ;;  %v506_v23 = vshrl.u32 %v6046_v9, %v503_v17  ;;  %v509_v6 = vshrl.u32 %v6048_v12, %v503_v17 }
 0x15a   :  { %v355_v32 = vor.u32 %v354_v24, %v353_v37  ;;  %v358_v5 = vshll.u32 %v357_v31, 23  ;;  %v4986_v25 = vshrl.u32 %v500_v34, 5  ;;  %v505_v47 = vshll.u32 %v6050_v7, %v502_v41 }
 0x15b   :  { %v4989_v29 = vsub.s32 %v444_v42, %v447_v53  ;;  %v508_v45 = vshll.u32 %v6046_v9, %v502_v41  ;;  %v511_v26 = vshll.u32 %v6048_v12, %v502_v41  ;;  %v512_v63 = vshrl.u32 %v6052_v14, %v503_v17 }
 0x15c   :  { %v273_v27 = vxor.u32 2147483648, %v4088_v21  ;;  %v276_v57 = vxor.u32 2147483648, %v4086_v2  ;;  %v359_v61 = vor.u32 4788187, %v358_v5  ;;  %v514_v56 = vshll.u32 %v6052_v14, %v502_v41 }
 0x15d   :  { %v450_v37 = vsub.s32 0, %v4989_v29  ;;  %v507_v24 = vor.u32 %v506_v23, %v505_v47  ;;  %v510_v34 = vor.u32 %v509_v6, %v508_v45  ;;  %v515_v31 = vshrl.u32 %v4336_v20, %v503_v17 }
 0x15e   :  { %v360_v60 = vand.u32 2147483647, %v359_v61  ;;  %v362_v42 = vcvt.s32.f32 %v355_v32  ;;  %v517_v53 = vshll.u32 %v4336_v20, %v502_v41  ;;  %v6066_v43 = vmov 1326507024  }
 0x15f   :  { %v518_v9 = vshrl.u32 %v6066_v43, %v503_v17  ;;  %v3550_v12 = vmin.u32 %v450_v37, %v4989_v29  ;;  %v513_v58 = vor.u32 %v512_v63, %v511_v26  ;;  %v516_v7 = vor.u32 %v515_v31, %v514_v56 }
 0x160   :  { %v5000_v10 = vshll.u32 %v496_v40, 8  ;;  %v363_v5 = vmul.f32 %v362_v42, %v360_v60  ;;  %v6067_v14 = vmov 683565275   ;;  %v602_v23 = vadd.s32 1, %v4790_v30 }
 0x161   :  { %v504_v16 = vshrl.u32 %v6067_v14, %v503_v17  ;;  %v519_v3 = vor.u32 %v518_v9, %v517_v53  ;;  %vm271_vm15 = vcmp.lt.s32.totalorder %v4956_v0, 2  ;;  %v274_v6 = vsel %vm272_vm13, %v4086_v2, %v273_v27 }
 0x162   :  { %v277_v41 = vsel %vm275_vm14, %v276_v57, %v4088_v21  ;;  %v452_v32 = vclz %v3550_v12  ;;  %vm520_vm0 = vcmp.lt.s32.totalorder %v4986_v25, 1  ;;  %v364_v56 = vxor.u32 2147483648, %v363_v5 }
 0x163   :  { %vm521_vm1 = vcmp.lt.s32.totalorder %v4986_v25, 2  ;;  %vm523_vm2 = vcmp.lt.s32.totalorder %v4986_v25, 4  ;;  %v528_v9 = vsel %vm520_vm0, %v507_v24, %v510_v34  ;;  %vm522_vm3 = vcmp.lt.s32.totalorder %v4986_v25, 3 }
 0x164   :  { %v3551_v30 = vadd.s32 4294967294, %v452_v32  ;;  %v529_v60 = vsel %vm523_vm2, %v516_v7, 920167782  ;;  %v532_v17 = vsel %vm520_vm0, %v510_v34, %v513_v58  ;;  %vm268_vm4 = vweird.f32 %v4497_v39 }
 0x165   :  { %v365_v12 = vsel %vm282_vm8, %v364_v56, %v363_v5  ;;  %v525_v2 = vsel %vm523_vm2, %v513_v58, 2102212464  ;;  %v530_v21 = vsel %vm522_vm3, %v513_v58, %v529_v60  ;;  %v533_v40 = vsel %vm523_vm2, %v519_v3, 1326507024 }
 0x166   :  { %v368_v47 = vsel %vm4915_vm9, %v4674_v22, %v365_v12  ;;  %vm3552_vm5 = vcmp.lt.s32.totalorder %v3551_v30, 0  ;;  %v531_v45 = vsel %vm521_vm1, %v528_v9, %v530_v21  ;;  %v534_v26 = vsel %vm522_vm3, %v516_v7, %v533_v40 }
 0x167   :  { %4089 = vcosq.f32 %v368_v47  ;;  %v455_v63 = vsel %vm3552_vm5, 0, %v3551_v30  ;;  %v524_v27 = vsel %vm520_vm0, %v504_v16, %v507_v24  ;;  %v535_v58 = vsel %vm521_vm1, %v532_v17, %v534_v26 }
 0x168   :  { %4091 = vsinq.f32 %v368_v47  ;;  %v456_v3 = vsub.s32 32, %v455_v63  ;;  %v460_v57 = vsub.s32 4294967266, %v455_v63  ;;  %v526_v48 = vsel %vm522_vm3, %v510_v34, %v525_v2 }
 0x169   :  { %v5036_v61 = vmul.u32.u64.low %v5000_v10, %v535_v58  ;;  %v5037_v37 = vmul.u32.u64.high %v5000_v10, %v535_v58, %v5036_v61  ;;  %v5040_v7 = vmul.u32.u64.low %v5000_v10, %v531_v45  ;;  %v5041_v31 = vmul.u32.u64.high %v5000_v10, %v531_v45, %v5040_v7 }
 0x16a   :  { %v374_v16 = vand.u32 3, %v4972_v15  ;;  %v458_v24 = vshrl.u32 %v4981_v38, %v456_v3  ;;  %v461_v42 = vadd.s32 127, %v460_v57  ;;  %vm603_vm6 = vcmp.gt.s32.totalorder %v602_v23, 0 }
 0x16b   :  { %v278_v53 = vsel %vm271_vm15, %v274_v6, %v277_v41  ;;  %v457_v34 = vshll.u32 %v4989_v29, %v455_v63  ;;  %v527_v5 = vsel %vm521_vm1, %v524_v27, %v526_v48  ;;  %v604_v32 = vsel %vm603_vm6, %v602_v23, 0 }
 0x16c   :  { %vm3572_vm7 = vcmp.lt.s32.totalorder %v4970_v13, 0  ;;  %v462_v56 = vshll.u32 %v461_v42, 23  ;;  %v592_v9 = vand.u32 2147483647, %v4714_v11  ;;  %v606_v30 = vand.u32 31, %v604_v32 }
 0x16d   :  { %v6068_v15 = vshll.u32 %v4950_v52, 23  ;;  %v459_v60 = vor.u32 %v458_v24, %v457_v34  ;;  %vm545_vm8 = vc.u32 %v5037_v37, %v5040_v7  ;;  %v546_v0 = vadd.s32 1, %v5041_v31 }
 0x16e   :  { %v279_v25 = vsel %vm268_vm4, nan, %v278_v53  ;;  %v463_v29 = vor.u32 4788187, %v462_v56  ;;  %v543_v23 = vmul.u32 %v5000_v10, %v527_v5  ;;  %v607_v6 = vsub.s32 32, %v606_v30 }
 0x16f   :  { %v5055_v38 = vor.u32 4788187, %v6068_v15  ;;  %v5064_v41 = vsel %vm3572_vm7, 0, %v4970_v13  ;;  %vm372_vm9 = vweird.f32 %v4674_v22  ;;  %vm375_vm10 = vcmp.lt.s32.totalorder %v374_v16, 2 }
 0x170   :  { %v547_v52 = vsel %vm545_vm8, %v546_v0, %v5041_v31  ;;  %vm376_vm11 = vcmp.eq.s32.totalorder %v374_v16, 0  ;;  %vm379_vm12 = vcmp.eq.s32.totalorder %v374_v16, 2  ;;  %v599_v12 = vand.u32 8388607, %v592_v9 }
 0x171   :  { %v548_v17 = vadd.s32 %v547_v52, %v543_v23  ;;  %v4090_v2 = vpop.eup %4089  ;;  %v1008_v21 = vadd.f32 %v279_v25, %v4497_v39  ;;  %vm1043_vm13 = vcmask 261120   ;;  %v464_v10 = vand.u32 2147483647, %v463_v29 }
 0x172   :  { %v466_v40 = vcvt.s32.f32 %v459_v60  ;;  %v5071_v47 = vshrl.u32 %v604_v32, 5  ;;  %v4092_v13 = vpop.eup %4091  ;;  %v380_v45 = vxor.u32 2147483648, %v4090_v2  ;;  %v609_v63 = vshll.u32 %v6067_v14, %v606_v30 }
 0x173   :  { %v549_v26 = vadd.s32 536870912, %v548_v17  ;;  %v6069_v27 = vmov 2475754826   ;;  %v377_v3 = vxor.u32 2147483648, %v4092_v13  ;;  %v6070_v57 = vmov 2131351028  }
 0x174   :  { %v610_v58 = vshrl.u32 %v6069_v27, %v607_v6  ;;  %v613_v48 = vshrl.u32 %v6070_v57, %v607_v6  ;;  %v6071_v61 = vmov 2102212464   ;;  %v619_v24 = vshrl.u32 %v4336_v20, %v607_v6 }
 0x175   :  { %v616_v31 = vshrl.u32 %v6071_v61, %v607_v6  ;;  %v381_v39 = vsel %vm379_vm12, %v380_v45, %v4092_v13  ;;  %v5079_v42 = vshrl.u32 %v549_v26, 30  ;;  %v612_v53 = vshll.u32 %v6069_v27, %v606_v30 }
 0x176   :  { %v622_v34 = vshrl.u32 %v6066_v43, %v607_v6  ;;  %v378_v5 = vsel %vm376_vm11, %v4090_v2, %v377_v3  ;;  %v467_v32 = vmul.f32 %v466_v40, %v464_v10  ;;  %v615_v56 = vshll.u32 %v6070_v57, %v606_v30 }
 0x177   :  { %v618_v15 = vshll.u32 %v6071_v61, %v606_v30  ;;  %v382_v60 = vsel %vm375_vm10, %v378_v5, %v381_v39  ;;  %v551_v0 = vshll.u32 %v5079_v42, 30  ;;  %v611_v25 = vor.u32 %v610_v58, %v609_v63  ;;  %v1016_v39 = vld [vmem:[#allocation7] sm:$0xff] }
 0x178   :  { %v621_v29 = vshll.u32 %v4336_v20, %v606_v30  ;;  %v383_v23 = vsel %vm372_vm9, nan, %v382_v60  ;;  %v614_v52 = vor.u32 %v613_v48, %v612_v53  ;;  %v617_v13 = vor.u32 %v616_v31, %v615_v56  ;;  %v1017_v53 = vld [vmem:[#allocation7 + $0x8] sm:$0xff]  ;;  %v1018_v60 = vld [vmem:[#allocation7 + $0x10] sm:$0xff] }
 0x179   :  { %v620_v43 = vor.u32 %v619_v24, %v618_v15  ;;  %v980_v2 = vsub.s32 4294967266, %v5064_v41  ;;  %v1009_v10 = vadd.f32 %v383_v23, %v4674_v22  ;;  %v5093_v40 = vsub.s32 %v548_v17, %v551_v0  ;;  %v1019_v0 = vld [vmem:[#allocation7 + $0x18] sm:$0xff] }
 0x17a   :  { %v623_v45 = vor.u32 %v622_v34, %v621_v29  ;;  %v468_v16 = vxor.u32 2147483648, %v467_v32  ;;  %v600_v26 = vor.u32 8388608, %v599_v12  ;;  %v608_v27 = vshrl.u32 %v6067_v14, %v607_v6 }
 0x17b   :  { %vm624_vm14 = vcmp.lt.s32.totalorder %v5071_v47, 1  ;;  %v1121_v20 = vpack.c.bf16 %v1009_v10, %v1008_v21  ;;  %v554_v30 = vsub.s32 0, %v5093_v40  ;;  %vm625_vm15 = vcmp.lt.s32.totalorder %v5071_v47, 2 }
 0x17c   :  { %vm627_vm0 = vcmp.lt.s32.totalorder %v5071_v47, 4  ;;  %vm626_vm1 = vcmp.lt.s32.totalorder %v5071_v47, 3  ;;  %v632_v22 = vsel %vm624_vm14, %v611_v25, %v614_v52  ;;  %v636_v12 = vsel %vm624_vm14, %v614_v52, %v617_v13 }
 0x17d   :  { %v629_v63 = vsel %vm627_vm0, %v617_v13, 2102212464  ;;  %v633_v17 = vsel %vm627_vm0, %v620_v43, 920167782  ;;  %3747 = vmatprep.mubr.msk.bf16.mxu1 %vm1043_vm13, %v1121_v20  ;;  %v3554_v14 = vmin.u32 %v554_v30, %v5093_v40  ;;  %v637_v21 = vsel %vm627_vm0, %v623_v45, 1326507024 }
 0x17e   :  { %v634_v6 = vsel %vm626_vm1, %v617_v13, %v633_v17  ;;  %vm386_vm2 = vcmp.lt.s32.totalorder %v4668_v28, 0  ;;  %v638_v3 = vsel %vm626_vm1, %v620_v43, %v637_v21  ;;  %v640_v57 = vshll.u32 %v600_v26, 8 }
 0x17f   :  { %v635_v58 = vsel %vm625_vm15, %v632_v22, %v634_v6  ;;  %v981_v48 = vadd.s32 127, %v980_v2  ;;  %v469_v61 = vsel %vm386_vm2, %v468_v16, %v467_v32  ;;  %v556_v31 = vclz %v3554_v14 }
 0x180   :  { %v628_v24 = vsel %vm624_vm14, %v608_v27, %v611_v25  ;;  %v630_v34 = vsel %vm626_vm1, %v614_v52, %v629_v63  ;;  %v639_v5 = vsel %vm625_vm15, %v636_v12, %v638_v3  ;;  %v976_v32 = vsub.s32 32, %v5064_v41 }
 0x181   :  { %v5122_v56 = vmul.u32.u64.low %v640_v57, %v635_v58  ;;  %v5123_v15 = vmul.u32.u64.high %v640_v57, %v635_v58, %v5122_v56  ;;  %v3555_v29 = vadd.s32 4294967294, %v556_v31  ;;  %v6072_v25 = vshll.u32 %v4935_v59, 23 }
 0x182   :  { %v5127_v23 = vmul.u32.u64.low %v640_v57, %v639_v5  ;;  %v5128_v13 = vmul.u32.u64.high %v640_v57, %v639_v5, %v5127_v23  ;;  %v6073_v52 = vshll.u32 %v4738_v62, %v4903_v8  ;;  %v6074_v10 = vand.u32 2147483647, %v4668_v28 }
 0x183   :  { %v879_v43 = vor.u32 4788187, %v6072_v25  ;;  %v1024_v16 = vpack.c.bf16 %v1017_v53, %v1016_v39  ;;  %vm3556_vm4 = vcmp.lt.s32.totalorder %v3555_v29, 0  ;;  %v631_v59 = vsel %vm625_vm15, %v628_v24, %v630_v34 }
 0x184   :  { %v771_v2 = vor.u32 %v4965_v4, %v6073_v52  ;;  %vm5138_vm3 = vcmp.le.f32.partialorder %v6074_v10, 0.7853982  ;;  %v1025_v27 = vpack.c.bf16 %v1019_v0, %v1018_v60  ;;  %v776_v62 = vand.u32 2147483647, %v5055_v38 }
 0x185   :  { %v472_v26 = vsel %vm5138_vm3, %v4668_v28, %v469_v61  ;;  %v982_v8 = vshll.u32 %v981_v48, 23  ;;  %v559_v4 = vsel %vm3556_vm4, 0, %v3555_v29  ;;  %v650_v20 = vadd.s32 1, %v5123_v15  ;;  %3735 = vmatprep.mubr.msk.bf16.mxu0 %vm1043_vm13, %v1024_v16 }
 0x186   :  { %v978_v30 = vshrl.u32 %v4954_v33, %v976_v32  ;;  %v544_v63 = vadd.s32 %v5040_v7, %v5037_v37  ;;  %v560_v22 = vsub.s32 32, %v559_v4  ;;  %v564_v17 = vsub.s32 4294967266, %v559_v4  ;;  %3736 = vmatmul.mubr.msk.bf16.vlgmr.msra.gmra.mrb[0].mxu0 %vm1043_vm13, %v1025_v27 }
 0x187   :  { %v470_v47 = vsub.s32 4, %v4974_v55  ;;  %4093 = vcosq.f32 %v472_v26  ;;  %v647_v14 = vmul.u32 %v640_v57, %v631_v59  ;;  %vm649_vm5 = vc.u32 %v5128_v13, %v5122_v56  ;;  %v1021_v59 = vld [vmem:[#allocation7 + $0x28] sm:$0xff] }
 0x188   :  { %v561_v38 = vshll.u32 %v5093_v40, %v559_v4  ;;  %v562_v6 = vshrl.u32 %v544_v63, %v560_v22  ;;  %v565_v12 = vadd.s32 127, %v564_v17  ;;  %v651_v33 = vsel %vm649_vm5, %v650_v20, %v5123_v15 }
 0x189   :  { %v977_v37 = vshll.u32 %v4839_v46, %v5064_v41  ;;  %v983_v7 = vor.u32 4788187, %v982_v8  ;;  %4095 = vsinq.f32 %v472_v26  ;;  %v652_v21 = vadd.s32 %v651_v33, %v647_v14  ;;  %v1020_v26 = vld [vmem:[#allocation7 + $0x20] sm:$0xff] }
 0x18a   :  { %v778_v58 = vcvt.s32.f32 %v771_v2  ;;  %v563_v3 = vor.u32 %v562_v6, %v561_v38  ;;  %v566_v48 = vshll.u32 %v565_v12, 23  ;;  %v880_v61 = vand.u32 2147483647, %v879_v43  ;;  %v1022_v6 = vld [vmem:[#allocation7 + $0x30] sm:$0xff]  ;;  %v1023_v12 = vld [vmem:[#allocation7 + $0x38] sm:$0xff] }
 0x18b   :  { %v979_v57 = vor.u32 %v978_v30, %v977_v37  ;;  %v471_v31 = vsel %vm386_vm2, %v470_v47, %v4974_v55  ;;  %v653_v40 = vadd.s32 536870912, %v652_v21  ;;  %v882_v53 = vcvt.s32.f32 %v4942_v51 }
 0x18c   :  { %v779_v24 = vmul.f32 %v778_v58, %v776_v62  ;;  %v567_v39 = vor.u32 4788187, %v566_v48  ;;  %v984_v34 = vand.u32 2147483647, %v983_v7  ;;  %v473_v46 = vsel %vm5138_vm3, 0, %v471_v31 }
 0x18d   :  { %v5165_v5 = vshrl.u32 %v653_v40, 30  ;;  %v570_v15 = vcvt.s32.f32 %v563_v3  ;;  %v883_v60 = vmul.f32 %v882_v53, %v880_v61  ;;  %v986_v0 = vcvt.s32.f32 %v979_v57 }
 0x18e   :  { %v568_v41 = vand.u32 2147483647, %v567_v39  ;;  %v780_v29 = vxor.u32 2147483648, %v779_v24  ;;  %v574_v55 = vsub.s32 4, %v5079_v42  ;;  %v477_v52 = vadd.s32 3, %v473_v46 }
 0x18f   :  { %v655_v32 = vshll.u32 %v5165_v5, 30  ;;  %v987_v43 = vmul.f32 %v986_v0, %v984_v34  ;;  %vm802_vm6 = vcmp.lt.s32.totalorder %v4491_v35, 0  ;;  %v884_v45 = vxor.u32 2147483648, %v883_v60 }
 0x190   :  { %v571_v23 = vmul.f32 %v570_v15, %v568_v41  ;;  %vm698_vm7 = vcmp.lt.s32.totalorder %v4494_v36, 0  ;;  %vm490_vm8 = vcmp.lt.s32.totalorder %v4671_v19, 0  ;;  %v6077_v62 = vand.u32 2147483647, %v4671_v19 }
 0x191   :  { %v4094_v25 = vpop.eup %4093  ;;  %v5171_v51 = vsub.s32 %v652_v21, %v655_v32  ;;  %v781_v27 = vsel %vm698_vm7, %v780_v29, %v779_v24  ;;  %v575_v20 = vsel %vm490_vm8, %v574_v55, %v5079_v42  ;;  %v988_v30 = vxor.u32 2147483648, %v987_v43 }
 0x192   :  { %v572_v2 = vxor.u32 2147483648, %v571_v23  ;;  %vm5181_vm9 = vcmp.le.f32.partialorder %v6077_v62, 0.7853982  ;;  %v478_v63 = vand.u32 3, %v477_v52  ;;  %v484_v14 = vxor.u32 2147483648, %v4094_v25 }
 0x193   :  { %v4096_v10 = vpop.eup %4095  ;;  %v658_v16 = vsub.s32 0, %v5171_v51  ;;  %v1026_v38 = vpack.c.bf16 %v1021_v59, %v1020_v26  ;;  %v577_v33 = vsel %vm5181_vm9, 0, %v575_v20  ;;  %v6080_v42 = vand.u32 2147483647, %v4494_v36 }
 0x194   :  { %v573_v4 = vsel %vm490_vm8, %v572_v2, %v571_v23  ;;  %v481_v47 = vxor.u32 2147483648, %v4096_v10  ;;  %v885_v21 = vsel %vm802_vm6, %v884_v45, %v883_v60  ;;  %vm906_vm11 = vcmp.lt.s32.totalorder %v4507_v50, 0 }
 0x195   :  { %v576_v22 = vsel %vm5181_vm9, %v4671_v19, %v573_v4  ;;  %v3558_v17 = vmin.u32 %v658_v16, %v5171_v51  ;;  %vm5194_vm10 = vcmp.le.f32.partialorder %v6080_v42, 0.7853982  ;;  %3739 = vmatprep.mubr.msk.bf16.mxu0 %vm1043_vm13, %v1026_v38  ;;  %vm480_vm12 = vcmp.eq.s32.totalorder %v478_v63, 0 }
 0x196   :  { %4097 = vcosq.f32 %v576_v22  ;;  %v784_v58 = vsel %vm5194_vm10, %v4494_v36, %v781_v27  ;;  %vm483_vm14 = vcmp.eq.s32.totalorder %v478_v63, 2  ;;  %v1027_v48 = vpack.c.bf16 %v1023_v12, %v1022_v6 }
 0x197   :  { %4099 = vsinq.f32 %v576_v22  ;;  %v660_v37 = vclz %v3558_v17  ;;  %v989_v61 = vsel %vm906_vm11, %v988_v30, %v987_v43  ;;  %v482_v57 = vsel %vm480_vm12, %v4094_v25, %v481_v47 }
 0x198   :  { %v485_v31 = vsel %vm483_vm14, %v484_v14, %v4096_v10  ;;  %v581_v40 = vadd.s32 3, %v577_v33  ;;  %vm479_vm15 = vcmp.lt.s32.totalorder %v478_v63, 2  ;;  %v782_v24 = vsub.s32 4, %v4698_v44  ;;  %3740 = vmatmul.mubr.msk.bf16.gmra.mrb[4].mxu0 %vm1043_vm13, %v1027_v48 }
 0x199   :  { %v3559_v3 = vadd.s32 4294967294, %v660_v37  ;;  %4101 = vcosq.f32 %v784_v58  ;;  %v648_v39 = vadd.s32 %v5122_v56, %v5128_v13  ;;  %v6083_v34 = vand.u32 2147483647, %v4491_v35 }
 0x19a   :  { %v6086_v41 = vand.u32 2147483647, %v4507_v50  ;;  %v486_v60 = vsel %vm479_vm15, %v482_v57, %v485_v31  ;;  %vm476_vm3 = vweird.f32 %v4668_v28  ;;  %v582_v13 = vand.u32 3, %v581_v40 }
 0x19b   :  { %vm3560_vm0 = vcmp.lt.s32.totalorder %v3559_v3, 0  ;;  %vm5213_vm1 = vcmp.le.f32.partialorder %v6083_v34, 0.7853982  ;;  %4103 = vsinq.f32 %v784_v58  ;;  %v990_v43 = vsub.s32 4, %v4805_v49 }
 0x19c   :  { %v663_v53 = vsel %vm3560_vm0, 0, %v3559_v3  ;;  %vm5219_vm2 = vcmp.le.f32.partialorder %v6086_v41, 0.7853982  ;;  %v888_v29 = vsel %vm5213_vm1, %v4491_v35, %v885_v21  ;;  %v487_v2 = vsel %vm476_vm3, nan, %v486_v60 }
 0x19d   :  { %v664_v0 = vsub.s32 32, %v663_v53  ;;  %v668_v32 = vsub.s32 4294967266, %v663_v53  ;;  %v992_v56 = vsel %vm5219_vm2, %v4507_v50, %v989_v61  ;;  %v665_v23 = vshll.u32 %v5171_v51, %v663_v53 }
 0x19e   :  { %v783_v10 = vsel %vm698_vm7, %v782_v24, %v4698_v44  ;;  %v886_v45 = vsub.s32 4, %v4609_v18  ;;  %4105 = vcosq.f32 %v992_v56  ;;  %vm584_vm4 = vcmp.eq.s32.totalorder %v582_v13, 0 }
 0x19f   :  { %v666_v55 = vshrl.u32 %v648_v39, %v664_v0  ;;  %v669_v25 = vadd.s32 127, %v668_v32  ;;  %4107 = vsinq.f32 %v992_v56  ;;  %vm587_vm5 = vcmp.eq.s32.totalorder %v582_v13, 2 }
 0x1a0   :  { %v4098_v52 = vpop.eup %4097  ;;  %4109 = vcosq.f32 %v888_v29  ;;  %v991_v4 = vsel %vm906_vm11, %v990_v43, %v4805_v49  ;;  %vm580_vm7 = vweird.f32 %v4671_v19  ;;  %vm583_vm8 = vcmp.lt.s32.totalorder %v582_v13, 2 }
 0x1a1   :  { %v4100_v16 = vpop.eup %4099  ;;  %v588_v26 = vxor.u32 2147483648, %v4098_v52  ;;  %v667_v59 = vor.u32 %v666_v55, %v665_v23  ;;  %v670_v27 = vshll.u32 %v669_v25, 23  ;;  %4111 = vsinq.f32 %v888_v29 }
 0x1a2   :  { %v585_v51 = vxor.u32 2147483648, %v4100_v16  ;;  %v1010_v20 = vadd.f32 %v487_v2, %v4668_v28  ;;  %v887_v47 = vsel %vm802_vm6, %v886_v45, %v4609_v18  ;;  %v785_v38 = vsel %vm5194_vm10, 0, %v783_v10 }
 0x1a3   :  { %v589_v62 = vsel %vm587_vm5, %v588_v26, %v4100_v16  ;;  %v671_v8 = vor.u32 4788187, %v670_v27  ;;  %v4102_v30 = vpop.eup %4101  ;;  %v674_v17 = vcvt.s32.f32 %v667_v59  ;;  %v993_v49 = vsel %vm5219_vm2, 0, %v991_v4 }
 0x1a4   :  { %v586_v44 = vsel %vm584_vm4, %v4098_v52, %v585_v51  ;;  %v678_v28 = vsub.s32 4, %v5165_v5  ;;  %v889_v37 = vsel %vm5213_vm1, 0, %v887_v47  ;;  %v789_v58 = vadd.s32 3, %v785_v38 }
 0x1a5   :  { %v590_v63 = vsel %vm583_vm8, %v586_v44, %v589_v62  ;;  %v672_v22 = vand.u32 2147483647, %v671_v8  ;;  %v4104_v33 = vpop.eup %4103  ;;  %v997_v18 = vadd.s32 3, %v993_v49  ;;  %vm594_vm6 = vcmp.lt.s32.totalorder %v4714_v11, 0 }
 0x1a6   :  { %v591_v14 = vsel %vm580_vm7, nan, %v590_v63  ;;  %vm5256_vm9 = vcmp.le.f32.partialorder %v592_v9, 0.7853982  ;;  %v679_v61 = vsel %vm594_vm6, %v678_v28, %v5165_v5  ;;  %v893_v57 = vadd.s32 3, %v889_v37  ;;  %v5296_v28 = vld [vmem:[#allocation10] sm:$0xff]  ;;  %v5300_v37 = vld [vmem:[#allocation10 + $0x10] sm:$0xff] }
 0x1a7   :  { %v1011_v6 = vadd.f32 %v591_v14, %v4671_v19  ;;  %v675_v12 = vmul.f32 %v674_v17, %v672_v22  ;;  %v790_v39 = vand.u32 3, %v789_v58  ;;  %v998_v53 = vand.u32 3, %v997_v18 }
 0x1a8   :  { %v4106_v3 = vpop.eup %4105  ;;  %v681_v34 = vsel %vm5256_vm9, 0, %v679_v61  ;;  %v793_v41 = vxor.u32 2147483648, %v4104_v33  ;;  %v796_v15 = vxor.u32 2147483648, %v4102_v30  ;;  %v894_v60 = vand.u32 3, %v893_v57 }
 0x1a9   :  { %v1122_v42 = vpack.c.bf16 %v1011_v6, %v1010_v20  ;;  %v676_v21 = vxor.u32 2147483648, %v675_v12  ;;  %v4108_v7 = vpop.eup %4107  ;;  %v1004_v46 = vxor.u32 2147483648, %v4106_v3  ;;  %v685_v32 = vadd.s32 3, %v681_v34 }
 0x1aa   :  { %v4110_v31 = vpop.eup %4109  ;;  %v1001_v9 = vxor.u32 2147483648, %v4108_v7  ;;  %vm1000_vm10 = vcmp.eq.s32.totalorder %v998_v53, 0  ;;  %vm1003_vm11 = vcmp.eq.s32.totalorder %v998_v53, 2  ;;  %vm792_vm12 = vcmp.eq.s32.totalorder %v790_v39, 0 }
 0x1ab   :  { %3748 = vmatmul.mubr.msk.bf16.vlgmr.msra.gmra.mrb[0].mxu1 %vm1043_vm13, %v1122_v42  ;;  %v677_v48 = vsel %vm594_vm6, %v676_v21, %v675_v12  ;;  %v4112_v24 = vpop.eup %4111  ;;  %v900_v0 = vxor.u32 2147483648, %v4110_v31  ;;  %vm795_vm14 = vcmp.eq.s32.totalorder %v790_v39, 2  ;;  %v1005_v13 = vsel %vm1003_vm11, %v1004_v46, %v4108_v7  ;;  %v5302_v42 = vld [vmem:[#allocation10 + $0x18] sm:$0xff] }
 0x1ac   :  { %v680_v40 = vsel %vm5256_vm9, %v4714_v11, %v677_v48  ;;  %v897_v5 = vxor.u32 2147483648, %v4112_v24  ;;  %v1002_v56 = vsel %vm1000_vm10, %v4106_v3, %v1001_v9  ;;  %v794_v29 = vsel %vm792_vm12, %v4102_v30, %v793_v41 }
 0x1ad   :  { %4113 = vcosq.f32 %v680_v40  ;;  %v797_v23 = vsel %vm795_vm14, %v796_v15, %v4104_v33  ;;  %vm896_vm15 = vcmp.eq.s32.totalorder %v894_v60, 0  ;;  %vm899_vm0 = vcmp.eq.s32.totalorder %v894_v60, 2  ;;  %v5298_v33 = vld [vmem:[#allocation10 + $0x8] sm:$0xff] }
 0x1ae   :  { %4115 = vsinq.f32 %v680_v40  ;;  %v898_v55 = vsel %vm896_vm15, %v4110_v31, %v897_v5  ;;  %v901_v25 = vsel %vm899_vm0, %v900_v0, %v4112_v24  ;;  %vm999_vm1 = vcmp.lt.s32.totalorder %v998_v53, 2 }
 0x1af   :  { %v686_v43 = vand.u32 3, %v685_v32  ;;  %vm791_vm2 = vcmp.lt.s32.totalorder %v790_v39, 2  ;;  %v1006_v52 = vsel %vm999_vm1, %v1002_v56, %v1005_v13  ;;  %vm895_vm3 = vcmp.lt.s32.totalorder %v894_v60, 2 }
 0x1b0   :  { %v798_v2 = vsel %vm791_vm2, %v794_v29, %v797_v23  ;;  %v902_v45 = vsel %vm895_vm3, %v898_v55, %v901_v25  ;;  %vm996_vm4 = vweird.f32 %v4507_v50  ;;  %vm788_vm5 = vweird.f32 %v4494_v36 }
 0x1b1   :  { %v1007_v59 = vsel %vm996_vm4, nan, %v1006_v52  ;;  %vm691_vm7 = vcmp.eq.s32.totalorder %v686_v43, 2  ;;  %v799_v51 = vsel %vm788_vm5, nan, %v798_v2  ;;  %vm892_vm8 = vweird.f32 %v4491_v35 }
 0x1b2   :  { %vm688_vm6 = vcmp.eq.s32.totalorder %v686_v43, 0  ;;  %v903_v8 = vsel %vm892_vm8, nan, %v902_v45  ;;  %vm687_vm9 = vcmp.lt.s32.totalorder %v686_v43, 2  ;;  %v1015_v44 = vadd.f32 %v1007_v59, %v4507_v50  ;;  %v5348_v43 = vpop.permute.xlu1 %1040 }
 0x1b3   :  { %vm684_vm10 = vweird.f32 %v4714_v11  ;;  %v1013_v30 = vadd.f32 %v799_v51, %v4494_v36  ;;  %v1014_v22 = vadd.f32 %v903_v8, %v4491_v35  ;;  %v4341_v50 = vmov 0.0  }
 0x1b4   :  { %3755 = vmatprep.subr.bf16.mxu0 %v4341_v50  ;;  %3763 = vmatprep.subr.bf16.mxu1 %v4341_v50  ;;  %vm4342_vm11 = vmmov 0   ;;  %vm1257_vm12 = vcmask 130048   ;;  %vm1255_vm14 = vcmask 64512   ;;  %vm1259_vm15 = vcmask 195584  }
 0x1b5   :  { %v1124_v47 = vpack.c.bf16 %v1015_v44, %v1014_v22  ;;  %3759 = vmatprep.mubr.msk.bf16.mxu0 %vm4342_vm11, %v4341_v50  ;;  %vm2271_vm0 = vcmask 124928   ;;  %vm3368_vm1 = vcmask 1041409   ;;  %vm3370_vm2 = vcmask 1042434  }
 0x1b6   :  { %vm3372_vm3 = vcmask 1043459   ;;  %vm3374_vm4 = vcmask 1044484   ;;  %vm3376_vm5 = vcmask 1045509   ;;  %vm3380_vm8 = vcmask 1047559  }
 0x1b7   :  { %v4114_v10 = vpop.eup %4113 }
 0x1b8   :  { %v4116_v16 = vpop.eup %4115  ;;  %v692_v26 = vxor.u32 2147483648, %v4114_v10 }
 0x1b9   :  { %v689_v27 = vxor.u32 2147483648, %v4116_v16 }
 0x1ba   :  { %v693_v62 = vsel %vm691_vm7, %v692_v26, %v4116_v16  ;;  %vm3378_vm7 = vcmask 1046534  }
 0x1bb   :  { %v690_v4 = vsel %vm688_vm6, %v4114_v10, %v689_v27 }
 0x1bc   :  { %v694_v20 = vsel %vm687_vm9, %v690_v4, %v693_v62 }
 0x1bd   :  { %v695_v63 = vsel %vm684_vm10, nan, %v694_v20 }
 0x1be   :  { %v1012_v17 = vadd.f32 %v695_v63, %v4714_v11 }
 0x1c0   :  { %v1123_v14 = vpack.c.bf16 %v1013_v30, %v1012_v17 }
 0x1c2   :  { %3751 = vmatprep.mubr.msk.bf16.mxu1 %vm1043_vm13, %v1123_v14 }
 0x1c3   :  { %3752 = vmatmul.mubr.msk.bf16.gmra.mrb[4].mxu1 %vm1043_vm13, %v1124_v47 }
 0x1c4   :  { %3767 = vmatprep.mubr.msk.bf16.mxu1 %vm4342_vm11, %v4341_v50 }
 0x259   :  { %v5284_v35 = vpop.f32.mrb[0].mxu0 }
 0x25a   :  { %v1090_v36 = vpop.f32.mrb[1].mxu0 }
 0x25b   :  { %v5286_v11 = vpop.f32.mrb[2].mxu0  ;;  %v1091_v10 = vadd.f32 %v1090_v36, %v5348_v43 }
 0x25c   :  { %v1093_v38 = vpop.f32.mrb[3].mxu0 }
 0x25d   :  { %v1094_v16 = vadd.f32 %v1093_v38, %v5348_v43  ;;  %v5368_v26 = vpack.c.bf16 %v1091_v10, %v1091_v10 }
 0x25f   :  { %v5370_v59 = vpack.c.bf16 %v1094_v16, %v1094_v16 }
 0x26b   :  { %v5288_v49 = vpop.f32.mrb[4].mxu0 }
 0x26c   :  { %v5290_v54 = vpop.f32.mrb[5].mxu0  ;;  %v1115_v16 = vadd.f32 %v5288_v49, %v5348_v43  ;;  %v1247_v49 = vpop.permute.xlu0 %1246 }
 0x26d   :  { %v5292_v6 = vpop.f32.mrb[6].mxu0 }
 0x26e   :  { %v5294_v12 = vpop.f32.mrb[7].mxu0 }
 0x27e   :  { %v3749_v21 = vpop.f32.mrb[0].mxu1 }
 0x27f   :  { %v1220_v58 = vadd.f32 %v3749_v21, %v5296_v28  ;;  %v1221_v18 = vadd.f32 %v3749_v21, %v5298_v33  ;;  %v1177_v3 = vpop.f32.mrb[1].mxu1  ;;  %v1222_v31 = vadd.f32 %v3749_v21, %v5300_v37  ;;  %v1223_v24 = vadd.f32 %v3749_v21, %v5302_v42 }
 0x280   :  { %v1212_v7 = vadd.f32 %v5296_v28, %v1177_v3  ;;  %v1213_v19 = vadd.f32 %v5298_v33, %v1177_v3  ;;  %v1214_v48 = vadd.f32 %v5300_v37, %v1177_v3  ;;  %v1215_v61 = vadd.f32 %v5302_v42, %v1177_v3  ;;  %v3750_v57 = vpop.f32.mrb[2].mxu1 }
 0x281   :  { %v1180_v40 = vpop.f32.mrb[3].mxu1  ;;  %v1224_v9 = vadd.f32 %v3750_v57, %v5296_v28  ;;  %v1225_v46 = vadd.f32 %v3750_v57, %v5298_v33  ;;  %v5318_v41 = vpack.c.bf16 %v1221_v18, %v1220_v58  ;;  %v1226_v0 = vadd.f32 %v3750_v57, %v5300_v37 }
 0x282   :  { %v5312_v39 = vpack.c.bf16 %v1213_v19, %v1212_v7  ;;  %v1216_v53 = vadd.f32 %v5296_v28, %v1180_v40  ;;  %v1217_v34 = vadd.f32 %v5298_v33, %v1180_v40  ;;  %v5320_v15 = vpack.c.bf16 %v1215_v61, %v1214_v48 }
 0x283   :  { %1967 = vrot.lane.b32.xlu0 %v5318_v41, %s4331_s5  ;;  %v1218_v32 = vadd.f32 %v5300_v37, %v1180_v40  ;;  %v1219_v56 = vadd.f32 %v5302_v42, %v1180_v40  ;;  %v1227_v29 = vadd.f32 %v3750_v57, %v5302_v42  ;;  %v5336_v23 = vpack.c.bf16 %v1223_v24, %v1222_v31 }
 0x284   :  { %v5322_v60 = vpack.c.bf16 %v1217_v34, %v1216_v53  ;;  %v1379_v5 = vsel %vm1257_vm12, %v5312_v39, 0  ;;  %1867 = vrot.lane.b32.xlu1 %v5320_v15, %s4331_s5  ;;  %v5338_v55 = vpack.c.bf16 %v1225_v46, %v1224_v9  ;;  %v1382_v2 = vsel %vm1257_vm12, %v5320_v15, 0 }
 0x285   :  { %3756 = vmatpush3.bf16.xpose.msra.mxu0 %v1379_v5  ;;  %v5346_v25 = vpack.c.bf16 %v1219_v56, %v1218_v32  ;;  %v5350_v52 = vpack.c.bf16 %v1227_v29, %v1226_v0  ;;  %v1477_v27 = vsel %vm1257_vm12, %v5318_v41, 0  ;;  %v1480_v58 = vsel %vm1257_vm12, %v5336_v23, 0 }
 0x286   :  { %v1428_v13 = vsel %vm1257_vm12, %v5322_v60, 0  ;;  %3757 = vmatprep.subr.bf16.mxu0 %v4341_v50  ;;  %v1526_v62 = vsel %vm1257_vm12, %v5338_v55, 0  ;;  %v1099_v3 = vadd.f32 %v5284_v35, %v5348_v43  ;;  %v1102_v57 = vadd.f32 %v5286_v11, %v5348_v43 }
 0x287   :  { %3764 = vmatpush3.bf16.xpose.msra.mxu1 %v1428_v13  ;;  %1969 = vrot.lane.b32.xlu0 %v5336_v23, %s4331_s5  ;;  %v1431_v45 = vsel %vm1257_vm12, %v5346_v25, 0  ;;  %v1529_v18 = vsel %vm1257_vm12, %v5350_v52, 0  ;;  %v1107_v5 = vadd.f32 %v5290_v54, %v5348_v43  ;;  %v1110_v0 = vadd.f32 %v5294_v12, %v5348_v43 }
 0x288   :  { %3765 = vmatprep.subr.bf16.mxu1 %v4341_v50  ;;  %2018 = vrot.lane.b32.xlu1 %v5338_v55, %s4331_s5  ;;  %v5428_v31 = vpack.c.bf16 %v1099_v3, %v1099_v3  ;;  %v5430_v40 = vpack.c.bf16 %v1102_v57, %v1102_v57 }
 0x28b   :  { %1865 = vrot.lane.b32.xlu0 %v5312_v39, %s4331_s5 }
 0x28c   :  { %2020 = vrot.lane.b32.xlu1 %v5350_v52, %s4331_s5 }
 0x28d   :  { %3758 = vmatpush3.bf16.xpose.msra.mxu0 %v1382_v2 }
 0x28e   :  { %3771 = vmatprep.subr.bf16.mxu0 %v4341_v50 }
 0x28f   :  { %3766 = vmatpush3.bf16.xpose.msra.mxu1 %v1431_v45  ;;  %1918 = vrot.lane.b32.xlu0 %v5346_v25, %s4331_s5 }
 0x290   :  { %3779 = vmatprep.subr.bf16.mxu1 %v4341_v50  ;;  %1916 = vrot.lane.b32.xlu1 %v5322_v60, %s4331_s5 }
 0x294   :  { %3760 = vmatmul.mubr.msk.bf16.vlgmr.msra.gmra.mrb[8].mxu0 %vm1257_vm12, %v5368_v26 }
 0x295   :  { %3772 = vmatpush3.bf16.xpose.msra.mxu0 %v1477_v27  ;;  %3775 = vmatprep.mubr.msk.bf16.mxu0 %vm4342_vm11, %v4341_v50  ;;  %v1118_v27 = vadd.f32 %v5292_v6, %v5348_v43  ;;  %v1253_v6 = vpop.permute.xlu0 %1252  ;;  %v1250_v43 = vpop.permute.xlu1 %1249 }
 0x296   :  { %v5376_v51 = vpop.f32.mrb[4].mxu1  ;;  %3768 = vmatmul.mubr.msk.bf16.vlgmr.msra.gmra.mrb[8].mxu1 %vm1257_vm12, %v5370_v59  ;;  %3773 = vmatprep.subr.bf16.mxu0 %v4341_v50 }
 0x297   :  { %v1236_v8 = vadd.f32 %v5376_v51, %v5296_v28  ;;  %v1237_v4 = vadd.f32 %v5376_v51, %v5298_v33  ;;  %v1193_v44 = vpop.f32.mrb[5].mxu1  ;;  %3780 = vmatpush3.bf16.xpose.msra.mxu1 %v1526_v62  ;;  %3783 = vmatprep.mubr.msk.bf16.mxu1 %vm4342_vm11, %v4341_v50  ;;  %v1238_v56 = vadd.f32 %v5376_v51, %v5300_v37 }
 0x298   :  { %v3754_v20 = vpop.f32.mrb[6].mxu1  ;;  %3781 = vmatprep.subr.bf16.mxu1 %v4341_v50  ;;  %v1228_v17 = vadd.f32 %v5296_v28, %v1193_v44  ;;  %v1229_v47 = vadd.f32 %v5298_v33, %v1193_v44  ;;  %v1230_v7 = vadd.f32 %v5300_v37, %v1193_v44  ;;  %v1231_v19 = vadd.f32 %v5302_v42, %v1193_v44 }
 0x299   :  { %v1196_v30 = vpop.f32.mrb[7].mxu1  ;;  %v5394_v14 = vpack.c.bf16 %v1237_v4, %v1236_v8  ;;  %v1240_v34 = vadd.f32 %v3754_v20, %v5296_v28  ;;  %v1241_v9 = vadd.f32 %v3754_v20, %v5298_v33  ;;  %v1239_v54 = vadd.f32 %v5376_v51, %v5302_v42 }
 0x29a   :  { %v1232_v63 = vadd.f32 %v5296_v28, %v1196_v30  ;;  %v1233_v22 = vadd.f32 %v5298_v33, %v1196_v30  ;;  %v1234_v36 = vadd.f32 %v5300_v37, %v1196_v30  ;;  %v1235_v38 = vadd.f32 %v5302_v42, %v1196_v30 }
 0x29b   :  { %2171 = vrot.lane.b32.xlu1 %v5394_v14, %s4331_s5  ;;  %v5414_v48 = vpack.c.bf16 %v1229_v47, %v1228_v17  ;;  %v5426_v35 = vpack.c.bf16 %v1231_v19, %v1230_v7  ;;  %v5460_v32 = vpack.c.bf16 %v1241_v9, %v1240_v34  ;;  %v5462_v28 = vpack.c.bf16 %v1107_v5, %v1107_v5  ;;  %v6091_v34 = vld [vmem:[#allocation16_spill] sm:$0xff] }
 0x29c   :  { %v5400_v21 = vpack.c.bf16 %v1233_v22, %v1232_v63  ;;  %v5417_v61 = vpack.c.bf16 %v1235_v38, %v1234_v36  ;;  %v5464_v33 = vpack.c.bf16 %v1110_v0, %v1110_v0  ;;  %v1673_v12 = vsel %vm1257_vm12, %v5394_v14, 0  ;;  %v4181_v38 = vld [vmem:[#allocation5] sm:$0xff] }
 0x29d   :  { %3774 = vmatpush3.bf16.xpose.msra.mxu0 %v1480_v58  ;;  %v1575_v11 = vsel %vm1257_vm12, %v5414_v48, 0  ;;  %v1578_v53 = vsel %vm1257_vm12, %v5426_v35, 0  ;;  %v1242_v13 = vadd.f32 %v3754_v20, %v5300_v37  ;;  %v1243_v29 = vadd.f32 %v3754_v20, %v5302_v42 }
 0x29e   :  { %2120 = vrot.lane.b32.xlu0 %v5400_v21, %s4331_s5  ;;  %3787 = vmatprep.subr.bf16.mxu0 %v4341_v50  ;;  %v1624_v24 = vsel %vm1257_vm12, %v5400_v21, 0  ;;  %v1627_v46 = vsel %vm1257_vm12, %v5417_v61, 0  ;;  %v1722_v2 = vsel %vm1257_vm12, %v5460_v32, 0  ;;  %v5484_v10 = vpack.c.bf16 %v1239_v54, %v1238_v56 }
 0x29f   :  { %3782 = vmatpush3.bf16.xpose.msra.mxu1 %v1529_v18  ;;  %2069 = vrot.lane.b32.xlu1 %v5414_v48, %s4331_s5  ;;  %v5488_v37 = vpack.c.bf16 %v1243_v29, %v1242_v13  ;;  %v5500_v51 = vpack.c.bf16 %v1115_v16, %v1115_v16  ;;  %v5502_v62 = vpack.c.bf16 %v1118_v27, %v1118_v27  ;;  %v4343_v47 = vmov 1966171168  }
 0x2a0   :  { %3795 = vmatprep.subr.bf16.mxu1 %v4341_v50  ;;  %v1676_v42 = vsel %vm1257_vm12, %v5484_v10, 0  ;;  %v1264_v36 = vunpack.c.l.s4 %v4343_v47  ;;  %v1256_v58 = vsel %vm1255_vm14, %v4181_v38, %v1247_v49 }
 0x2a1   :  { %v1725_v45 = vsel %vm1257_vm12, %v5488_v37, 0  ;;  %v1258_v3 = vsel %vm1257_vm12, %v1256_v58, %v1250_v43 }
 0x2a2   :  { %2122 = vrot.lane.b32.xlu0 %v5417_v61, %s4331_s5  ;;  %v1265_v18 = vunpack.c.0.s8 %v1264_v36  ;;  %v1260_v19 = vsel %vm1259_vm15, %v1258_v3, %v1253_v6 }
 0x2a3   :  { %2071 = vrot.lane.b32.xlu1 %v5426_v35, %s4331_s5 }
 0x2a4   :  { %3776 = vmatmul.mubr.msk.bf16.vlgmr.msra.gmra.mrb[12].mxu0 %vm1257_vm12, %v5428_v31  ;;  %v1268_v7 = vsub.s32 %v1265_v18, %v4452_v1 }
 0x2a5   :  { %3788 = vmatpush3.bf16.xpose.msra.mxu0 %v1575_v11  ;;  %3791 = vmatprep.mubr.msk.bf16.mxu0 %vm4342_vm11, %v4341_v50 }
 0x2a6   :  { %3784 = vmatmul.mubr.msk.bf16.vlgmr.msra.gmra.mrb[12].mxu1 %vm1257_vm12, %v5430_v40  ;;  %3789 = vmatprep.subr.bf16.mxu0 %v4341_v50  ;;  %v1269_v57 = vrot.slane %v1260_v19, %v1268_v7 }
 0x2a7   :  { %3796 = vmatpush3.bf16.xpose.msra.mxu1 %v1624_v24  ;;  %3799 = vmatprep.mubr.msk.bf16.mxu1 %vm4342_vm11, %v4341_v50 }
 0x2a8   :  { %3797 = vmatprep.subr.bf16.mxu1 %v4341_v50  ;;  %v1277_v11 = vcombine.high %v1269_v57, %v1269_v57  ;;  %v1285_v24 = vrot.slane %v1269_v57, %v1268_v7 }
 0x2aa   :  { %v5527_v9 = vrot.slane %v1285_v24, %v6091_v34  ;;  %v1307_v27 = vcombine.high %v1285_v24, %v1285_v24 }
 0x2ac   :  { %v5543_v6 = vrot.slane %v1307_v27, %v6091_v34 }
 0x2ad   :  { %3790 = vmatpush3.bf16.xpose.msra.mxu0 %v1578_v53  ;;  %v1299_v53 = vrot.slane %v1277_v11, %v1268_v7 }
 0x2ae   :  { %3803 = vmatprep.subr.bf16.mxu0 %v4341_v50 }
 0x2af   :  { %3798 = vmatpush3.bf16.xpose.msra.mxu1 %v1627_v46  ;;  %v5530_v46 = vrot.slane %v1299_v53, %v6091_v34  ;;  %v1309_v49 = vcombine.high %v1299_v53, %v1299_v53 }
 0x2b0   :  { %3811 = vmatprep.subr.bf16.mxu1 %v4341_v50 }
 0x2b1   :  { %v5546_v43 = vrot.slane %v1309_v49, %v6091_v34 }
 0x2b4   :  { %3792 = vmatmul.mubr.msk.bf16.vlgmr.msra.gmra.mrb[16].mxu0 %vm1257_vm12, %v5462_v28 }
 0x2b5   :  { %3804 = vmatpush3.bf16.xpose.msra.mxu0 %v1673_v12  ;;  %3807 = vmatprep.mubr.msk.bf16.mxu0 %vm4342_vm11, %v4341_v50 }
 0x2b6   :  { %3800 = vmatmul.mubr.msk.bf16.vlgmr.msra.gmra.mrb[16].mxu1 %vm1257_vm12, %v5464_v33  ;;  %3805 = vmatprep.subr.bf16.mxu0 %v4341_v50 }
 0x2b7   :  { %3812 = vmatpush3.bf16.xpose.msra.mxu1 %v1722_v2  ;;  %3815 = vmatprep.mubr.msk.bf16.mxu1 %vm4342_vm11, %v4341_v50 }
 0x2b8   :  { %3813 = vmatprep.subr.bf16.mxu1 %v4341_v50 }
 0x2bd   :  { %3806 = vmatpush3.bf16.xpose.msra.mxu0 %v1676_v42 }
 0x2be   :  { %3819 = vmatprep.subr.bf16.mxu0 %v4341_v50 }
 0x2bf   :  { %3814 = vmatpush3.bf16.xpose.msra.mxu1 %v1725_v45 }
 0x2c0   :  { %3827 = vmatprep.subr.bf16.mxu1 %v4341_v50 }
 0x2c4   :  { %3808 = vmatmul.mubr.msk.bf16.vlgmr.msra.gmra.mrb[20].mxu0 %vm1257_vm12, %v5500_v51 }
 0x2c5   :  { %3823 = vmatprep.mubr.msk.bf16.mxu0 %vm4342_vm11, %v4341_v50 }
 0x2c6   :  { %3816 = vmatmul.mubr.msk.bf16.vlgmr.msra.gmra.mrb[20].mxu1 %vm1257_vm12, %v5502_v62 }
 0x2c7   :  { %3831 = vmatprep.mubr.msk.bf16.mxu1 %vm4342_vm11, %v4341_v50 }
 0x2f5   :  { %v5512_v8 = vpop.permute.xlu0 %1967 }
 0x2f6   :  { %v1868_v4 = vpop.permute.xlu1 %1867 }
 0x2f9   :  { %v5514_v44 = vpop.permute.xlu0 %1969 }
 0x2fa   :  { %v5516_v20 = vpop.permute.xlu1 %2018 }
 0x2fd   :  { %v1866_v30 = vpop.permute.xlu0 %1865 }
 0x2fe   :  { %v5518_v63 = vpop.permute.xlu1 %2020  ;;  %3820 = vmatpush3.bf16.msra.mxu0 %v1866_v30 }
 0x2ff   :  { %3821 = vmatprep.subr.bf16.mxu0 %v4341_v50 }
 0x301   :  { %v1919_v17 = vpop.permute.xlu0 %1918 }
 0x302   :  { %v1917_v22 = vpop.permute.xlu1 %1916  ;;  %3822 = vmatpush3.bf16.msra.mxu0 %v1868_v4  ;;  %v1262_v4 = vcombine.high %v1260_v19, %v1260_v19 }
 0x303   :  { %3828 = vmatpush3.bf16.msra.mxu1 %v1917_v22  ;;  %3835 = vmatprep.subr.bf16.mxu0 %v4341_v50 }
 0x304   :  { %3829 = vmatprep.subr.bf16.mxu1 %v4341_v50  ;;  %v1276_v24 = vrot.slane %v1262_v4, %v1268_v7 }
 0x306   :  { %v1278_v53 = vcombine.high %v1276_v24, %v1276_v24 }
 0x307   :  { %3830 = vmatpush3.bf16.msra.mxu1 %v1919_v17 }
 0x308   :  { %3843 = vmatprep.subr.bf16.mxu1 %v4341_v50 }
 0x367   :  { %v1418_v5 = vpop.f32.mrb[8].mxu0 }
 0x368   :  { %v5533_v0 = vadd.f32 %v1418_v5, %v5527_v9  ;;  %v3761_v56 = vpop.f32.mrb[9].mxu0  ;;  %v1292_v5 = vrot.slane %v1276_v24, %v1268_v7 }
 0x369   :  { %v1467_v54 = vpop.f32.mrb[8].mxu1  ;;  %v1421_v12 = vpop.f32.mrb[10].mxu0  ;;  %v1306_v56 = vrot.slane %v1278_v53, %v1268_v7 }
 0x36a   :  { %v5536_v1 = vadd.f32 %v1467_v54, %v5530_v46  ;;  %v3769_v13 = vpop.f32.mrb[9].mxu1  ;;  %v3762_v29 = vpop.f32.mrb[11].mxu0  ;;  %v1767_v42 = vsel %vm1043_vm13, %v5533_v0, -inf  ;;  %v5559_v54 = vrot.slane %v1292_v5, %v6091_v34 }
 0x36b   :  { %v1470_v2 = vpop.f32.mrb[10].mxu1  ;;  %1768 = vmax.xlane.f32.xlu1 %v1767_v42  ;;  %v5562_v13 = vrot.slane %v1306_v56, %v6091_v34 }
 0x36c   :  { %v3770_v45 = vpop.f32.mrb[11].mxu1  ;;  %v1770_v16 = vsel %vm1043_vm13, %v5536_v1, -inf }
 0x36d   :  { %1771 = vmax.xlane.f32.xlu0 %v1770_v16 }
 0x377   :  { %v1516_v30 = vpop.f32.mrb[12].mxu0 }
 0x378   :  { %v5549_v22 = vadd.f32 %v1516_v30, %v5543_v6  ;;  %v3777_v17 = vpop.f32.mrb[13].mxu0 }
 0x379   :  { %v1565_v47 = vpop.f32.mrb[12].mxu1  ;;  %v1519_v36 = vpop.f32.mrb[14].mxu0 }
 0x37a   :  { %v5552_v38 = vadd.f32 %v1565_v47, %v5546_v43  ;;  %v3785_v58 = vpop.f32.mrb[13].mxu1  ;;  %v3778_v18 = vpop.f32.mrb[15].mxu0  ;;  %v1773_v57 = vsel %vm1043_vm13, %v5549_v22, -inf  ;;  %v1308_v47 = vcombine.high %v1292_v5, %v1292_v5  ;;  %v1310_v36 = vcombine.high %v1306_v56, %v1306_v56 }
 0x37b   :  { %v1568_v3 = vpop.f32.mrb[14].mxu1  ;;  %1774 = vmax.xlane.f32.xlu0 %v1773_v57 }
 0x37c   :  { %v3786_v11 = vpop.f32.mrb[15].mxu1  ;;  %v1776_v19 = vsel %vm1043_vm13, %v5552_v38, -inf  ;;  %v5575_v58 = vrot.slane %v1308_v47, %v6091_v34  ;;  %v5578_v3 = vrot.slane %v1310_v36, %v6091_v34 }
 0x37d   :  { %1777 = vmax.xlane.f32.xlu1 %v1776_v19 }
 0x387   :  { %v1614_v12 = vpop.f32.mrb[16].mxu0 }
 0x388   :  { %v5565_v29 = vadd.f32 %v1614_v12, %v5559_v54  ;;  %v3793_v2 = vpop.f32.mrb[17].mxu0 }
 0x389   :  { %v1663_v42 = vpop.f32.mrb[16].mxu1  ;;  %v1617_v45 = vpop.f32.mrb[18].mxu0 }
 0x38a   :  { %v5568_v16 = vadd.f32 %v1663_v42, %v5562_v13  ;;  %v3801_v27 = vpop.f32.mrb[17].mxu1  ;;  %v3794_v49 = vpop.f32.mrb[19].mxu0  ;;  %v1779_v7 = vsel %vm1043_vm13, %v5565_v29, -inf }
 0x38b   :  { %v1666_v4 = vpop.f32.mrb[18].mxu1  ;;  %1780 = vmax.xlane.f32.xlu0 %v1779_v7  ;;  %v5594_v45 = vpop.permute.xlu1 %2171 }
 0x38c   :  { %v3802_v30 = vpop.f32.mrb[19].mxu1  ;;  %v1782_v17 = vsel %vm1043_vm13, %v5568_v16, -inf  ;;  %v5598_v49 = vpop.permute.xlu0 %2120 }
 0x38d   :  { %1783 = vmax.xlane.f32.xlu1 %v1782_v17 }
 0x38f   :  { %v5596_v27 = vpop.permute.xlu1 %2069 }
 0x390   :  { %v5602_v7 = vpop.permute.xlu0 %2122 }
 0x393   :  { %v5600_v4 = vpop.permute.xlu1 %2071 }
 0x397   :  { %v1712_v18 = vpop.f32.mrb[20].mxu0 }
 0x398   :  { %v5581_v57 = vadd.f32 %v1712_v18, %v5575_v58  ;;  %v3809_v11 = vpop.f32.mrb[21].mxu0 }
 0x399   :  { %v1761_v19 = vpop.f32.mrb[20].mxu1  ;;  %v1715_v24 = vpop.f32.mrb[22].mxu0 }
 0x39a   :  { %v5584_v53 = vadd.f32 %v1761_v19, %v5578_v3  ;;  %v3817_v12 = vpop.f32.mrb[21].mxu1  ;;  %v3810_v2 = vpop.f32.mrb[23].mxu0  ;;  %v1785_v56 = vsel %vm1043_vm13, %v5581_v57, -inf }
 0x39b   :  { %v1764_v5 = vpop.f32.mrb[22].mxu1  ;;  %1786 = vmax.xlane.f32.xlu0 %v1785_v56 }
 0x39c   :  { %v3818_v42 = vpop.f32.mrb[23].mxu1  ;;  %v1788_v34 = vsel %vm1043_vm13, %v5584_v53, -inf }
 0x39d   :  { %1789 = vmax.xlane.f32.xlu1 %v1788_v34 }
 0x3ae   :  { %2173 = vrot.lane.b32.xlu1 %v5484_v10, %s4331_s5 }
 0x3b1   :  { %2222 = vrot.lane.b32.xlu0 %v5460_v32, %s4331_s5 }
 0x3f8   :  { %v1769_v30 = vpop.xlane.xlu1 %1768 }
 0x3f9   :  { %v1791_v17 = vsub.f32 %v5533_v0, %v1769_v30 }
 0x3fa   :  { %v1772_v47 = vpop.xlane.xlu0 %1771 }
 0x3fb   :  { %v1792_v36 = vsub.f32 %v5536_v1, %v1772_v47  ;;  %v1799_v18 = vmul.f32 1.442695, %v1791_v17 }
 0x3fd   :  { %v1801_v11 = vmul.f32 1.442695, %v1792_v36  ;;  %4117 = vpow2.f32 %v1799_v18 }
 0x3ff   :  { %4119 = vpow2.f32 %v1801_v11 }
 0x407   :  { %v5606_v19 = vpop.eup %4117 }
 0x408   :  { %v1775_v12 = vpop.xlane.xlu0 %1774  ;;  %v1815_v2 = vsel %vm1043_vm13, %v5606_v19, 0.0 }
 0x409   :  { %v5608_v24 = vpop.eup %4119  ;;  %v1793_v5 = vsub.f32 %v5549_v22, %v1775_v12  ;;  %1816 = vadd.xlane.f32.xlu0 %v1815_v2 }
 0x40a   :  { %v1778_v56 = vpop.xlane.xlu1 %1777  ;;  %v1818_v0 = vsel %vm1043_vm13, %v5608_v24, 0.0 }
 0x40b   :  { %v1794_v1 = vsub.f32 %v5552_v38, %v1778_v56  ;;  %1819 = vadd.xlane.f32.xlu1 %v1818_v0  ;;  %v1803_v42 = vmul.f32 1.442695, %v1793_v5 }
 0x40d   :  { %v1805_v34 = vmul.f32 1.442695, %v1794_v1  ;;  %4121 = vpow2.f32 %v1803_v42 }
 0x40f   :  { %4123 = vpow2.f32 %v1805_v34 }
 0x417   :  { %v5616_v30 = vpop.eup %4121 }
 0x418   :  { %v1781_v47 = vpop.xlane.xlu0 %1780  ;;  %v1821_v22 = vsel %vm1043_vm13, %v5616_v30, 0.0 }
 0x419   :  { %v5618_v17 = vpop.eup %4123  ;;  %v1795_v36 = vsub.f32 %v5565_v29, %v1781_v47  ;;  %1822 = vadd.xlane.f32.xlu0 %v1821_v22 }
 0x41a   :  { %v1784_v18 = vpop.xlane.xlu1 %1783  ;;  %v1824_v38 = vsel %vm1043_vm13, %v5618_v17, 0.0 }
 0x41b   :  { %v1796_v11 = vsub.f32 %v5568_v16, %v1784_v18  ;;  %1825 = vadd.xlane.f32.xlu1 %v1824_v38  ;;  %v1807_v12 = vmul.f32 1.442695, %v1795_v36 }
 0x41d   :  { %v1809_v2 = vmul.f32 1.442695, %v1796_v11  ;;  %4125 = vpow2.f32 %v1807_v12 }
 0x41f   :  { %4127 = vpow2.f32 %v1809_v2 }
 0x427   :  { %v5626_v5 = vpop.eup %4125 }
 0x428   :  { %v1827_v0 = vsel %vm1043_vm13, %v5626_v5, 0.0  ;;  %v1787_v1 = vpop.xlane.xlu0 %1786 }
 0x429   :  { %v5628_v56 = vpop.eup %4127  ;;  %1828 = vadd.xlane.f32.xlu0 %v1827_v0  ;;  %v1797_v34 = vsub.f32 %v5581_v57, %v1787_v1 }
 0x42a   :  { %v1830_v29 = vsel %vm1043_vm13, %v5628_v56, 0.0  ;;  %v1790_v16 = vpop.xlane.xlu1 %1789 }
 0x42b   :  { %1831 = vadd.xlane.f32.xlu1 %v1830_v29  ;;  %v1798_v42 = vsub.f32 %v5584_v53, %v1790_v16  ;;  %v1811_v22 = vmul.f32 1.442695, %v1797_v34 }
 0x42d   :  { %v1813_v47 = vmul.f32 1.442695, %v1798_v42 }
 0x42f   :  { %4129 = vpow2.f32 %v1813_v47 }
 0x430   :  { %4131 = vpow2.f32 %v1811_v22 }
 0x439   :  { %v5640_v36 = vpop.eup %4129 }
 0x43a   :  { %v5642_v18 = vpop.eup %4131  ;;  %v1836_v38 = vsel %vm1043_vm13, %v5640_v36, 0.0 }
 0x43b   :  { %v1833_v11 = vsel %vm1043_vm13, %v5642_v18, 0.0 }
 0x43c   :  { %2347 = vrot.lane.b32.xlu1 %v5312_v39, %s4344_s9 }
 0x43f   :  { %2224 = vrot.lane.b32.xlu0 %v5488_v37, %s4331_s5 }
 0x45e   :  { %1837 = vadd.xlane.f32.xlu0 %v1836_v38 }
 0x460   :  { %1834 = vadd.xlane.f32.xlu1 %v1833_v11 }
 0x471   :  { %2349 = vrot.lane.b32.xlu1 %v5320_v15, %s4344_s9 }
 0x474   :  { %2403 = vrot.lane.b32.xlu0 %v5322_v60, %s4344_s9 }
 0x475   :  { %2459 = vrot.lane.b32.xlu1 %v5318_v41, %s4344_s9 }
 0x478   :  { %2405 = vrot.lane.b32.xlu0 %v5346_v25, %s4344_s9 }
 0x479   :  { %2515 = vrot.lane.b32.xlu1 %v5338_v55, %s4344_s9 }
 0x47c   :  { %2345 = vrot.lane.b32.xlu0 %v5368_v26, %s4344_s9  ;;  %v5682_v26 = vpop.permute.xlu0 %2222 }
 0x47d   :  { %2461 = vrot.lane.b32.xlu1 %v5336_v23, %s4344_s9 }
 0x480   :  { %2401 = vrot.lane.b32.xlu0 %v5370_v59, %s4344_s9  ;;  %v5684_v59 = vpop.permute.xlu1 %2173 }
 0x481   :  { %2571 = vrot.lane.b32.xlu1 %v5414_v48, %s4344_s9 }
 0x484   :  { %2517 = vrot.lane.b32.xlu0 %v5350_v52, %s4344_s9 }
 0x485   :  { %2627 = vrot.lane.b32.xlu1 %v5400_v21, %s4344_s9 }
 0x488   :  { %2457 = vrot.lane.b32.xlu0 %v5428_v31, %s4344_s9 }
 0x489   :  { %2573 = vrot.lane.b32.xlu1 %v5426_v35, %s4344_s9 }
 0x48c   :  { %2513 = vrot.lane.b32.xlu0 %v5430_v40, %s4344_s9 }
 0x48d   :  { %2683 = vrot.lane.b32.xlu1 %v5394_v14, %s4344_s9 }
 0x490   :  { %2629 = vrot.lane.b32.xlu0 %v5417_v61, %s4344_s9 }
 0x491   :  { %2739 = vrot.lane.b32.xlu1 %v5460_v32, %s4344_s9 }
 0x494   :  { %2569 = vrot.lane.b32.xlu0 %v5462_v28, %s4344_s9 }
 0x495   :  { %2685 = vrot.lane.b32.xlu1 %v5484_v10, %s4344_s9 }
 0x496   :  { %v1817_v31 = vpop.xlane.xlu0 %1816 }
 0x497   :  { %4133 = vrcp.f32 %v1817_v31 }
 0x498   :  { %v1820_v40 = vpop.xlane.xlu1 %1819  ;;  %2625 = vrot.lane.b32.xlu0 %v5464_v33, %s4344_s9 }
 0x499   :  { %4135 = vrcp.f32 %v1820_v40  ;;  %2681 = vrot.lane.b32.xlu1 %v5500_v51, %s4344_s9 }
 0x49c   :  { %2741 = vrot.lane.b32.xlu0 %v5488_v37, %s4344_s9 }
 0x49d   :  { %2937 = vrot.lane.b32.xlu1 %v5322_v60, %s4345_s10 }
 0x4a0   :  { %2737 = vrot.lane.b32.xlu0 %v5502_v62, %s4344_s9 }
 0x4a1   :  { %2939 = vrot.lane.b32.xlu1 %v5346_v25, %s4345_s10  ;;  %v4134_v28 = vpop.eup %4133 }
 0x4a2   :  { %v1847_v33 = vmul.f32 %v4134_v28, %v5606_v19 }
 0x4a3   :  { %v4136_v57 = vpop.eup %4135 }
 0x4a4   :  { %v1848_v53 = vmul.f32 %v4136_v57, %v5608_v24  ;;  %2888 = vrot.lane.b32.xlu0 %v5312_v39, %s4345_s10  ;;  %v1855_v51 = vpack.c.bf16 %v1847_v33, %v1847_v33 }
 0x4a5   :  { %2986 = vrot.lane.b32.xlu1 %v5318_v41, %s4345_s10 }
 0x4a6   :  { %v1856_v60 = vpack.c.bf16 %v1848_v53, %v1848_v53  ;;  %3824 = vmatmul.mubr.msk.bf16.vlgmr.msra.gmra.mrb[24].mxu0 %vm1043_vm13, %v1855_v51  ;;  %v1823_v62 = vpop.xlane.xlu0 %1822 }
 0x4a7   :  { %3836 = vmatpush3.bf16.msra.mxu0 %v5512_v8  ;;  %4137 = vrcp.f32 %v1823_v62  ;;  %3839 = vmatprep.mubr.msk.bf16.mxu0 %vm4342_vm11, %v4341_v50 }
 0x4a8   :  { %3832 = vmatmul.mubr.msk.bf16.vlgmr.msra.gmra.mrb[24].mxu1 %vm1043_vm13, %v1856_v60  ;;  %v1826_v25 = vpop.xlane.xlu1 %1825  ;;  %2890 = vrot.lane.b32.xlu0 %v5320_v15, %s4345_s10 }
 0x4a9   :  { %3844 = vmatpush3.bf16.msra.mxu1 %v5516_v20  ;;  %4139 = vrcp.f32 %v1826_v25  ;;  %2988 = vrot.lane.b32.xlu1 %v5336_v23, %s4345_s10 }
 0x4aa   :  { %3837 = vmatprep.subr.bf16.mxu0 %v4341_v50  ;;  %3845 = vmatprep.subr.bf16.mxu1 %v4341_v50 }
 0x4ab   :  { %3838 = vmatpush3.bf16.msra.mxu0 %v5514_v44  ;;  %3847 = vmatprep.mubr.msk.bf16.mxu1 %vm4342_vm11, %v4341_v50 }
 0x4ac   :  { %3035 = vrot.lane.b32.xlu0 %v5338_v55, %s4345_s10  ;;  %3851 = vmatprep.subr.bf16.mxu0 %v4341_v50 }
 0x4ad   :  { %3846 = vmatpush3.bf16.msra.mxu1 %v5518_v63  ;;  %3084 = vrot.lane.b32.xlu1 %v5414_v48, %s4345_s10 }
 0x4ae   :  { %3859 = vmatprep.subr.bf16.mxu1 %v4341_v50 }
 0x4b0   :  { %3037 = vrot.lane.b32.xlu0 %v5350_v52, %s4345_s10 }
 0x4b1   :  { %v4138_v39 = vpop.eup %4137 }
 0x4b2   :  { %v1849_v15 = vmul.f32 %v4138_v39, %v5616_v30 }
 0x4b3   :  { %v4140_v41 = vpop.eup %4139 }
 0x4b4   :  { %v1850_v23 = vmul.f32 %v4140_v41, %v5618_v17  ;;  %3133 = vrot.lane.b32.xlu0 %v5400_v21, %s4345_s10  ;;  %v1857_v55 = vpack.c.bf16 %v1849_v15, %v1849_v15 }
 0x4b6   :  { %v1858_v8 = vpack.c.bf16 %v1850_v23, %v1850_v23  ;;  %3840 = vmatmul.mubr.msk.bf16.vlgmr.msra.gmra.mrb[28].mxu0 %vm1043_vm13, %v1857_v55  ;;  %v1829_v48 = vpop.xlane.xlu0 %1828 }
 0x4b7   :  { %3852 = vmatpush3.bf16.msra.mxu0 %v5596_v27  ;;  %4141 = vrcp.f32 %v1829_v48  ;;  %3855 = vmatprep.mubr.msk.bf16.mxu0 %vm4342_vm11, %v4341_v50 }
 0x4b8   :  { %3848 = vmatmul.mubr.msk.bf16.vlgmr.msra.gmra.mrb[28].mxu1 %vm1043_vm13, %v1858_v8  ;;  %v1832_v52 = vpop.xlane.xlu1 %1831  ;;  %3853 = vmatprep.subr.bf16.mxu0 %v4341_v50 }
 0x4b9   :  { %3860 = vmatpush3.bf16.msra.mxu1 %v5598_v49  ;;  %4143 = vrcp.f32 %v1832_v52  ;;  %3863 = vmatprep.mubr.msk.bf16.mxu1 %vm4342_vm11, %v4341_v50 }
 0x4ba   :  { %3861 = vmatprep.subr.bf16.mxu1 %v4341_v50 }
 0x4bb   :  { %3854 = vmatpush3.bf16.msra.mxu0 %v5600_v4  ;;  %v2225_v4 = vpop.permute.xlu0 %2224 }
 0x4bc   :  { %3867 = vmatprep.subr.bf16.mxu0 %v4341_v50 }
 0x4bd   :  { %3862 = vmatpush3.bf16.msra.mxu1 %v5602_v7 }
 0x4be   :  { %3875 = vmatprep.subr.bf16.mxu1 %v4341_v50 }
 0x4c1   :  { %v4142_v21 = vpop.eup %4141 }
 0x4c2   :  { %v1851_v20 = vmul.f32 %v4142_v21, %v5626_v5 }
 0x4c3   :  { %v4144_v44 = vpop.eup %4143 }
 0x4c4   :  { %v1852_v63 = vmul.f32 %v4144_v44, %v5628_v56  ;;  %v1859_v27 = vpack.c.bf16 %v1851_v20, %v1851_v20 }
 0x4c6   :  { %v1860_v49 = vpack.c.bf16 %v1852_v63, %v1852_v63  ;;  %3856 = vmatmul.mubr.msk.bf16.vlgmr.msra.gmra.mrb[32].mxu0 %vm1043_vm13, %v1859_v27 }
 0x4c7   :  { %3868 = vmatpush3.bf16.msra.mxu0 %v5594_v45  ;;  %3871 = vmatprep.mubr.msk.bf16.mxu0 %vm4342_vm11, %v4341_v50  ;;  %v2348_v45 = vpop.permute.xlu1 %2347 }
 0x4c8   :  { %3864 = vmatmul.mubr.msk.bf16.vlgmr.msra.gmra.mrb[32].mxu1 %vm1043_vm13, %v1860_v49  ;;  %3869 = vmatprep.subr.bf16.mxu0 %v4341_v50  ;;  %v2355_v1 = vsel %vm1257_vm12, %v2348_v45, 0 }
 0x4c9   :  { %3876 = vmatpush3.bf16.msra.mxu1 %v5682_v26  ;;  %3879 = vmatprep.mubr.msk.bf16.mxu1 %vm4342_vm11, %v4341_v50 }
 0x4ca   :  { %3877 = vmatprep.subr.bf16.mxu1 %v4341_v50 }
 0x4cb   :  { %3870 = vmatpush3.bf16.msra.mxu0 %v5684_v59 }
 0x4cc   :  { %3883 = vmatprep.subr.bf16.mxu0 %v4341_v50 }
 0x4cd   :  { %3878 = vmatpush3.bf16.msra.mxu1 %v2225_v4 }
 0x4ce   :  { %3891 = vmatprep.subr.bf16.mxu1 %v4341_v50 }
 0x4eb   :  { %v1838_v7 = vpop.xlane.xlu0 %1837 }
 0x4ec   :  { %4145 = vrcp.f32 %v1838_v7 }
 0x4ed   :  { %v1835_v19 = vpop.xlane.xlu1 %1834 }
 0x4ee   :  { %4147 = vrcp.f32 %v1835_v19 }
 0x4ef   :  { %v2404_v24 = vpop.permute.xlu0 %2403 }
 0x4f0   :  { %v2411_v16 = vsel %vm1257_vm12, %v2404_v24, 0 }
 0x4f1   :  { %v2350_v2 = vpop.permute.xlu1 %2349 }
 0x4f3   :  { %v2406_v56 = vpop.permute.xlu0 %2405 }
 0x4f4   :  { %v2414_v47 = vsel %vm1257_vm12, %v2406_v56, 0 }
 0x4f5   :  { %v2460_v42 = vpop.permute.xlu1 %2459 }
 0x4f6   :  { %v4146_v30 = vpop.eup %4145  ;;  %v2467_v59 = vsel %vm1257_vm12, %v2460_v42, 0 }
 0x4f7   :  { %v1854_v12 = vmul.f32 %v4146_v30, %v5640_v36  ;;  %v2346_v34 = vpop.permute.xlu0 %2345  ;;  %v2358_v36 = vsel %vm1257_vm12, %v2350_v2, 0 }
 0x4f8   :  { %v4148_v17 = vpop.eup %4147 }
 0x4f9   :  { %v1853_v5 = vmul.f32 %v4148_v17, %v5642_v18  ;;  %v1862_v0 = vpack.c.bf16 %v1854_v12, %v1854_v12  ;;  %v2516_v22 = vpop.permute.xlu1 %2515 }
 0x4fa   :  { %v2523_v26 = vsel %vm1257_vm12, %v2516_v22, 0 }
 0x4fb   :  { %v1861_v29 = vpack.c.bf16 %v1853_v5, %v1853_v5  ;;  %3880 = vmatmul.mubr.msk.bf16.vlgmr.msra.gmra.mrb[36].mxu1 %vm1043_vm13, %v1862_v0  ;;  %v2402_v18 = vpop.permute.xlu0 %2401 }
 0x4fc   :  { %3892 = vmatpush3.bf16.xpose.msra.mxu1 %v2411_v16  ;;  %3895 = vmatprep.mubr.msk.bf16.mxu1 %vm4342_vm11, %v4341_v50 }
 0x4fd   :  { %3872 = vmatmul.mubr.msk.bf16.vlgmr.msra.gmra.mrb[36].mxu0 %vm1043_vm13, %v1861_v29  ;;  %3893 = vmatprep.subr.bf16.mxu1 %v4341_v50  ;;  %v2462_v38 = vpop.permute.xlu1 %2461 }
 0x4fe   :  { %3884 = vmatpush3.bf16.xpose.msra.mxu0 %v2355_v1  ;;  %3887 = vmatprep.mubr.msk.bf16.mxu0 %vm4342_vm11, %v4341_v50  ;;  %v2470_v57 = vsel %vm1257_vm12, %v2462_v38, 0 }
 0x4ff   :  { %3885 = vmatprep.subr.bf16.mxu0 %v4341_v50  ;;  %v2518_v11 = vpop.permute.xlu0 %2517 }
 0x500   :  { %v2526_v28 = vsel %vm1257_vm12, %v2518_v11, 0 }
 0x501   :  { %v2572_v31 = vpop.permute.xlu1 %2571 }
 0x502   :  { %v2579_v62 = vsel %vm1257_vm12, %v2572_v31, 0 }
 0x503   :  { %v2458_v40 = vpop.permute.xlu0 %2457 }
 0x504   :  { %3894 = vmatpush3.bf16.xpose.msra.mxu1 %v2414_v47 }
 0x505   :  { %3907 = vmatprep.subr.bf16.mxu1 %v4341_v50  ;;  %v2628_v33 = vpop.permute.xlu1 %2627 }
 0x506   :  { %3886 = vmatpush3.bf16.xpose.msra.mxu0 %v2358_v36  ;;  %v2635_v51 = vsel %vm1257_vm12, %v2628_v33, 0 }
 0x507   :  { %3899 = vmatprep.subr.bf16.mxu0 %v4341_v50  ;;  %v2514_v53 = vpop.permute.xlu0 %2513 }
 0x509   :  { %v2574_v60 = vpop.permute.xlu1 %2573 }
 0x50a   :  { %v2582_v23 = vsel %vm1257_vm12, %v2574_v60, 0 }
 0x50b   :  { %3896 = vmatmul.mubr.msk.bf16.vlgmr.msra.gmra.mrb[40].mxu1 %vm1257_vm12, %v2402_v18  ;;  %v2630_v25 = vpop.permute.xlu0 %2629 }
 0x50c   :  { %3908 = vmatpush3.bf16.xpose.msra.mxu1 %v2523_v26  ;;  %3911 = vmatprep.mubr.msk.bf16.mxu1 %vm4342_vm11, %v4341_v50  ;;  %v2638_v15 = vsel %vm1257_vm12, %v2630_v25, 0 }
 0x50d   :  { %3888 = vmatmul.mubr.msk.bf16.vlgmr.msra.gmra.mrb[40].mxu0 %vm1257_vm12, %v2346_v34  ;;  %3909 = vmatprep.subr.bf16.mxu1 %v4341_v50  ;;  %v2684_v39 = vpop.permute.xlu1 %2683 }
 0x50e   :  { %3900 = vmatpush3.bf16.xpose.msra.mxu0 %v2467_v59  ;;  %3903 = vmatprep.mubr.msk.bf16.mxu0 %vm4342_vm11, %v4341_v50  ;;  %v2691_v52 = vsel %vm1257_vm12, %v2684_v39, 0 }
 0x50f   :  { %3901 = vmatprep.subr.bf16.mxu0 %v4341_v50  ;;  %v2570_v41 = vpop.permute.xlu0 %2569 }
 0x511   :  { %v2740_v55 = vpop.permute.xlu1 %2739 }
 0x512   :  { %v2747_v48 = vsel %vm1257_vm12, %v2740_v55, 0 }
 0x513   :  { %v2626_v8 = vpop.permute.xlu0 %2625 }
 0x514   :  { %3910 = vmatpush3.bf16.xpose.msra.mxu1 %v2526_v28 }
 0x515   :  { %3923 = vmatprep.subr.bf16.mxu1 %v4341_v50  ;;  %v2686_v21 = vpop.permute.xlu1 %2685 }
 0x516   :  { %3902 = vmatpush3.bf16.xpose.msra.mxu0 %v2470_v57  ;;  %v2694_v27 = vsel %vm1257_vm12, %v2686_v21, 0 }
 0x517   :  { %3915 = vmatprep.subr.bf16.mxu0 %v4341_v50  ;;  %v2742_v44 = vpop.permute.xlu0 %2741 }
 0x518   :  { %v2750_v20 = vsel %vm1257_vm12, %v2742_v44, 0 }
 0x519   :  { %v2682_v63 = vpop.permute.xlu1 %2681 }
 0x51b   :  { %3912 = vmatmul.mubr.msk.bf16.vlgmr.msra.gmra.mrb[44].mxu1 %vm1257_vm12, %v2514_v53  ;;  %v2738_v49 = vpop.permute.xlu0 %2737 }
 0x51c   :  { %3924 = vmatpush3.bf16.xpose.msra.mxu1 %v2635_v51  ;;  %3927 = vmatprep.mubr.msk.bf16.mxu1 %vm4342_vm11, %v4341_v50 }
 0x51d   :  { %3904 = vmatmul.mubr.msk.bf16.vlgmr.msra.gmra.mrb[44].mxu0 %vm1257_vm12, %v2458_v40  ;;  %3925 = vmatprep.subr.bf16.mxu1 %v4341_v50  ;;  %v2938_v4 = vpop.permute.xlu1 %2937 }
 0x51e   :  { %3916 = vmatpush3.bf16.xpose.msra.mxu0 %v2579_v62  ;;  %3919 = vmatprep.mubr.msk.bf16.mxu0 %vm4342_vm11, %v4341_v50 }
 0x51f   :  { %3917 = vmatprep.subr.bf16.mxu0 %v4341_v50  ;;  %v2889_v45 = vpop.permute.xlu0 %2888 }
 0x521   :  { %v2940_v7 = vpop.permute.xlu1 %2939 }
 0x523   :  { %v2891_v19 = vpop.permute.xlu0 %2890 }
 0x524   :  { %3926 = vmatpush3.bf16.xpose.msra.mxu1 %v2638_v15 }
 0x525   :  { %3939 = vmatprep.subr.bf16.mxu1 %v4341_v50 }
 0x526   :  { %3918 = vmatpush3.bf16.xpose.msra.mxu0 %v2582_v23 }
 0x527   :  { %3931 = vmatprep.subr.bf16.mxu0 %v4341_v50 }
 0x52b   :  { %3928 = vmatmul.mubr.msk.bf16.vlgmr.msra.gmra.mrb[48].mxu1 %vm1257_vm12, %v2626_v8 }
 0x52c   :  { %3940 = vmatpush3.bf16.xpose.msra.mxu1 %v2747_v48  ;;  %3943 = vmatprep.mubr.msk.bf16.mxu1 %vm4342_vm11, %v4341_v50 }
 0x52d   :  { %3920 = vmatmul.mubr.msk.bf16.vlgmr.msra.gmra.mrb[48].mxu0 %vm1257_vm12, %v2570_v41  ;;  %3941 = vmatprep.subr.bf16.mxu1 %v4341_v50 }
 0x52e   :  { %3932 = vmatpush3.bf16.xpose.msra.mxu0 %v2691_v52  ;;  %3935 = vmatprep.mubr.msk.bf16.mxu0 %vm4342_vm11, %v4341_v50 }
 0x52f   :  { %3933 = vmatprep.subr.bf16.mxu0 %v4341_v50 }
 0x534   :  { %3942 = vmatpush3.bf16.xpose.msra.mxu1 %v2750_v20 }
 0x535   :  { %3955 = vmatprep.subr.bf16.mxu1 %v4341_v50 }
 0x536   :  { %3934 = vmatpush3.bf16.xpose.msra.mxu0 %v2694_v27 }
 0x537   :  { %3947 = vmatprep.subr.bf16.mxu0 %v4341_v50 }
 0x53b   :  { %3944 = vmatmul.mubr.msk.bf16.vlgmr.msra.gmra.mrb[52].mxu1 %vm1257_vm12, %v2738_v49 }
 0x53c   :  { %3956 = vmatpush3.bf16.msra.mxu1 %v2938_v4  ;;  %3959 = vmatprep.mubr.msk.bf16.mxu1 %vm4342_vm11, %v4341_v50 }
 0x53d   :  { %3936 = vmatmul.mubr.msk.bf16.vlgmr.msra.gmra.mrb[52].mxu0 %vm1257_vm12, %v2682_v63  ;;  %3957 = vmatprep.subr.bf16.mxu1 %v4341_v50 }
 0x53e   :  { %3948 = vmatpush3.bf16.msra.mxu0 %v2889_v45  ;;  %3951 = vmatprep.mubr.msk.bf16.mxu0 %vm4342_vm11, %v4341_v50 }
 0x53f   :  { %3949 = vmatprep.subr.bf16.mxu0 %v4341_v50 }
 0x540   :  { %3958 = vmatpush3.bf16.msra.mxu1 %v2940_v7 }
 0x541   :  { %3971 = vmatprep.subr.bf16.mxu1 %v4341_v50 }
 0x542   :  { %3950 = vmatpush3.bf16.msra.mxu0 %v2891_v19 }
 0x543   :  { %3963 = vmatprep.subr.bf16.mxu0 %v4341_v50 }
 0x579   :  { %v1908_v24 = vpop.f32.mrb[24].mxu0 }
 0x57a   :  { %v2272_v30 = vsel %vm2271_vm0, %v1908_v24, 0.0  ;;  %v3825_v17 = vpop.f32.mrb[25].mxu0 }
 0x57b   :  { %v1959_v12 = vpop.f32.mrb[24].mxu1  ;;  %v2273_v2 = vrot.slane %v2272_v30, 4  ;;  %v1911_v5 = vpop.f32.mrb[26].mxu0 }
 0x57c   :  { %v2279_v56 = vsel %vm2271_vm0, %v1959_v12, 0.0  ;;  %v3833_v0 = vpop.f32.mrb[25].mxu1  ;;  %v3826_v16 = vpop.f32.mrb[27].mxu0 }
 0x57d   :  { %v2280_v29 = vrot.slane %v2279_v56, 4  ;;  %v1962_v1 = vpop.f32.mrb[26].mxu1  ;;  %v2274_v42 = vadd.f32 %v2273_v2, %v2272_v30 }
 0x57e   :  { %v3834_v34 = vpop.f32.mrb[27].mxu1 }
 0x57f   :  { %v2281_v47 = vadd.f32 %v2280_v29, %v2279_v56  ;;  %v2275_v22 = vrot.slane %v2274_v42, 2 }
 0x581   :  { %v2282_v36 = vrot.slane %v2281_v47, 2  ;;  %v2276_v18 = vadd.f32 %v2275_v22, %v2274_v42 }
 0x583   :  { %v2283_v38 = vadd.f32 %v2282_v36, %v2281_v47  ;;  %v2277_v11 = vrot.slane %v2276_v18, 1 }
 0x585   :  { %v2284_v26 = vrot.slane %v2283_v38, 1  ;;  %v2278_v59 = vadd.f32 %v2277_v11, %v2276_v18 }
 0x587   :  { %v2285_v31 = vadd.f32 %v2284_v26, %v2283_v38  ;;  %v2328_v40 = vmul.f32 0.33333334, %v2278_v59 }
 0x589   :  { %v2329_v28 = vmul.f32 0.33333334, %v2285_v31  ;;  %v2336_v57 = vpack.c.bf16 %v2328_v40, %v2328_v40  ;;  %v2010_v33 = vpop.f32.mrb[28].mxu0 }
 0x58a   :  { %v2286_v51 = vsel %vm2271_vm0, %v2010_v33, 0.0  ;;  %v3841_v60 = vpop.f32.mrb[29].mxu0 }
 0x58b   :  { %v2337_v53 = vpack.c.bf16 %v2329_v28, %v2329_v28  ;;  %v2061_v62 = vpop.f32.mrb[28].mxu1  ;;  %v2287_v25 = vrot.slane %v2286_v51, 4  ;;  %v2013_v39 = vpop.f32.mrb[30].mxu0  ;;  %v3444_v23 = vunpack.c.l.b16 %v2336_v57 }
 0x58c   :  { %v2293_v41 = vsel %vm2271_vm0, %v2061_v62, 0.0  ;;  %v3849_v15 = vpop.f32.mrb[29].mxu1  ;;  %v3842_v48 = vpop.f32.mrb[31].mxu0 }
 0x58d   :  { %v3445_v55 = vunpack.c.l.b16 %v2337_v53  ;;  %v2294_v8 = vrot.slane %v2293_v41, 4  ;;  %v2064_v52 = vpop.f32.mrb[30].mxu1  ;;  %v2288_v21 = vadd.f32 %v2287_v25, %v2286_v51 }
 0x58e   :  { %v3850_v44 = vpop.f32.mrb[31].mxu1 }
 0x58f   :  { %v3452_v20 = vsel %vm3368_vm1, %v3445_v55, %v3444_v23  ;;  %v2295_v63 = vadd.f32 %v2294_v8, %v2293_v41  ;;  %v2289_v27 = vrot.slane %v2288_v21, 2 }
 0x591   :  { %v2296_v49 = vrot.slane %v2295_v63, 2  ;;  %v2290_v4 = vadd.f32 %v2289_v27, %v2288_v21 }
 0x593   :  { %v2297_v45 = vadd.f32 %v2296_v49, %v2295_v63  ;;  %v2291_v7 = vrot.slane %v2290_v4, 1 }
 0x595   :  { %v2298_v19 = vrot.slane %v2297_v45, 1  ;;  %v2292_v24 = vadd.f32 %v2291_v7, %v2290_v4 }
 0x597   :  { %v2299_v30 = vadd.f32 %v2298_v19, %v2297_v45  ;;  %v2330_v17 = vmul.f32 0.33333334, %v2292_v24 }
 0x599   :  { %v2331_v12 = vmul.f32 0.33333334, %v2299_v30  ;;  %v2338_v2 = vpack.c.bf16 %v2330_v17, %v2330_v17  ;;  %v2112_v5 = vpop.f32.mrb[32].mxu0 }
 0x59a   :  { %v2300_v0 = vsel %vm2271_vm0, %v2112_v5, 0.0  ;;  %v3857_v29 = vpop.f32.mrb[33].mxu0 }
 0x59b   :  { %v2339_v56 = vpack.c.bf16 %v2331_v12, %v2331_v12  ;;  %v2163_v16 = vpop.f32.mrb[32].mxu1  ;;  %v3446_v1 = vunpack.c.l.b16 %v2338_v2  ;;  %v2301_v42 = vrot.slane %v2300_v0, 4  ;;  %v2115_v34 = vpop.f32.mrb[34].mxu0 }
 0x59c   :  { %v2307_v47 = vsel %vm2271_vm0, %v2163_v16, 0.0  ;;  %v3865_v22 = vpop.f32.mrb[33].mxu1  ;;  %v3858_v38 = vpop.f32.mrb[35].mxu0 }
 0x59d   :  { %v3447_v36 = vunpack.c.l.b16 %v2339_v56  ;;  %v2308_v18 = vrot.slane %v2307_v47, 4  ;;  %v2166_v11 = vpop.f32.mrb[34].mxu1  ;;  %v3453_v26 = vsel %vm3370_vm2, %v3446_v1, %v3452_v20  ;;  %v2302_v59 = vadd.f32 %v2301_v42, %v2300_v0 }
 0x59e   :  { %v3866_v31 = vpop.f32.mrb[35].mxu1 }
 0x59f   :  { %v3454_v40 = vsel %vm3372_vm3, %v3447_v36, %v3453_v26  ;;  %v2309_v28 = vadd.f32 %v2308_v18, %v2307_v47  ;;  %v2303_v57 = vrot.slane %v2302_v59, 2 }
 0x5a1   :  { %v2310_v33 = vrot.slane %v2309_v28, 2  ;;  %v2304_v53 = vadd.f32 %v2303_v57, %v2302_v59 }
 0x5a3   :  { %v2311_v51 = vadd.f32 %v2310_v33, %v2309_v28  ;;  %v2305_v60 = vrot.slane %v2304_v53, 1 }
 0x5a5   :  { %v2312_v62 = vrot.slane %v2311_v51, 1  ;;  %v2306_v25 = vadd.f32 %v2305_v60, %v2304_v53 }
 0x5a7   :  { %v2313_v39 = vadd.f32 %v2312_v62, %v2311_v51  ;;  %v2332_v41 = vmul.f32 0.33333334, %v2306_v25 }
 0x5a9   :  { %v2333_v15 = vmul.f32 0.33333334, %v2313_v39  ;;  %v2340_v23 = vpack.c.bf16 %v2332_v41, %v2332_v41 }
 0x5ab   :  { %v2341_v55 = vpack.c.bf16 %v2333_v15, %v2333_v15  ;;  %v3448_v8 = vunpack.c.l.b16 %v2340_v23 }
 0x5ad   :  { %v3449_v48 = vunpack.c.l.b16 %v2341_v55  ;;  %v3455_v52 = vsel %vm3374_vm4, %v3448_v8, %v3454_v40 }
 0x5af   :  { %v3456_v21 = vsel %vm3376_vm5, %v3449_v48, %v3455_v52 }
 0x5ce   :  { %v2265_v44 = vpop.f32.mrb[36].mxu1 }
 0x5cf   :  { %v2321_v20 = vsel %vm2271_vm0, %v2265_v44, 0.0  ;;  %v3881_v63 = vpop.f32.mrb[37].mxu1 }
 0x5d0   :  { %v2214_v27 = vpop.f32.mrb[36].mxu0  ;;  %v2322_v49 = vrot.slane %v2321_v20, 4  ;;  %v2268_v45 = vpop.f32.mrb[38].mxu1 }
 0x5d1   :  { %v2314_v4 = vsel %vm2271_vm0, %v2214_v27, 0.0  ;;  %v3873_v7 = vpop.f32.mrb[37].mxu0  ;;  %v3882_v24 = vpop.f32.mrb[39].mxu1 }
 0x5d2   :  { %v2315_v19 = vrot.slane %v2314_v4, 4  ;;  %v2217_v30 = vpop.f32.mrb[38].mxu0  ;;  %v2323_v17 = vadd.f32 %v2322_v49, %v2321_v20 }
 0x5d3   :  { %v3874_v12 = vpop.f32.mrb[39].mxu0 }
 0x5d4   :  { %v2316_v2 = vadd.f32 %v2315_v19, %v2314_v4  ;;  %v2324_v5 = vrot.slane %v2323_v17, 2 }
 0x5d6   :  { %v2317_v56 = vrot.slane %v2316_v2, 2  ;;  %v2325_v0 = vadd.f32 %v2324_v5, %v2323_v17 }
 0x5d8   :  { %v2318_v29 = vadd.f32 %v2317_v56, %v2316_v2  ;;  %v2326_v16 = vrot.slane %v2325_v0, 1 }
 0x5da   :  { %v2319_v1 = vrot.slane %v2318_v29, 1  ;;  %v2327_v42 = vadd.f32 %v2326_v16, %v2325_v0 }
 0x5dc   :  { %v2320_v34 = vadd.f32 %v2319_v1, %v2318_v29  ;;  %v2335_v47 = vmul.f32 0.33333334, %v2327_v42 }
 0x5de   :  { %v2334_v22 = vmul.f32 0.33333334, %v2320_v34  ;;  %v2343_v36 = vpack.c.bf16 %v2335_v47, %v2335_v47  ;;  %v2450_v18 = vpop.f32.mrb[40].mxu1 }
 0x5df   :  { %v5847_v11 = vadd.f32 %v2450_v18, %v5530_v46  ;;  %v3897_v26 = vpop.f32.mrb[41].mxu1 }
 0x5e0   :  { %v2342_v38 = vpack.c.bf16 %v2334_v22, %v2334_v22  ;;  %v2394_v59 = vpop.f32.mrb[40].mxu0  ;;  %v2453_v40 = vpop.f32.mrb[42].mxu1  ;;  %v3451_v60 = vunpack.c.l.b16 %v2343_v36 }
 0x5e1   :  { %v5850_v31 = vadd.f32 %v2394_v59, %v5527_v9  ;;  %v3889_v28 = vpop.f32.mrb[41].mxu0  ;;  %v3898_v33 = vpop.f32.mrb[43].mxu1  ;;  %v2795_v53 = vsel %vm1043_vm13, %v5847_v11, -inf }
 0x5e2   :  { %v3450_v57 = vunpack.c.l.b16 %v2342_v38  ;;  %v2397_v51 = vpop.f32.mrb[42].mxu0  ;;  %2796 = vmax.xlane.f32.xlu0 %v2795_v53 }
 0x5e3   :  { %v3890_v62 = vpop.f32.mrb[43].mxu0  ;;  %v2792_v46 = vsel %vm1043_vm13, %v5850_v31, -inf }
 0x5e4   :  { %v3457_v25 = vsel %vm3378_vm7, %v3450_v57, %v3456_v21  ;;  %2793 = vmax.xlane.f32.xlu1 %v2792_v46 }
 0x5e5   :  { %v5858_v9 = vsel %vm3380_vm8, %v3451_v60, %v3457_v25 }
 0x5ee   :  { %v2562_v39 = vpop.f32.mrb[44].mxu1 }
 0x5ef   :  { %v5861_v41 = vadd.f32 %v2562_v39, %v5546_v43  ;;  %v3913_v15 = vpop.f32.mrb[45].mxu1 }
 0x5f0   :  { %v2506_v23 = vpop.f32.mrb[44].mxu0  ;;  %v2565_v8 = vpop.f32.mrb[46].mxu1 }
 0x5f1   :  { %v2507_v55 = vadd.f32 %v2506_v23, %v5543_v6  ;;  %v3905_v48 = vpop.f32.mrb[45].mxu0  ;;  %v3914_v52 = vpop.f32.mrb[47].mxu1  ;;  %v2801_v44 = vsel %vm1043_vm13, %v5861_v41, -inf }
 0x5f2   :  { %v2509_v20 = vpop.f32.mrb[46].mxu0  ;;  %2802 = vmax.xlane.f32.xlu1 %v2801_v44 }
 0x5f3   :  { %v3906_v21 = vpop.f32.mrb[47].mxu0  ;;  %v2798_v63 = vsel %vm1043_vm13, %v2507_v55, -inf }
 0x5f4   :  { %2799 = vmax.xlane.f32.xlu0 %v2798_v63 }
 0x5fe   :  { %v2674_v27 = vpop.f32.mrb[48].mxu1 }
 0x5ff   :  { %v5868_v43 = vadd.f32 %v2674_v27, %v5562_v13  ;;  %v3929_v49 = vpop.f32.mrb[49].mxu1 }
 0x600   :  { %v2618_v4 = vpop.f32.mrb[48].mxu0  ;;  %v2677_v45 = vpop.f32.mrb[50].mxu1 }
 0x601   :  { %v5871_v6 = vadd.f32 %v2618_v4, %v5559_v54  ;;  %v3921_v7 = vpop.f32.mrb[49].mxu0  ;;  %v3930_v19 = vpop.f32.mrb[51].mxu1  ;;  %v2807_v24 = vsel %vm1043_vm13, %v5868_v43, -inf }
 0x602   :  { %v2621_v30 = vpop.f32.mrb[50].mxu0  ;;  %2808 = vmax.xlane.f32.xlu1 %v2807_v24 }
 0x603   :  { %v3922_v17 = vpop.f32.mrb[51].mxu0  ;;  %v2804_v12 = vsel %vm1043_vm13, %v5871_v6, -inf }
 0x604   :  { %2805 = vmax.xlane.f32.xlu0 %v2804_v12  ;;  %v4182_v17 = vld [vmem:[#allocation8 + $0x10] ss:$8 sps:$4 sm:$0xff]   ;;  %v4183_v12 = vld [vmem:[#allocation8] ss:$8 sps:$4 sm:$0xff]  }
 0x60e   :  { %v2786_v13 = vpop.f32.mrb[52].mxu1 }
 0x60f   :  { %v5878_v2 = vadd.f32 %v2786_v13, %v5578_v3  ;;  %v3945_v5 = vpop.f32.mrb[53].mxu1  ;;  %v5888_v3 = vpop.permute.xlu0 %3035  ;;  %v6092_v13 = vld [vmem:[#allocation18_spill] sm:$0xff] }
 0x610   :  { %v2730_v54 = vpop.f32.mrb[52].mxu0  ;;  %v2789_v0 = vpop.f32.mrb[54].mxu1  ;;  %v4084_v5 = vld [vmem:[#allocation8 + $0x4] ss:$8 sps:$4 sm:$0xff]  }
 0x611   :  { %v2731_v56 = vadd.f32 %v2730_v54, %v5575_v58  ;;  %v3937_v29 = vpop.f32.mrb[53].mxu0  ;;  %v3946_v16 = vpop.f32.mrb[55].mxu1  ;;  %v2813_v1 = vsel %vm1043_vm13, %v5878_v2, -inf  ;;  %v6093_v54 = vld [vmem:[#allocation17_spill] sm:$0xff] }
 0x612   :  { %v2733_v42 = vpop.f32.mrb[54].mxu0  ;;  %2814 = vmax.xlane.f32.xlu1 %v2813_v1  ;;  %v5890_v58 = vpop.permute.xlu1 %2986 }
 0x613   :  { %v3938_v34 = vpop.f32.mrb[55].mxu0  ;;  %v2810_v47 = vsel %vm1043_vm13, %v2731_v56, -inf  ;;  %v5892_v22 = vpop.permute.xlu0 %3037 }
 0x614   :  { %2811 = vmax.xlane.f32.xlu0 %v2810_v47 }
 0x616   :  { %v5894_v36 = vpop.permute.xlu1 %2988 }
 0x617   :  { %v5896_v18 = vpop.permute.xlu0 %3133 }
 0x61a   :  { %v5898_v38 = vpop.permute.xlu1 %3084 }
 0x623   :  { %3086 = vrot.lane.b32.xlu1 %v5426_v35, %s4345_s10 }
 0x62a   :  { %3135 = vrot.lane.b32.xlu0 %v5417_v61, %s4345_s10 }
 0x66f   :  { %v2797_v26 = vpop.xlane.xlu0 %2796 }
 0x670   :  { %v2817_v59 = vsub.f32 %v5847_v11, %v2797_v26 }
 0x671   :  { %v2794_v40 = vpop.xlane.xlu1 %2793 }
 0x672   :  { %v2816_v35 = vsub.f32 %v5850_v31, %v2794_v40  ;;  %v2826_v28 = vmul.f32 1.442695, %v2817_v59 }
 0x674   :  { %v2824_v61 = vmul.f32 1.442695, %v2816_v35  ;;  %4149 = vpow2.f32 %v2826_v28 }
 0x676   :  { %4151 = vpow2.f32 %v2824_v61 }
 0x67e   :  { %v5902_v57 = vpop.eup %4149 }
 0x67f   :  { %v2843_v53 = vsel %vm1043_vm13, %v5902_v57, 0.0  ;;  %v2803_v25 = vpop.xlane.xlu1 %2802 }
 0x680   :  { %v5904_v33 = vpop.eup %4151  ;;  %2844 = vadd.xlane.f32.xlu1 %v2843_v53  ;;  %v2819_v39 = vsub.f32 %v5861_v41, %v2803_v25 }
 0x681   :  { %v2800_v51 = vpop.xlane.xlu0 %2799  ;;  %v2840_v60 = vsel %vm1043_vm13, %v5904_v33, 0.0 }
 0x682   :  { %v2818_v11 = vsub.f32 %v2507_v55, %v2800_v51  ;;  %2841 = vadd.xlane.f32.xlu0 %v2840_v60  ;;  %v2830_v8 = vmul.f32 1.442695, %v2819_v39 }
 0x684   :  { %v2828_v62 = vmul.f32 1.442695, %v2818_v11 }
 0x686   :  { %4153 = vpow2.f32 %v2828_v62 }
 0x687   :  { %4155 = vpow2.f32 %v2830_v8 }
 0x68f   :  { %v2809_v15 = vpop.xlane.xlu1 %2808 }
 0x690   :  { %v5910_v31 = vpop.eup %4153  ;;  %v2821_v55 = vsub.f32 %v5868_v43, %v2809_v15 }
 0x691   :  { %v2846_v46 = vsel %vm1043_vm13, %v5910_v31, 0.0  ;;  %3182 = vrot.lane.b32.xlu1 %v5394_v14, %s4345_s10  ;;  %v2806_v23 = vpop.xlane.xlu0 %2805  ;;  %v5921_v21 = vpop.eup %4155 }
 0x692   :  { %2847 = vadd.xlane.f32.xlu0 %v2846_v46  ;;  %v2834_v52 = vmul.f32 1.442695, %v2821_v55  ;;  %v2820_v14 = vsub.f32 %v5871_v6, %v2806_v23  ;;  %v2849_v43 = vsel %vm1043_vm13, %v5921_v21, 0.0 }
 0x694   :  { %4157 = vpow2.f32 %v2834_v52  ;;  %v2832_v63 = vmul.f32 1.442695, %v2820_v14 }
 0x69e   :  { %v5926_v49 = vpop.eup %4157 }
 0x69f   :  { %v2815_v41 = vpop.xlane.xlu1 %2814 }
 0x6a0   :  { %v2823_v27 = vsub.f32 %v5878_v2, %v2815_v41  ;;  %v4083_v2 = vld [vmem:[#allocation8 + $0x14] ss:$8 sps:$4 sm:$0xff]  }
 0x6a1   :  { %v2812_v48 = vpop.xlane.xlu0 %2811 }
 0x6a2   :  { %v2822_v44 = vsub.f32 %v2731_v56, %v2812_v48  ;;  %v2838_v4 = vmul.f32 1.442695, %v2823_v27 }
 0x6a3   :  { %v3087_v56 = vpop.permute.xlu1 %3086 }
 0x6a4   :  { %v2836_v20 = vmul.f32 1.442695, %v2822_v44 }
 0x6a5   :  { %v3136_v0 = vpop.permute.xlu0 %3135 }
 0x6a6   :  { %4159 = vpow2.f32 %v2836_v20 }
 0x6a7   :  { %4161 = vpow2.f32 %v2832_v63  ;;  %v3459_v63 = vpack.c.b16 %v5858_v9, %v5858_v9 }
 0x6a8   :  { %3231 = vrot.lane.b32.xlu0 %v5460_v32, %s4345_s10  ;;  %v2855_v32 = vsel %vm1043_vm13, %v5926_v49, 0.0  ;;  %4163 = vpow2.f32 %v2838_v4 }
 0x6b0   :  { %v5930_v45 = vpop.eup %4159 }
 0x6b1   :  { %v2858_v6 = vsel %vm1043_vm13, %v5930_v45, 0.0  ;;  %v5934_v7 = vpop.eup %4161 }
 0x6b2   :  { %v2852_v19 = vsel %vm1043_vm13, %v5934_v7, 0.0  ;;  %v5938_v24 = vpop.eup %4163 }
 0x6b3   :  { %v2861_v30 = vsel %vm1043_vm13, %v5938_v24, 0.0 }
 0x6b5   :  { %2850 = vadd.xlane.f32.xlu1 %v2849_v43 }
 0x6b9   :  { %2856 = vadd.xlane.f32.xlu1 %v2855_v32 }
 0x6bd   :  { %2859 = vadd.xlane.f32.xlu1 %v2858_v6 }
 0x6c7   :  { %2853 = vadd.xlane.f32.xlu0 %v2852_v19 }
 0x6cb   :  { %2862 = vadd.xlane.f32.xlu0 %v2861_v30 }
 0x6ce   :  { %3184 = vrot.lane.b32.xlu1 %v5484_v10, %s4345_s10 }
 0x6d2   :  { %3386 = vrot.lane.b32.xlu1 %v4182_v17, %s4346_s11 }
 0x6d6   :  { %3463 = vrot.lane.b32.xlu1 %v4183_v12, %s4346_s11 }
 0x6da   :  { %3516 = vrot.lane.b32.xlu1 %v6092_v13, %s4346_s11 }
 0x6e1   :  { %3233 = vrot.lane.b32.xlu0 %v5488_v37, %s4345_s10 }
 0x6e5   :  { %3388 = vrot.lane.b32.xlu0 %v4083_v2, %s4346_s11 }
 0x6e9   :  { %3465 = vrot.lane.b32.xlu0 %v4084_v5, %s4346_s11 }
 0x6ed   :  { %3518 = vrot.lane.b32.xlu0 %v6093_v54, %s4346_s11 }
 0x70d   :  { %v2845_v29 = vpop.xlane.xlu1 %2844 }
 0x70e   :  { %4165 = vrcp.f32 %v2845_v29 }
 0x70f   :  { %v2842_v10 = vpop.xlane.xlu0 %2841 }
 0x710   :  { %4167 = vrcp.f32 %v2842_v10 }
 0x718   :  { %v4166_v16 = vpop.eup %4165 }
 0x719   :  { %v2873_v42 = vmul.f32 %v4166_v16, %v5902_v57 }
 0x71a   :  { %v4168_v1 = vpop.eup %4167 }
 0x71b   :  { %v2872_v34 = vmul.f32 %v4168_v1, %v5904_v33  ;;  %v2881_v47 = vpack.c.bf16 %v2873_v42, %v2873_v42 }
 0x71d   :  { %v2880_v37 = vpack.c.bf16 %v2872_v34, %v2872_v34  ;;  %3960 = vmatmul.mubr.msk.bf16.vlgmr.msra.gmra.mrb[56].mxu1 %vm1043_vm13, %v2881_v47 }
 0x71e   :  { %3972 = vmatpush3.bf16.msra.mxu1 %v5888_v3  ;;  %3975 = vmatprep.mubr.msk.bf16.mxu1 %vm4342_vm11, %v4341_v50 }
 0x71f   :  { %3952 = vmatmul.mubr.msk.bf16.vlgmr.msra.gmra.mrb[56].mxu0 %vm1043_vm13, %v2880_v37  ;;  %v2848_v26 = vpop.xlane.xlu0 %2847  ;;  %3973 = vmatprep.subr.bf16.mxu1 %v4341_v50 }
 0x720   :  { %3964 = vmatpush3.bf16.msra.mxu0 %v5890_v58  ;;  %4169 = vrcp.f32 %v2848_v26  ;;  %3967 = vmatprep.mubr.msk.bf16.mxu0 %vm4342_vm11, %v4341_v50 }
 0x721   :  { %3965 = vmatprep.subr.bf16.mxu0 %v4341_v50 }
 0x722   :  { %3974 = vmatpush3.bf16.msra.mxu1 %v5892_v22  ;;  %v3183_v22 = vpop.permute.xlu1 %3182 }
 0x723   :  { %3987 = vmatprep.subr.bf16.mxu1 %v4341_v50  ;;  %v3232_v61 = vpop.permute.xlu0 %3231 }
 0x724   :  { %3966 = vmatpush3.bf16.msra.mxu0 %v5894_v36 }
 0x725   :  { %3979 = vmatprep.subr.bf16.mxu0 %v4341_v50 }
 0x72a   :  { %v4170_v3 = vpop.eup %4169 }
 0x72b   :  { %v2874_v58 = vmul.f32 %v4170_v3, %v5910_v31 }
 0x72d   :  { %v2882_v59 = vpack.c.bf16 %v2874_v58, %v2874_v58 }
 0x72f   :  { %3968 = vmatmul.mubr.msk.bf16.vlgmr.msra.gmra.mrb[60].mxu0 %vm1043_vm13, %v2882_v59 }
 0x730   :  { %3980 = vmatpush3.bf16.msra.mxu0 %v5898_v38  ;;  %3983 = vmatprep.mubr.msk.bf16.mxu0 %vm4342_vm11, %v4341_v50 }
 0x731   :  { %3981 = vmatprep.subr.bf16.mxu0 %v4341_v50 }
 0x734   :  { %3982 = vmatpush3.bf16.msra.mxu0 %v3087_v56 }
 0x735   :  { %3995 = vmatprep.subr.bf16.mxu0 %v4341_v50 }
 0x742   :  { %v2851_v36 = vpop.xlane.xlu1 %2850 }
 0x743   :  { %4171 = vrcp.f32 %v2851_v36 }
 0x746   :  { %v2857_v40 = vpop.xlane.xlu1 %2856 }
 0x747   :  { %4173 = vrcp.f32 %v2857_v40 }
 0x74a   :  { %v2860_v38 = vpop.xlane.xlu1 %2859 }
 0x74d   :  { %v4172_v35 = vpop.eup %4171 }
 0x74e   :  { %v2875_v28 = vmul.f32 %v4172_v35, %v5921_v21  ;;  %v3185_v11 = vpop.permute.xlu1 %3184 }
 0x750   :  { %v2883_v57 = vpack.c.bf16 %v2875_v28, %v2875_v28 }
 0x751   :  { %v4174_v33 = vpop.eup %4173 }
 0x752   :  { %3976 = vmatmul.mubr.msk.bf16.vlgmr.msra.gmra.mrb[60].mxu1 %vm1043_vm13, %v2883_v57  ;;  %v2877_v51 = vmul.f32 %v4174_v33, %v5926_v49  ;;  %v3387_v31 = vpop.permute.xlu1 %3386 }
 0x753   :  { %3988 = vmatpush3.bf16.msra.mxu1 %v5896_v18  ;;  %3991 = vmatprep.mubr.msk.bf16.mxu1 %vm4342_vm11, %v4341_v50 }
 0x754   :  { %v2854_v53 = vpop.xlane.xlu0 %2853  ;;  %3989 = vmatprep.subr.bf16.mxu1 %v4341_v50  ;;  %v2885_v62 = vpack.c.bf16 %v2877_v51, %v2877_v51 }
 0x755   :  { %4175 = vrcp.f32 %v2854_v53 }
 0x756   :  { %4177 = vrcp.f32 %v2860_v38  ;;  %v3464_v55 = vpop.permute.xlu1 %3463 }
 0x757   :  { %3990 = vmatpush3.bf16.msra.mxu1 %v3136_v0 }
 0x758   :  { %v2863_v60 = vpop.xlane.xlu0 %2862  ;;  %4003 = vmatprep.subr.bf16.mxu1 %v4341_v50 }
 0x759   :  { %4179 = vrcp.f32 %v2863_v60 }
 0x75a   :  { %3992 = vmatmul.mubr.msk.bf16.vlgmr.msra.gmra.mrb[64].mxu1 %vm1043_vm13, %v2885_v62 }
 0x75b   :  { %4004 = vmatpush3.bf16.msra.mxu1 %v3232_v61  ;;  %4007 = vmatprep.mubr.msk.bf16.mxu1 %vm4342_vm11, %v4341_v50 }
 0x75c   :  { %v3234_v18 = vpop.permute.xlu0 %3233  ;;  %4005 = vmatprep.subr.bf16.mxu1 %v4341_v50 }
 0x75f   :  { %v4176_v46 = vpop.eup %4175  ;;  %4006 = vmatpush3.bf16.msra.mxu1 %v3234_v18 }
 0x760   :  { %v2876_v25 = vmul.f32 %v4176_v46, %v5934_v7  ;;  %v3389_v39 = vpop.permute.xlu0 %3388  ;;  %4017 = vmatprep.subr.bf16.mxu1 %v4341_v50  ;;  %v4178_v15 = vpop.eup %4177 }
 0x761   :  { %v2878_v44 = vmul.f32 %v4178_v15, %v5930_v45  ;;  %v3391_v21 = vsel %vm1043_vm13, %v3387_v31, %v3389_v39 }
 0x762   :  { %v2884_v23 = vpack.c.bf16 %v2876_v25, %v2876_v25 }
 0x763   :  { %v4180_v8 = vpop.eup %4179  ;;  %v2886_v41 = vpack.c.bf16 %v2878_v44, %v2878_v44 }
 0x764   :  { %v2879_v48 = vmul.f32 %v4180_v8, %v5938_v24  ;;  %3984 = vmatmul.mubr.msk.bf16.vlgmr.msra.gmra.mrb[64].mxu0 %vm1043_vm13, %v2884_v23  ;;  %v3466_v52 = vpop.permute.xlu0 %3465 }
 0x765   :  { %3996 = vmatpush3.bf16.msra.mxu0 %v3183_v22  ;;  %3999 = vmatprep.mubr.msk.bf16.mxu0 %vm4342_vm11, %v4341_v50  ;;  %v3467_v14 = vsel %vm1043_vm13, %v3464_v55, %v3466_v52 }
 0x766   :  { %3997 = vmatprep.subr.bf16.mxu0 %v4341_v50  ;;  %v2887_v20 = vpack.c.bf16 %v2879_v48, %v2879_v48 }
 0x768   :  { %4008 = vmatmul.mubr.msk.bf16.vlgmr.msra.gmra.mrb[68].mxu1 %vm1043_vm13, %v2887_v20 }
 0x769   :  { %3998 = vmatpush3.bf16.msra.mxu0 %v3185_v11  ;;  %4018 = vmatpush3.bf16.msra.mxu1 %v3467_v14 }
 0x76a   :  { %4019 = vmatprep.mubr.msk.bf16.mxu1 %vm4342_vm11, %v4341_v50  ;;  %4011 = vmatprep.subr.bf16.mxu0 %v4341_v50 }
 0x76c   :  { %4000 = vmatmul.mubr.msk.bf16.vlgmr.msra.gmra.mrb[68].mxu0 %vm1043_vm13, %v2886_v41 }
 0x76d   :  { %4012 = vmatpush3.bf16.msra.mxu0 %v3391_v21  ;;  %4013 = vmatprep.mubr.msk.bf16.mxu0 %vm4342_vm11, %v4341_v50 }
 0x770   :  { %4020 = vmatmul.mubr.msk.bf16.vlgmr.msra.gmra.mrb[72].mxu1 %vm1257_vm12, %v3459_v63 }
 0x7f0   :  { %v2980_v27 = vpop.f32.mrb[56].mxu1 }
 0x7f1   :  { %v3287_v43 = vsel %vm2271_vm0, %v2980_v27, 0.0  ;;  %v3961_v49 = vpop.f32.mrb[57].mxu1 }
 0x7f2   :  { %v2931_v4 = vpop.f32.mrb[56].mxu0  ;;  %v3288_v32 = vrot.slane %v3287_v43, 4  ;;  %v2983_v6 = vpop.f32.mrb[58].mxu1 }
 0x7f3   :  { %v3280_v45 = vsel %vm2271_vm0, %v2931_v4, 0.0  ;;  %v3953_v7 = vpop.f32.mrb[57].mxu0  ;;  %v3962_v24 = vpop.f32.mrb[59].mxu1 }
 0x7f4   :  { %v3281_v19 = vrot.slane %v3280_v45, 4  ;;  %v2934_v30 = vpop.f32.mrb[58].mxu0  ;;  %v3289_v17 = vadd.f32 %v3288_v32, %v3287_v43 }
 0x7f5   :  { %v3954_v50 = vpop.f32.mrb[59].mxu0 }
 0x7f6   :  { %v3282_v12 = vadd.f32 %v3281_v19, %v3280_v45  ;;  %v3290_v13 = vrot.slane %v3289_v17, 2 }
 0x7f8   :  { %v3283_v9 = vrot.slane %v3282_v12, 2  ;;  %v3291_v2 = vadd.f32 %v3290_v13, %v3289_v17 }
 0x7fa   :  { %v3284_v5 = vadd.f32 %v3283_v9, %v3282_v12  ;;  %v3292_v54 = vrot.slane %v3291_v2, 1 }
 0x7fc   :  { %v3285_v56 = vrot.slane %v3284_v5, 1  ;;  %v3293_v0 = vadd.f32 %v3292_v54, %v3291_v2 }
 0x7fe   :  { %v3286_v29 = vadd.f32 %v3285_v56, %v3284_v5  ;;  %v3337_v10 = vmul.f32 0.33333334, %v3293_v0 }
 0x800   :  { %v3336_v16 = vmul.f32 0.33333334, %v3286_v29  ;;  %v3345_v1 = vpack.c.bf16 %v3337_v10, %v3337_v10 }
 0x802   :  { %v3344_v42 = vpack.c.bf16 %v3336_v16, %v3336_v16  ;;  %v3029_v34 = vpop.f32.mrb[60].mxu0  ;;  %v3361_v26 = vunpack.c.l.b16 %v3345_v1 }
 0x803   :  { %v3294_v47 = vsel %vm2271_vm0, %v3029_v34, 0.0  ;;  %v3969_v37 = vpop.f32.mrb[61].mxu0 }
 0x804   :  { %v3360_v3 = vunpack.c.l.b16 %v3344_v42  ;;  %v3295_v58 = vrot.slane %v3294_v47, 4  ;;  %v3032_v59 = vpop.f32.mrb[62].mxu0 }
 0x805   :  { %v3970_v22 = vpop.f32.mrb[63].mxu0 }
 0x806   :  { %v3369_v36 = vsel %vm3368_vm1, %v3361_v26, %v3360_v3  ;;  %v3296_v40 = vadd.f32 %v3295_v58, %v3294_v47 }
 0x808   :  { %v3297_v35 = vrot.slane %v3296_v40, 2 }
 0x80a   :  { %v3298_v28 = vadd.f32 %v3297_v35, %v3296_v40 }
 0x80c   :  { %v3299_v61 = vrot.slane %v3298_v28, 1 }
 0x80e   :  { %v3300_v57 = vadd.f32 %v3299_v61, %v3298_v28 }
 0x810   :  { %v3338_v33 = vmul.f32 0.33333334, %v3300_v57 }
 0x812   :  { %v3346_v38 = vpack.c.bf16 %v3338_v33, %v3338_v33 }
 0x814   :  { %v3362_v53 = vunpack.c.l.b16 %v3346_v38 }
 0x816   :  { %v3371_v51 = vsel %vm3370_vm2, %v3362_v53, %v3369_v36 }
 0x825   :  { %v3078_v60 = vpop.f32.mrb[60].mxu1 }
 0x826   :  { %v3301_v11 = vsel %vm2271_vm0, %v3078_v60, 0.0  ;;  %v3977_v62 = vpop.f32.mrb[61].mxu1 }
 0x827   :  { %v3302_v18 = vrot.slane %v3301_v11, 4  ;;  %v3081_v31 = vpop.f32.mrb[62].mxu1 }
 0x828   :  { %v3978_v46 = vpop.f32.mrb[63].mxu1 }
 0x829   :  { %v3303_v25 = vadd.f32 %v3302_v18, %v3301_v11 }
 0x82b   :  { %v3304_v39 = vrot.slane %v3303_v25, 2 }
 0x82d   :  { %v3305_v15 = vadd.f32 %v3304_v39, %v3303_v25  ;;  %v3176_v23 = vpop.f32.mrb[64].mxu1 }
 0x82e   :  { %v3315_v8 = vsel %vm2271_vm0, %v3176_v23, 0.0  ;;  %v3993_v55 = vpop.f32.mrb[65].mxu1 }
 0x82f   :  { %v3306_v48 = vrot.slane %v3305_v15, 1  ;;  %v3316_v52 = vrot.slane %v3315_v8, 4  ;;  %v3179_v44 = vpop.f32.mrb[66].mxu1 }
 0x830   :  { %v3994_v20 = vpop.f32.mrb[67].mxu1 }
 0x831   :  { %v3307_v14 = vadd.f32 %v3306_v48, %v3305_v15  ;;  %v3317_v21 = vadd.f32 %v3316_v52, %v3315_v8 }
 0x833   :  { %v3339_v41 = vmul.f32 0.33333334, %v3307_v14  ;;  %v3318_v63 = vrot.slane %v3317_v21, 2  ;;  %v3517_v14 = vpop.permute.xlu1 %3516 }
 0x835   :  { %v3347_v27 = vpack.c.bf16 %v3339_v41, %v3339_v41  ;;  %v3319_v43 = vadd.f32 %v3318_v63, %v3317_v21  ;;  %v3519_v21 = vpop.permute.xlu0 %3518 }
 0x836   :  { %v3520_v63 = vsel %vm1043_vm13, %v3517_v14, %v3519_v21 }
 0x837   :  { %v3127_v49 = vpop.f32.mrb[64].mxu0  ;;  %v3363_v4 = vunpack.c.l.b16 %v3347_v27  ;;  %v3320_v24 = vrot.slane %v3319_v43, 1 }
 0x838   :  { %v3308_v32 = vsel %vm2271_vm0, %v3127_v49, 0.0  ;;  %v3985_v45 = vpop.f32.mrb[65].mxu0 }
 0x839   :  { %v3309_v6 = vrot.slane %v3308_v32, 4  ;;  %v3130_v7 = vpop.f32.mrb[66].mxu0  ;;  %v3373_v19 = vsel %vm3372_vm3, %v3363_v4, %v3371_v51  ;;  %v3321_v54 = vadd.f32 %v3320_v24, %v3319_v43 }
 0x83a   :  { %v3986_v30 = vpop.f32.mrb[67].mxu0 }
 0x83b   :  { %v3310_v17 = vadd.f32 %v3309_v6, %v3308_v32  ;;  %v3274_v50 = vpop.f32.mrb[68].mxu1  ;;  %v3341_v26 = vmul.f32 0.33333334, %v3321_v54 }
 0x83c   :  { %v3329_v12 = vsel %vm2271_vm0, %v3274_v50, 0.0  ;;  %v4009_v13 = vpop.f32.mrb[69].mxu1 }
 0x83d   :  { %v3311_v9 = vrot.slane %v3310_v17, 2  ;;  %v3330_v2 = vrot.slane %v3329_v12, 4  ;;  %v3277_v5 = vpop.f32.mrb[70].mxu1  ;;  %v3349_v33 = vpack.c.bf16 %v3341_v26, %v3341_v26 }
 0x83e   :  { %v4010_v56 = vpop.f32.mrb[71].mxu1 }
 0x83f   :  { %v3312_v0 = vadd.f32 %v3311_v9, %v3310_v17  ;;  %v3331_v29 = vadd.f32 %v3330_v2, %v3329_v12  ;;  %v3225_v10 = vpop.f32.mrb[68].mxu0  ;;  %v3365_v18 = vunpack.c.l.b16 %v3349_v33 }
 0x840   :  { %v3322_v16 = vsel %vm2271_vm0, %v3225_v10, 0.0  ;;  %v4001_v1 = vpop.f32.mrb[69].mxu0 }
 0x841   :  { %v3313_v42 = vrot.slane %v3312_v0, 1  ;;  %v3332_v34 = vrot.slane %v3331_v29, 2  ;;  %v3323_v47 = vrot.slane %v3322_v16, 4  ;;  %v3228_v37 = vpop.f32.mrb[70].mxu0 }
 0x842   :  { %v4002_v3 = vpop.f32.mrb[71].mxu0 }
 0x843   :  { %v3314_v58 = vadd.f32 %v3313_v42, %v3312_v0  ;;  %v3333_v59 = vadd.f32 %v3332_v34, %v3331_v29  ;;  %v3324_v22 = vadd.f32 %v3323_v47, %v3322_v16  ;;  %v3506_v36 = vpop.f32.mrb[72].mxu1 }
 0x844   :  { %v4021_v40 = vpop.f32.mrb[73].mxu1 }
 0x845   :  { %v3340_v35 = vmul.f32 0.33333334, %v3314_v58  ;;  %v3334_v28 = vrot.slane %v3333_v59, 1  ;;  %v3325_v61 = vrot.slane %v3324_v22, 2  ;;  %v3509_v57 = vpop.f32.mrb[74].mxu1 }
 0x846   :  { %v4022_v38 = vpop.f32.mrb[75].mxu1 }
 0x847   :  { %v3348_v53 = vpack.c.bf16 %v3340_v35, %v3340_v35  ;;  %v3335_v51 = vadd.f32 %v3334_v28, %v3333_v59  ;;  %v3326_v60 = vadd.f32 %v3325_v61, %v3324_v22 }
 0x849   :  { %v3364_v11 = vunpack.c.l.b16 %v3348_v53  ;;  %v3327_v62 = vrot.slane %v3326_v60, 1  ;;  %v3343_v31 = vmul.f32 0.33333334, %v3335_v51 }
 0x84b   :  { %v3375_v46 = vsel %vm3374_vm4, %v3364_v11, %v3373_v19  ;;  %v3328_v25 = vadd.f32 %v3327_v62, %v3326_v60  ;;  %v3351_v23 = vpack.c.bf16 %v3343_v31, %v3343_v31 }
 0x84c   :  { %v3377_v39 = vsel %vm3376_vm5, %v3365_v18, %v3375_v46 }
 0x84d   :  { %v3342_v15 = vmul.f32 0.33333334, %v3328_v25  ;;  %v3367_v48 = vunpack.c.l.b16 %v3351_v23 }
 0x84f   :  { %v3350_v8 = vpack.c.bf16 %v3342_v15, %v3342_v15 }
 0x851   :  { %v3366_v55 = vunpack.c.l.b16 %v3350_v8 }
 0x853   :  { %v3379_v52 = vsel %vm3378_vm7, %v3366_v55, %v3377_v39 }
 0x854   :  { %v3381_v44 = vsel %vm3380_vm8, %v3367_v48, %v3379_v52 }
 0x855   :  { %v3382_v20 = vpack.c.b16 %v3381_v44, %v3381_v44 }
 0x857   :  { %4014 = vmatmul.mubr.msk.bf16.vlgmr.msra.gmra.mrb[72].mxu0 %vm1257_vm12, %v3382_v20 }
 0x92a   :  { %v3430_v41 = vpop.f32.mrb[72].mxu0 }
 0x92b   :  { %v3507_v27 = vadd.f32 %v3506_v36, %v3430_v41  ;;  %v4015_v43 = vpop.f32.mrb[73].mxu0 }
 0x92c   :  { %v3433_v49 = vpop.f32.mrb[74].mxu0 }
 0x92d   :  { %v3522_v4 = vadd.f32 %v3520_v63, %v3507_v27  ;;  %v4016_v32 = vpop.f32.mrb[75].mxu0 }
 0x92f   :  { %3523 = vst [vmem:[#allocation11] sm:$0xff] %v3522_v4 }
 0x930   :  { %4305 = shalt.err (!%p4302_p2)
}
 0x931   :  { %s4306_s18 = scalar_lea.hbm %s6038_s6, 128 }
 0x932   :  { %p4307_p3 = scmp.ne.s32.totalorder %s6038_s6, %s4306_s18  ;;  %p4310_p4 = scmp.lt.u32.totalorder %s4306_s18, %s6038_s6 }
 0x934   :  { %p4312_p5 = pnand %p4310_p4, %p4307_p3 }
 0x936   :  { %4315 = shalt.err (!%p4312_p5)
}
 0x937   :  { %3533 = dma.vmem_to_hbm [thread:$0]  %s3531_s14, 128, %s6038_s6, [#allocation4]  }
 0x938   :  { %4322 = dma.done.wait [#allocation4], 128  }
 0x939   :  { %4323 = vsyncadd [#allocation4], 4294967168 }
 0x93a   :  { %3537 = vsyncpa [#allocation3], 1 }
 0x93b   :  { %3538 = vsyncpa [#allocation6], 1 }
 0x93c   :  { %3539 = vsyncpa [#allocation9], 1 }
 0x93d   :  { %3540 = vsyncpa [#allocation4], 1 }

</bundles_post_ra>
